<compile_context>
chip_gen: v5e
topology: v5e:2x2
jax: 0.10.0
libtpu: 0.0.40
codegen_flags: <defaults>
</compile_context>

<pallas_src>
import functools
import numpy as np
import jax
import jax.numpy as jnp
from jax.experimental import pallas as pl
from jax.experimental.pallas import tpu as pltpu


def _yolo_loss_kernel(gt_ref, anch_ref, pred_ref, yt_ref, noobj_ref, grid_ref,
                      out_ref, *, num_anchors, max_boxes, ignore_threshold):
    """One batch plane, all anchors.  Spatial positions are packed sublane+lane
    dense as (S, 128) tiles; padded cells carry obj=0 and noobj=0 and therefore
    never contribute to any sum.

    Ref shapes (batch dim squeezed by BlockSpec):
      gt_ref    : SMEM (bs*max_boxes*4,)   GT boxes, grid units, zero padded
      anch_ref  : SMEM (A*2,)              scaled anchors of this level
      pred_ref  : VMEM (A, attrs, S, 128)
      yt_ref    : VMEM (A, attrs, S, 128)
      noobj_ref : VMEM (A, S, 128)
      grid_ref  : VMEM (2, S, 128)         row 0 = grid x, row 1 = grid y
      out_ref   : VMEM (8, 128)            partial sums, lane-broadcast
    """
    b = pl.program_id(0)

    gx = grid_ref[0, :, :]
    gy = grid_ref[1, :, :]

    # GT box corners for this batch: scalars from SMEM, hoisted out of the
    # anchor loop.  Zero-padded boxes have area 0 -> never trigger "ignore".
    base = b * (max_boxes * 4)
    gt_boxes = []
    for t in range(max_boxes):
        off = base + 4 * t
        gcx = gt_ref[off + 0]
        gcy = gt_ref[off + 1]
        gw = gt_ref[off + 2]
        gh = gt_ref[off + 3]
        gt_boxes.append((gcx - 0.5 * gw, gcx + 0.5 * gw,
                         gcy - 0.5 * gh, gcy + 0.5 * gh, gw * gh))

    def recip(v):
        return pl.reciprocal(v, approx=True)            # EUP, keeps VALU free

    def bce_logits(z, t):
        # max(z,0) - z*t + log(1 + exp(-|z|))
        return jnp.maximum(z, 0.0) - z * t + jnp.log(1.0 + jnp.exp(-jnp.abs(z)))

    loc_sum = jnp.float32(0.0)
    n_obj = jnp.float32(0.0)
    cls_sum = jnp.float32(0.0)
    conf_sum = jnp.float32(0.0)
    conf_cnt = jnp.float32(0.0)

    for a in range(num_anchors):                         # static, A is small
        aw = anch_ref[2 * a]
        ah = anch_ref[2 * a + 1]

        # ---- channel views, each a dense (S, 128) tile ----
        x = recip(1.0 + jnp.exp(-pred_ref[a, 0, :, :]))  # sigmoid via EUP
        y = recip(1.0 + jnp.exp(-pred_ref[a, 1, :, :]))
        pb_w = jnp.exp(pred_ref[a, 2, :, :]) * aw
        pb_h = jnp.exp(pred_ref[a, 3, :, :]) * ah
        conf_logit = pred_ref[a, 4, :, :]
        cls_logit = pred_ref[a, 5:, :, :]                # (C, S, 128)

        # ---- decoded predicted boxes (grid units), as in get_ignore ----
        pb_x = x + gx
        pb_y = y + gy
        pb_x1 = pb_x - 0.5 * pb_w
        pb_x2 = pb_x + 0.5 * pb_w
        pb_y1 = pb_y - 0.5 * pb_h
        pb_y2 = pb_y + 0.5 * pb_h
        pb_area = pb_w * pb_h

        # ---- ignore pass: any GT box with IoU > threshold (division-free) ----
        ignore = jnp.zeros(pb_area.shape, jnp.bool_)
        for (g_x1, g_x2, g_y1, g_y2, g_area) in gt_boxes:
            iw = jnp.maximum(jnp.minimum(pb_x2, g_x2) - jnp.maximum(pb_x1, g_x1), 0.0)
            ih = jnp.maximum(jnp.minimum(pb_y2, g_y2) - jnp.maximum(pb_y1, g_y1), 0.0)
            inter = iw * ih
            union = g_area + pb_area - inter
            ignore = jnp.logical_or(ignore, inter > ignore_threshold * union)

        noobj = jnp.where(ignore, 0.0, noobj_ref[a, :, :])

        # ---- y_true views ----
        yt_x = yt_ref[a, 0, :, :]
        yt_y = yt_ref[a, 1, :, :]
        yt_w = yt_ref[a, 2, :, :]
        yt_h = yt_ref[a, 3, :, :]
        obj = (yt_ref[a, 4, :, :] == 1.0).astype(jnp.float32)
        yt_cls = yt_ref[a, 5:, :, :]                     # (C, S, 128)
        n_obj = n_obj + jnp.sum(obj)

        # ---- GIoU(pred_boxes, y_true[..., :4]) ----
        b2_x1 = yt_x - 0.5 * yt_w
        b2_x2 = yt_x + 0.5 * yt_w
        b2_y1 = yt_y - 0.5 * yt_h
        b2_y2 = yt_y + 0.5 * yt_h
        iw = jnp.maximum(jnp.minimum(pb_x2, b2_x2) - jnp.maximum(pb_x1, b2_x1), 0.0)
        ih = jnp.maximum(jnp.minimum(pb_y2, b2_y2) - jnp.maximum(pb_y1, b2_y1), 0.0)
        inter = iw * ih
        union = pb_area + yt_w * yt_h - inter
        iou = inter * recip(union)
        ew = jnp.maximum(jnp.maximum(pb_x2, b2_x2) - jnp.minimum(pb_x1, b2_x1), 0.0)
        eh = jnp.maximum(jnp.maximum(pb_y2, b2_y2) - jnp.minimum(pb_y1, b2_y1), 0.0)
        enclose = ew * eh
        giou = iou - (enclose - union) * recip(enclose)
        loc_sum = loc_sum + jnp.sum(jnp.where(obj > 0, 1.0 - giou, 0.0))

        # ---- class / confidence BCE (logits form) ----
        # TODO(synk): for large C (e.g. COCO 80) evaluate the class BCE sparsely
        # on the <=max_boxes obj cells instead of the dense (C,S,128) block.
        cls_sum = cls_sum + jnp.sum(bce_logits(cls_logit, yt_cls) * obj)
        conf_bce = bce_logits(conf_logit, obj)
        conf_mask = jnp.where(jnp.logical_or(noobj > 0, obj > 0), 1.0, 0.0)
        conf_sum = conf_sum + jnp.sum(conf_bce * conf_mask)
        conf_cnt = conf_cnt + jnp.sum(conf_mask)

    # ---- single unmasked (8,128) store of the partial sums ----
    row = jax.lax.broadcasted_iota(jnp.int32, (8, 128), 0)
    out = (jnp.where(row == 0, loc_sum, 0.0)
           + jnp.where(row == 1, n_obj, 0.0)
           + jnp.where(row == 2, cls_sum, 0.0)
           + jnp.where(row == 3, conf_sum, 0.0)
           + jnp.where(row == 4, conf_cnt, 0.0))
    out_ref[...] = out.astype(jnp.float32)


class YOLOLossPallas:
    def __init__(self, anchors, num_classes, input_shape,
                 anchors_mask=((6, 7, 8), (3, 4, 5), (0, 1, 2)),
                 max_boxes=8):
        self.anchors = [tuple(float(v) for v in a) for a in anchors]
        self.num_classes = num_classes
        self.bbox_attrs = 5 + num_classes
        self.input_shape = input_shape
        self.anchors_mask = [list(m) for m in anchors_mask]
        self.giou = True
        self.balance = [0.4, 1.0, 4]
        self.box_ratio = 0.05
        self.obj_ratio = 5 * (input_shape[0] * input_shape[1]) / 416 ** 2
        self.cls_ratio = 1 * (num_classes / 80)
        self.ignore_threshold = 0.5
        # Fixed number of GT boxes used by the in-kernel ignore pass (avoids
        # retracing when box counts vary).  Boxes beyond this are dropped from
        # the ignore pass only.
        self.max_boxes = int(max_boxes)
        self._runners = {}
        self._grid_tabs = {}

    # ----- host-side target preparation (mirrors get_target / calculate_iou) -----
    @staticmethod
    def _calc_iou_np(box_a, box_b):
        a_x1 = box_a[:, 0] - box_a[:, 2] / 2
        a_x2 = box_a[:, 0] + box_a[:, 2] / 2
        a_y1 = box_a[:, 1] - box_a[:, 3] / 2
        a_y2 = box_a[:, 1] + box_a[:, 3] / 2
        b_x1 = box_b[:, 0] - box_b[:, 2] / 2
        b_x2 = box_b[:, 0] + box_b[:, 2] / 2
        b_y1 = box_b[:, 1] - box_b[:, 3] / 2
        b_y2 = box_b[:, 1] + box_b[:, 3] / 2
        iw = np.clip(np.minimum(a_x2[:, None], b_x2[None, :]) -
                     np.maximum(a_x1[:, None], b_x1[None, :]), 0, None)
        ih = np.clip(np.minimum(a_y2[:, None], b_y2[None, :]) -
                     np.maximum(a_y1[:, None], b_y1[None, :]), 0, None)
        inter = iw * ih
        area_a = ((a_x2 - a_x1) * (a_y2 - a_y1))[:, None]
        area_b = ((b_x2 - b_x1) * (b_y2 - b_y1))[None, :]
        return inter / (area_a + area_b - inter)

    def _get_target_np(self, l, targets, anchors, in_h, in_w):
        bs = len(targets)
        A = len(self.anchors_mask[l])
        noobj_mask = np.ones((bs, A, in_h, in_w), np.float32)
        box_loss_scale = np.zeros((bs, A, in_h, in_w), np.float32)
        y_true = np.zeros((bs, A, in_h, in_w, self.bbox_attrs), np.float32)
        anchors_np = np.array(anchors, np.float32)
        anchor_shapes = np.concatenate(
            [np.zeros((len(anchors), 2), np.float32), anchors_np], axis=1)
        for b in range(bs):
            tb_in = np.asarray(targets[b], np.float32).reshape(-1, 5)
            if tb_in.shape[0] == 0:
                continue
            bt = np.zeros_like(tb_in)
            bt[:, [0, 2]] = tb_in[:, [0, 2]] * in_w
            bt[:, [1, 3]] = tb_in[:, [1, 3]] * in_h
            bt[:, 4] = tb_in[:, 4]
            gt_box = np.concatenate(
                [np.zeros((bt.shape[0], 2), np.float32), bt[:, 2:4]], axis=1)
            best_ns = np.argmax(self._calc_iou_np(gt_box, anchor_shapes), axis=-1)
            for t, best_n in enumerate(best_ns):
                if int(best_n) not in self.anchors_mask[l]:
                    continue
                k = self.anchors_mask[l].index(int(best_n))
                i = int(np.floor(bt[t, 0]))
                j = int(np.floor(bt[t, 1]))
                c = int(bt[t, 4])
                noobj_mask[b, k, j, i] = 0
                # giou=True branch of get_target
                y_true[b, k, j, i, 0:4] = bt[t, 0:4]
                y_true[b, k, j, i, 4] = 1
                y_true[b, k, j, i, c + 5] = 1
                box_loss_scale[b, k, j, i] = bt[t, 2] * bt[t, 3] / in_w / in_h
        return y_true, noobj_mask, box_loss_scale

    # ----- cached per-shape artifacts -----
    def _get_grid_tab(self, in_h, in_w):
        key = (in_h, in_w)
        if key not in self._grid_tabs:
            hw = in_h * in_w
            S = (hw + 127) // 128
            tab = np.zeros((2, S * 128), np.float32)
            tab[0, :hw] = np.tile(np.arange(in_w, dtype=np.float32), in_h)
            tab[1, :hw] = np.repeat(np.arange(in_h, dtype=np.float32), in_w)
            self._grid_tabs[key] = jnp.asarray(tab.reshape(2, S, 128))
        return self._grid_tabs[key]

    def _get_runner(self, l, bs, A, attrs, in_h, in_w):
        key = (l, bs, A, attrs, in_h, in_w)
        if key in self._runners:
            return self._runners[key]

        hw = in_h * in_w
        S = (hw + 127) // 128
        hwp = S * 128
        pad = hwp - hw
        C = self.num_classes
        mb = self.max_boxes
        box_ratio = float(self.box_ratio)
        cls_ratio = float(self.cls_ratio)
        obj_ratio = float(self.obj_ratio)
        balance_l = float(self.balance[l])

        smem = pltpu.MemorySpace.SMEM
        kernel = functools.partial(_yolo_loss_kernel,
                                   num_anchors=A,
                                   max_boxes=mb,
                                   ignore_threshold=float(self.ignore_threshold))

        # Per-step input block bytes (pred + y_true + noobj + grid table),
        # x2 for double-buffering, plus a few MiB headroom; capped for v7x.
        in_block_bytes = 4 * (A * hwp * (2 * attrs + 1) + 2 * hwp)
        vmem_limit = int(min(32 << 20, max(16 << 20, 2 * in_block_bytes + (8 << 20))))

        grid_call = pl.pallas_call(
            kernel,
            out_shape=jax.ShapeDtypeStruct((bs, 8, 128), jnp.float32),
            grid=(bs,),
            in_specs=[
                pl.BlockSpec(memory_space=smem),                        # gt_flat
                pl.BlockSpec(memory_space=smem),                        # anch_flat
                pl.BlockSpec((None, A, attrs, S, 128),
                             lambda b: (b, 0, 0, 0, 0)),                # pred
                pl.BlockSpec((None, A, attrs, S, 128),
                             lambda b: (b, 0, 0, 0, 0)),                # y_true
                pl.BlockSpec((None, A, S, 128),
                             lambda b: (b, 0, 0, 0)),                   # noobj
                pl.BlockSpec((2, S, 128), lambda b: (0, 0, 0)),         # grid table
            ],
            out_specs=pl.BlockSpec((None, 8, 128), lambda b: (b, 0, 0)),
            compiler_params=pltpu.CompilerParams(
                dimension_semantics=("parallel",),
                vmem_limit_bytes=vmem_limit),
        )

        @jax.jit
        def run(inp, gt_flat, anch_flat, yt, noobj, grid_tab):
            # reshape/pad fused with the pallas_call under this jit (no eager
            # extra HBM pass for the largest tensor).
            pred = inp.reshape(bs, A, attrs, hw)
            if pad:
                pred = jnp.pad(pred, ((0, 0), (0, 0), (0, 0), (0, pad)))
            pred = pred.reshape(bs, A, attrs, S, 128)

            partial = grid_call(gt_flat, anch_flat, pred, yt, noobj, grid_tab)
            sums = jnp.sum(partial[:, :, 0], axis=0)                    # (8,)
            loc_sum, n_obj, cls_sum, conf_sum, conf_cnt = (
                sums[0], sums[1], sums[2], sums[3], sums[4])

            safe_n = jnp.maximum(n_obj, 1.0)
            loss_loc = loc_sum / safe_n
            loss_cls = cls_sum / (safe_n * C)
            loss_conf = conf_sum / jnp.maximum(conf_cnt, 1.0)

            # mirrors `if n != 0:` in the PyTorch forward
            loss = jnp.where(n_obj > 0,
                             loss_loc * box_ratio + loss_cls * cls_ratio,
                             0.0)
            loss = loss + loss_conf * balance_l * obj_ratio
            return loss

        self._runners[key] = run
        return run

    # ----- forward -----
    def __call__(self, l, inp, targets):
        inp = jnp.asarray(inp, jnp.float32)
        bs, _, in_h, in_w = inp.shape
        stride_h = self.input_shape[0] / in_h
        stride_w = self.input_shape[1] / in_w
        scaled_anchors = [(a_w / stride_w, a_h / stride_h) for a_w, a_h in self.anchors]
        A = len(self.anchors_mask[l])
        attrs = self.bbox_attrs

        hw = in_h * in_w
        S = (hw + 127) // 128
        pad = S * 128 - hw

        # -------- host-side targets (same as PyTorch get_target) --------
        y_true_np, noobj_np, _box_loss_scale = self._get_target_np(
            l, targets, scaled_anchors, in_h, in_w)
        # box_loss_scale only used in the non-GIoU branch (self.giou == True here)

        yt = np.transpose(y_true_np, (0, 1, 4, 2, 3)).reshape(bs, A, attrs, hw)
        if pad:
            yt = np.pad(yt, ((0, 0), (0, 0), (0, 0), (0, pad)))
        yt = yt.reshape(bs, A, attrs, S, 128)

        noobj = noobj_np.reshape(bs, A, hw)
        if pad:  # padded cells get noobj=0 so they are excluded from the conf loss
            noobj = np.pad(noobj, ((0, 0), (0, 0), (0, pad)))
        noobj = noobj.reshape(bs, A, S, 128)

        grid_tab = self._get_grid_tab(in_h, in_w)

        # -------- anchors of this level: A*2 scalars in SMEM --------
        sa_l = np.array(scaled_anchors, np.float32)[self.anchors_mask[l]]   # (A, 2)
        anch_flat = sa_l.reshape(-1)

        # -------- GT boxes (grid units) for the ignore pass: SMEM scalars --------
        mb = self.max_boxes
        gt = np.zeros((bs, mb, 4), np.float32)
        for b in range(bs):
            tb = np.asarray(targets[b], np.float32).reshape(-1, 5)
            k = min(tb.shape[0], mb)
            if k:
                gt[b, :k, 0] = tb[:k, 0] * in_w
                gt[b, :k, 1] = tb[:k, 1] * in_h
                gt[b, :k, 2] = tb[:k, 2] * in_w
                gt[b, :k, 3] = tb[:k, 3] * in_h
        gt_flat = gt.reshape(-1)

        run = self._get_runner(l, bs, A, attrs, in_h, in_w)
        return run(inp, jnp.asarray(gt_flat), jnp.asarray(anch_flat),
                   jnp.asarray(yt), jnp.asarray(noobj), grid_tab)


if __name__ == "__main__":
    key = jax.random.PRNGKey(0)

    anchors = [(10, 13), (16, 30), (33, 23), (30, 61), (62, 45),
               (59, 119), (116, 90), (156, 198), (373, 326)]
    num_classes = 4
    input_shape = (64, 64)          # small synthetic image size
    bs, in_h, in_w = 2, 16, 16      # feature map 16x16 -> stride 4
    l = 2                           # anchors_mask[2] = [0, 1, 2] (small anchors)

    c_in = 3 * (5 + num_classes)    # 27
    x = 0.5 * jax.random.normal(key, (bs, c_in, in_h, in_w), jnp.float32)

    # deterministic targets: list of (num_boxes, 5) arrays, normalized xywh + class
    targets = [
        np.array([[0.50, 0.50, 0.20, 0.20, 1],
                  [0.25, 0.30, 0.15, 0.40, 3],
                  [0.70, 0.80, 0.30, 0.15, 0]], np.float32),
        np.array([[0.40, 0.60, 0.25, 0.25, 2],
                  [0.80, 0.20, 0.10, 0.30, 1]], np.float32),
    ]

    loss_fn = YOLOLossPallas(anchors, num_classes, input_shape)
    loss = loss_fn(l, x, targets)
    loss = jax.block_until_ready(loss)
    assert np.isfinite(np.asarray(loss)).all()
    print("KERNEL_OK")
</pallas_src>

<mosaic_0001>
module attributes {stable_mosaic.version = 11 : i64} {
  func.func @_yolo_loss_kernel(%arg0: i32, %arg1: memref<64xf32, #tpu.memory_space<smem>>, %arg2: memref<6xf32, #tpu.memory_space<smem>>, %arg3: memref<1x3x9x2x128xf32, #tpu.memory_space<vmem>>, %arg4: memref<1x3x9x2x128xf32, #tpu.memory_space<vmem>>, %arg5: memref<1x3x2x128xf32, #tpu.memory_space<vmem>>, %arg6: memref<2x2x128xf32, #tpu.memory_space<vmem>>, %arg7: memref<1x8x128xf32, #tpu.memory_space<vmem>>) attributes {dimension_semantics = [#tpu.dimension_semantics<parallel>], iteration_bounds = array<i64: 2>, scalar_prefetch = 0 : i64, scratch_operands = 0 : i64, tpu.core_type = #tpu.core_type<tc>, window_params = [{transform_indices = @transform_0, window_bounds = array<i64: 64>}, {transform_indices = @transform_1, window_bounds = array<i64: 6>}, {transform_indices = @transform_2, window_bounds = array<i64: 1, 3, 9, 2, 128>}, {transform_indices = @transform_3, window_bounds = array<i64: 1, 3, 9, 2, 128>}, {transform_indices = @transform_4, window_bounds = array<i64: 1, 3, 2, 128>}, {pipeline_mode = #tpu.pipeline_mode<synchronous>, transform_indices = @transform_5, window_bounds = array<i64: 2, 2, 128>}, {transform_indices = @transform_6, window_bounds = array<i64: 1, 8, 128>}]} {
    %c0 = arith.constant 0 : index
    %c0_0 = arith.constant 0 : index
    %c0_1 = arith.constant 0 : index
    %0 = vector.load %arg6[%c0, %c0_0, %c0_1] : memref<2x2x128xf32, #tpu.memory_space<vmem>>, vector<1x2x128xf32>
    %1 = vector.shape_cast %0 : vector<1x2x128xf32> to vector<2x128xf32>
    %c1 = arith.constant 1 : index
    %c0_2 = arith.constant 0 : index
    %c0_3 = arith.constant 0 : index
    %2 = vector.load %arg6[%c1, %c0_2, %c0_3] : memref<2x2x128xf32, #tpu.memory_space<vmem>>, vector<1x2x128xf32>
    %3 = vector.shape_cast %2 : vector<1x2x128xf32> to vector<2x128xf32>
    %c32_i32 = arith.constant 32 : i32
    %4 = arith.muli %arg0, %c32_i32 : i32
    %c0_i32 = arith.constant 0 : i32
    %5 = arith.addi %4, %c0_i32 : i32
    %c0_i32_4 = arith.constant 0 : i32
    %6 = arith.addi %5, %c0_i32_4 : i32
    %7 = arith.index_cast %6 : i32 to index
    %8 = memref.load %arg1[%7] : memref<64xf32, #tpu.memory_space<smem>>
    %c1_i32 = arith.constant 1 : i32
    %9 = arith.addi %5, %c1_i32 : i32
    %10 = arith.index_cast %9 : i32 to index
    %11 = memref.load %arg1[%10] : memref<64xf32, #tpu.memory_space<smem>>
    %c2_i32 = arith.constant 2 : i32
    %12 = arith.addi %5, %c2_i32 : i32
    %13 = arith.index_cast %12 : i32 to index
    %14 = memref.load %arg1[%13] : memref<64xf32, #tpu.memory_space<smem>>
    %c3_i32 = arith.constant 3 : i32
    %15 = arith.addi %5, %c3_i32 : i32
    %16 = arith.index_cast %15 : i32 to index
    %17 = memref.load %arg1[%16] : memref<64xf32, #tpu.memory_space<smem>>
    %cst = arith.constant 5.000000e-01 : f32
    %18 = arith.mulf %cst, %14 : f32
    %19 = arith.subf %8, %18 : f32
    %cst_5 = arith.constant 5.000000e-01 : f32
    %20 = arith.mulf %cst_5, %14 : f32
    %21 = arith.addf %8, %20 : f32
    %cst_6 = arith.constant 5.000000e-01 : f32
    %22 = arith.mulf %cst_6, %17 : f32
    %23 = arith.subf %11, %22 : f32
    %cst_7 = arith.constant 5.000000e-01 : f32
    %24 = arith.mulf %cst_7, %17 : f32
    %25 = arith.addf %11, %24 : f32
    %26 = arith.mulf %14, %17 : f32
    %c4_i32 = arith.constant 4 : i32
    %27 = arith.addi %4, %c4_i32 : i32
    %c0_i32_8 = arith.constant 0 : i32
    %28 = arith.addi %27, %c0_i32_8 : i32
    %29 = arith.index_cast %28 : i32 to index
    %30 = memref.load %arg1[%29] : memref<64xf32, #tpu.memory_space<smem>>
    %c1_i32_9 = arith.constant 1 : i32
    %31 = arith.addi %27, %c1_i32_9 : i32
    %32 = arith.index_cast %31 : i32 to index
    %33 = memref.load %arg1[%32] : memref<64xf32, #tpu.memory_space<smem>>
    %c2_i32_10 = arith.constant 2 : i32
    %34 = arith.addi %27, %c2_i32_10 : i32
    %35 = arith.index_cast %34 : i32 to index
    %36 = memref.load %arg1[%35] : memref<64xf32, #tpu.memory_space<smem>>
    %c3_i32_11 = arith.constant 3 : i32
    %37 = arith.addi %27, %c3_i32_11 : i32
    %38 = arith.index_cast %37 : i32 to index
    %39 = memref.load %arg1[%38] : memref<64xf32, #tpu.memory_space<smem>>
    %cst_12 = arith.constant 5.000000e-01 : f32
    %40 = arith.mulf %cst_12, %36 : f32
    %41 = arith.subf %30, %40 : f32
    %cst_13 = arith.constant 5.000000e-01 : f32
    %42 = arith.mulf %cst_13, %36 : f32
    %43 = arith.addf %30, %42 : f32
    %cst_14 = arith.constant 5.000000e-01 : f32
    %44 = arith.mulf %cst_14, %39 : f32
    %45 = arith.subf %33, %44 : f32
    %cst_15 = arith.constant 5.000000e-01 : f32
    %46 = arith.mulf %cst_15, %39 : f32
    %47 = arith.addf %33, %46 : f32
    %48 = arith.mulf %36, %39 : f32
    %c8_i32 = arith.constant 8 : i32
    %49 = arith.addi %4, %c8_i32 : i32
    %c0_i32_16 = arith.constant 0 : i32
    %50 = arith.addi %49, %c0_i32_16 : i32
    %51 = arith.index_cast %50 : i32 to index
    %52 = memref.load %arg1[%51] : memref<64xf32, #tpu.memory_space<smem>>
    %c1_i32_17 = arith.constant 1 : i32
    %53 = arith.addi %49, %c1_i32_17 : i32
    %54 = arith.index_cast %53 : i32 to index
    %55 = memref.load %arg1[%54] : memref<64xf32, #tpu.memory_space<smem>>
    %c2_i32_18 = arith.constant 2 : i32
    %56 = arith.addi %49, %c2_i32_18 : i32
    %57 = arith.index_cast %56 : i32 to index
    %58 = memref.load %arg1[%57] : memref<64xf32, #tpu.memory_space<smem>>
    %c3_i32_19 = arith.constant 3 : i32
    %59 = arith.addi %49, %c3_i32_19 : i32
    %60 = arith.index_cast %59 : i32 to index
    %61 = memref.load %arg1[%60] : memref<64xf32, #tpu.memory_space<smem>>
    %cst_20 = arith.constant 5.000000e-01 : f32
    %62 = arith.mulf %cst_20, %58 : f32
    %63 = arith.subf %52, %62 : f32
    %cst_21 = arith.constant 5.000000e-01 : f32
    %64 = arith.mulf %cst_21, %58 : f32
    %65 = arith.addf %52, %64 : f32
    %cst_22 = arith.constant 5.000000e-01 : f32
    %66 = arith.mulf %cst_22, %61 : f32
    %67 = arith.subf %55, %66 : f32
    %cst_23 = arith.constant 5.000000e-01 : f32
    %68 = arith.mulf %cst_23, %61 : f32
    %69 = arith.addf %55, %68 : f32
    %70 = arith.mulf %58, %61 : f32
    %c12_i32 = arith.constant 12 : i32
    %71 = arith.addi %4, %c12_i32 : i32
    %c0_i32_24 = arith.constant 0 : i32
    %72 = arith.addi %71, %c0_i32_24 : i32
    %73 = arith.index_cast %72 : i32 to index
    %74 = memref.load %arg1[%73] : memref<64xf32, #tpu.memory_space<smem>>
    %c1_i32_25 = arith.constant 1 : i32
    %75 = arith.addi %71, %c1_i32_25 : i32
    %76 = arith.index_cast %75 : i32 to index
    %77 = memref.load %arg1[%76] : memref<64xf32, #tpu.memory_space<smem>>
    %c2_i32_26 = arith.constant 2 : i32
    %78 = arith.addi %71, %c2_i32_26 : i32
    %79 = arith.index_cast %78 : i32 to index
    %80 = memref.load %arg1[%79] : memref<64xf32, #tpu.memory_space<smem>>
    %c3_i32_27 = arith.constant 3 : i32
    %81 = arith.addi %71, %c3_i32_27 : i32
    %82 = arith.index_cast %81 : i32 to index
    %83 = memref.load %arg1[%82] : memref<64xf32, #tpu.memory_space<smem>>
    %cst_28 = arith.constant 5.000000e-01 : f32
    %84 = arith.mulf %cst_28, %80 : f32
    %85 = arith.subf %74, %84 : f32
    %cst_29 = arith.constant 5.000000e-01 : f32
    %86 = arith.mulf %cst_29, %80 : f32
    %87 = arith.addf %74, %86 : f32
    %cst_30 = arith.constant 5.000000e-01 : f32
    %88 = arith.mulf %cst_30, %83 : f32
    %89 = arith.subf %77, %88 : f32
    %cst_31 = arith.constant 5.000000e-01 : f32
    %90 = arith.mulf %cst_31, %83 : f32
    %91 = arith.addf %77, %90 : f32
    %92 = arith.mulf %80, %83 : f32
    %c16_i32 = arith.constant 16 : i32
    %93 = arith.addi %4, %c16_i32 : i32
    %c0_i32_32 = arith.constant 0 : i32
    %94 = arith.addi %93, %c0_i32_32 : i32
    %95 = arith.index_cast %94 : i32 to index
    %96 = memref.load %arg1[%95] : memref<64xf32, #tpu.memory_space<smem>>
    %c1_i32_33 = arith.constant 1 : i32
    %97 = arith.addi %93, %c1_i32_33 : i32
    %98 = arith.index_cast %97 : i32 to index
    %99 = memref.load %arg1[%98] : memref<64xf32, #tpu.memory_space<smem>>
    %c2_i32_34 = arith.constant 2 : i32
    %100 = arith.addi %93, %c2_i32_34 : i32
    %101 = arith.index_cast %100 : i32 to index
    %102 = memref.load %arg1[%101] : memref<64xf32, #tpu.memory_space<smem>>
    %c3_i32_35 = arith.constant 3 : i32
    %103 = arith.addi %93, %c3_i32_35 : i32
    %104 = arith.index_cast %103 : i32 to index
    %105 = memref.load %arg1[%104] : memref<64xf32, #tpu.memory_space<smem>>
    %cst_36 = arith.constant 5.000000e-01 : f32
    %106 = arith.mulf %cst_36, %102 : f32
    %107 = arith.subf %96, %106 : f32
    %cst_37 = arith.constant 5.000000e-01 : f32
    %108 = arith.mulf %cst_37, %102 : f32
    %109 = arith.addf %96, %108 : f32
    %cst_38 = arith.constant 5.000000e-01 : f32
    %110 = arith.mulf %cst_38, %105 : f32
    %111 = arith.subf %99, %110 : f32
    %cst_39 = arith.constant 5.000000e-01 : f32
    %112 = arith.mulf %cst_39, %105 : f32
    %113 = arith.addf %99, %112 : f32
    %114 = arith.mulf %102, %105 : f32
    %c20_i32 = arith.constant 20 : i32
    %115 = arith.addi %4, %c20_i32 : i32
    %c0_i32_40 = arith.constant 0 : i32
    %116 = arith.addi %115, %c0_i32_40 : i32
    %117 = arith.index_cast %116 : i32 to index
    %118 = memref.load %arg1[%117] : memref<64xf32, #tpu.memory_space<smem>>
    %c1_i32_41 = arith.constant 1 : i32
    %119 = arith.addi %115, %c1_i32_41 : i32
    %120 = arith.index_cast %119 : i32 to index
    %121 = memref.load %arg1[%120] : memref<64xf32, #tpu.memory_space<smem>>
    %c2_i32_42 = arith.constant 2 : i32
    %122 = arith.addi %115, %c2_i32_42 : i32
    %123 = arith.index_cast %122 : i32 to index
    %124 = memref.load %arg1[%123] : memref<64xf32, #tpu.memory_space<smem>>
    %c3_i32_43 = arith.constant 3 : i32
    %125 = arith.addi %115, %c3_i32_43 : i32
    %126 = arith.index_cast %125 : i32 to index
    %127 = memref.load %arg1[%126] : memref<64xf32, #tpu.memory_space<smem>>
    %cst_44 = arith.constant 5.000000e-01 : f32
    %128 = arith.mulf %cst_44, %124 : f32
    %129 = arith.subf %118, %128 : f32
    %cst_45 = arith.constant 5.000000e-01 : f32
    %130 = arith.mulf %cst_45, %124 : f32
    %131 = arith.addf %118, %130 : f32
    %cst_46 = arith.constant 5.000000e-01 : f32
    %132 = arith.mulf %cst_46, %127 : f32
    %133 = arith.subf %121, %132 : f32
    %cst_47 = arith.constant 5.000000e-01 : f32
    %134 = arith.mulf %cst_47, %127 : f32
    %135 = arith.addf %121, %134 : f32
    %136 = arith.mulf %124, %127 : f32
    %c24_i32 = arith.constant 24 : i32
    %137 = arith.addi %4, %c24_i32 : i32
    %c0_i32_48 = arith.constant 0 : i32
    %138 = arith.addi %137, %c0_i32_48 : i32
    %139 = arith.index_cast %138 : i32 to index
    %140 = memref.load %arg1[%139] : memref<64xf32, #tpu.memory_space<smem>>
    %c1_i32_49 = arith.constant 1 : i32
    %141 = arith.addi %137, %c1_i32_49 : i32
    %142 = arith.index_cast %141 : i32 to index
    %143 = memref.load %arg1[%142] : memref<64xf32, #tpu.memory_space<smem>>
    %c2_i32_50 = arith.constant 2 : i32
    %144 = arith.addi %137, %c2_i32_50 : i32
    %145 = arith.index_cast %144 : i32 to index
    %146 = memref.load %arg1[%145] : memref<64xf32, #tpu.memory_space<smem>>
    %c3_i32_51 = arith.constant 3 : i32
    %147 = arith.addi %137, %c3_i32_51 : i32
    %148 = arith.index_cast %147 : i32 to index
    %149 = memref.load %arg1[%148] : memref<64xf32, #tpu.memory_space<smem>>
    %cst_52 = arith.constant 5.000000e-01 : f32
    %150 = arith.mulf %cst_52, %146 : f32
    %151 = arith.subf %140, %150 : f32
    %cst_53 = arith.constant 5.000000e-01 : f32
    %152 = arith.mulf %cst_53, %146 : f32
    %153 = arith.addf %140, %152 : f32
    %cst_54 = arith.constant 5.000000e-01 : f32
    %154 = arith.mulf %cst_54, %149 : f32
    %155 = arith.subf %143, %154 : f32
    %cst_55 = arith.constant 5.000000e-01 : f32
    %156 = arith.mulf %cst_55, %149 : f32
    %157 = arith.addf %143, %156 : f32
    %158 = arith.mulf %146, %149 : f32
    %c28_i32 = arith.constant 28 : i32
    %159 = arith.addi %4, %c28_i32 : i32
    %c0_i32_56 = arith.constant 0 : i32
    %160 = arith.addi %159, %c0_i32_56 : i32
    %161 = arith.index_cast %160 : i32 to index
    %162 = memref.load %arg1[%161] : memref<64xf32, #tpu.memory_space<smem>>
    %c1_i32_57 = arith.constant 1 : i32
    %163 = arith.addi %159, %c1_i32_57 : i32
    %164 = arith.index_cast %163 : i32 to index
    %165 = memref.load %arg1[%164] : memref<64xf32, #tpu.memory_space<smem>>
    %c2_i32_58 = arith.constant 2 : i32
    %166 = arith.addi %159, %c2_i32_58 : i32
    %167 = arith.index_cast %166 : i32 to index
    %168 = memref.load %arg1[%167] : memref<64xf32, #tpu.memory_space<smem>>
    %c3_i32_59 = arith.constant 3 : i32
    %169 = arith.addi %159, %c3_i32_59 : i32
    %170 = arith.index_cast %169 : i32 to index
    %171 = memref.load %arg1[%170] : memref<64xf32, #tpu.memory_space<smem>>
    %cst_60 = arith.constant 5.000000e-01 : f32
    %172 = arith.mulf %cst_60, %168 : f32
    %173 = arith.subf %162, %172 : f32
    %cst_61 = arith.constant 5.000000e-01 : f32
    %174 = arith.mulf %cst_61, %168 : f32
    %175 = arith.addf %162, %174 : f32
    %cst_62 = arith.constant 5.000000e-01 : f32
    %176 = arith.mulf %cst_62, %171 : f32
    %177 = arith.subf %165, %176 : f32
    %cst_63 = arith.constant 5.000000e-01 : f32
    %178 = arith.mulf %cst_63, %171 : f32
    %179 = arith.addf %165, %178 : f32
    %180 = arith.mulf %168, %171 : f32
    %c0_64 = arith.constant 0 : index
    %181 = memref.load %arg2[%c0_64] : memref<6xf32, #tpu.memory_space<smem>>
    %c1_65 = arith.constant 1 : index
    %182 = memref.load %arg2[%c1_65] : memref<6xf32, #tpu.memory_space<smem>>
    %c0_66 = arith.constant 0 : index
    %c0_67 = arith.constant 0 : index
    %c0_68 = arith.constant 0 : index
    %c0_69 = arith.constant 0 : index
    %c0_70 = arith.constant 0 : index
    %183 = vector.load %arg3[%c0_66, %c0_67, %c0_68, %c0_69, %c0_70] : memref<1x3x9x2x128xf32, #tpu.memory_space<vmem>>, vector<1x1x1x2x128xf32>
    %184 = vector.shape_cast %183 : vector<1x1x1x2x128xf32> to vector<2x128xf32>
    %cst_71 = arith.constant 0.000000e+00 : f32
    %185 = vector.broadcast %cst_71 : f32 to vector<2x128xf32>
    %186 = arith.subf %185, %184 : vector<2x128xf32>
    %187 = math.exp %186 : vector<2x128xf32>
    %cst_72 = arith.constant 1.000000e+00 : f32
    %188 = vector.broadcast %cst_72 : f32 to vector<2x128xf32>
    %189 = arith.addf %188, %187 : vector<2x128xf32>
    %190 = tpu.reciprocal %189 {approx = true} : vector<2x128xf32> -> vector<2x128xf32>
    %c0_73 = arith.constant 0 : index
    %c0_74 = arith.constant 0 : index
    %c1_75 = arith.constant 1 : index
    %c0_76 = arith.constant 0 : index
    %c0_77 = arith.constant 0 : index
    %191 = vector.load %arg3[%c0_73, %c0_74, %c1_75, %c0_76, %c0_77] : memref<1x3x9x2x128xf32, #tpu.memory_space<vmem>>, vector<1x1x1x2x128xf32>
    %192 = vector.shape_cast %191 : vector<1x1x1x2x128xf32> to vector<2x128xf32>
    %cst_78 = arith.constant 0.000000e+00 : f32
    %193 = vector.broadcast %cst_78 : f32 to vector<2x128xf32>
    %194 = arith.subf %193, %192 : vector<2x128xf32>
    %195 = math.exp %194 : vector<2x128xf32>
    %cst_79 = arith.constant 1.000000e+00 : f32
    %196 = vector.broadcast %cst_79 : f32 to vector<2x128xf32>
    %197 = arith.addf %196, %195 : vector<2x128xf32>
    %198 = tpu.reciprocal %197 {approx = true} : vector<2x128xf32> -> vector<2x128xf32>
    %c0_80 = arith.constant 0 : index
    %c0_81 = arith.constant 0 : index
    %c2 = arith.constant 2 : index
    %c0_82 = arith.constant 0 : index
    %c0_83 = arith.constant 0 : index
    %199 = vector.load %arg3[%c0_80, %c0_81, %c2, %c0_82, %c0_83] : memref<1x3x9x2x128xf32, #tpu.memory_space<vmem>>, vector<1x1x1x2x128xf32>
    %200 = vector.shape_cast %199 : vector<1x1x1x2x128xf32> to vector<2x128xf32>
    %201 = math.exp %200 : vector<2x128xf32>
    %202 = vector.broadcast %181 : f32 to vector<2x128xf32>
    %203 = arith.mulf %201, %202 : vector<2x128xf32>
    %c0_84 = arith.constant 0 : index
    %c0_85 = arith.constant 0 : index
    %c3 = arith.constant 3 : index
    %c0_86 = arith.constant 0 : index
    %c0_87 = arith.constant 0 : index
    %204 = vector.load %arg3[%c0_84, %c0_85, %c3, %c0_86, %c0_87] : memref<1x3x9x2x128xf32, #tpu.memory_space<vmem>>, vector<1x1x1x2x128xf32>
    %205 = vector.shape_cast %204 : vector<1x1x1x2x128xf32> to vector<2x128xf32>
    %206 = math.exp %205 : vector<2x128xf32>
    %207 = vector.broadcast %182 : f32 to vector<2x128xf32>
    %208 = arith.mulf %206, %207 : vector<2x128xf32>
    %c0_88 = arith.constant 0 : index
    %c0_89 = arith.constant 0 : index
    %c4 = arith.constant 4 : index
    %c0_90 = arith.constant 0 : index
    %c0_91 = arith.constant 0 : index
    %209 = vector.load %arg3[%c0_88, %c0_89, %c4, %c0_90, %c0_91] : memref<1x3x9x2x128xf32, #tpu.memory_space<vmem>>, vector<1x1x1x2x128xf32>
    %210 = vector.shape_cast %209 : vector<1x1x1x2x128xf32> to vector<2x128xf32>
    %c0_92 = arith.constant 0 : index
    %c0_93 = arith.constant 0 : index
    %c5 = arith.constant 5 : index
    %c0_94 = arith.constant 0 : index
    %c0_95 = arith.constant 0 : index
    %211 = vector.load %arg3[%c0_92, %c0_93, %c5, %c0_94, %c0_95] : memref<1x3x9x2x128xf32, #tpu.memory_space<vmem>>, vector<1x1x4x2x128xf32>
    %212 = vector.shape_cast %211 : vector<1x1x4x2x128xf32> to vector<4x2x128xf32>
    %213 = arith.addf %190, %1 : vector<2x128xf32>
    %214 = arith.addf %198, %3 : vector<2x128xf32>
    %cst_96 = arith.constant 5.000000e-01 : f32
    %215 = vector.broadcast %cst_96 : f32 to vector<2x128xf32>
    %216 = arith.mulf %215, %203 : vector<2x128xf32>
    %217 = arith.subf %213, %216 : vector<2x128xf32>
    %cst_97 = arith.constant 5.000000e-01 : f32
    %218 = vector.broadcast %cst_97 : f32 to vector<2x128xf32>
    %219 = arith.mulf %218, %203 : vector<2x128xf32>
    %220 = arith.addf %213, %219 : vector<2x128xf32>
    %cst_98 = arith.constant 5.000000e-01 : f32
    %221 = vector.broadcast %cst_98 : f32 to vector<2x128xf32>
    %222 = arith.mulf %221, %208 : vector<2x128xf32>
    %223 = arith.subf %214, %222 : vector<2x128xf32>
    %cst_99 = arith.constant 5.000000e-01 : f32
    %224 = vector.broadcast %cst_99 : f32 to vector<2x128xf32>
    %225 = arith.mulf %224, %208 : vector<2x128xf32>
    %226 = arith.addf %214, %225 : vector<2x128xf32>
    %227 = arith.mulf %203, %208 : vector<2x128xf32>
    %false = arith.constant false
    %228 = vector.broadcast %false : i1 to vector<2x128xi1>
    %229 = vector.broadcast %21 : f32 to vector<2x128xf32>
    %230 = arith.minimumf %220, %229 : vector<2x128xf32>
    %231 = vector.broadcast %19 : f32 to vector<2x128xf32>
    %232 = arith.maximumf %217, %231 : vector<2x128xf32>
    %233 = arith.subf %230, %232 : vector<2x128xf32>
    %cst_100 = arith.constant 0.000000e+00 : f32
    %234 = vector.broadcast %cst_100 : f32 to vector<2x128xf32>
    %235 = arith.maximumf %233, %234 : vector<2x128xf32>
    %236 = vector.broadcast %25 : f32 to vector<2x128xf32>
    %237 = arith.minimumf %226, %236 : vector<2x128xf32>
    %238 = vector.broadcast %23 : f32 to vector<2x128xf32>
    %239 = arith.maximumf %223, %238 : vector<2x128xf32>
    %240 = arith.subf %237, %239 : vector<2x128xf32>
    %cst_101 = arith.constant 0.000000e+00 : f32
    %241 = vector.broadcast %cst_101 : f32 to vector<2x128xf32>
    %242 = arith.maximumf %240, %241 : vector<2x128xf32>
    %243 = arith.mulf %235, %242 : vector<2x128xf32>
    %244 = vector.broadcast %26 : f32 to vector<2x128xf32>
    %245 = arith.addf %244, %227 : vector<2x128xf32>
    %246 = arith.subf %245, %243 : vector<2x128xf32>
    %cst_102 = arith.constant 5.000000e-01 : f32
    %247 = vector.broadcast %cst_102 : f32 to vector<2x128xf32>
    %248 = arith.mulf %247, %246 : vector<2x128xf32>
    %249 = arith.cmpf ogt, %243, %248 : vector<2x128xf32>
    %250 = arith.ori %228, %249 : vector<2x128xi1>
    %251 = vector.broadcast %43 : f32 to vector<2x128xf32>
    %252 = arith.minimumf %220, %251 : vector<2x128xf32>
    %253 = vector.broadcast %41 : f32 to vector<2x128xf32>
    %254 = arith.maximumf %217, %253 : vector<2x128xf32>
    %255 = arith.subf %252, %254 : vector<2x128xf32>
    %cst_103 = arith.constant 0.000000e+00 : f32
    %256 = vector.broadcast %cst_103 : f32 to vector<2x128xf32>
    %257 = arith.maximumf %255, %256 : vector<2x128xf32>
    %258 = vector.broadcast %47 : f32 to vector<2x128xf32>
    %259 = arith.minimumf %226, %258 : vector<2x128xf32>
    %260 = vector.broadcast %45 : f32 to vector<2x128xf32>
    %261 = arith.maximumf %223, %260 : vector<2x128xf32>
    %262 = arith.subf %259, %261 : vector<2x128xf32>
    %cst_104 = arith.constant 0.000000e+00 : f32
    %263 = vector.broadcast %cst_104 : f32 to vector<2x128xf32>
    %264 = arith.maximumf %262, %263 : vector<2x128xf32>
    %265 = arith.mulf %257, %264 : vector<2x128xf32>
    %266 = vector.broadcast %48 : f32 to vector<2x128xf32>
    %267 = arith.addf %266, %227 : vector<2x128xf32>
    %268 = arith.subf %267, %265 : vector<2x128xf32>
    %cst_105 = arith.constant 5.000000e-01 : f32
    %269 = vector.broadcast %cst_105 : f32 to vector<2x128xf32>
    %270 = arith.mulf %269, %268 : vector<2x128xf32>
    %271 = arith.cmpf ogt, %265, %270 : vector<2x128xf32>
    %272 = arith.ori %250, %271 : vector<2x128xi1>
    %273 = vector.broadcast %65 : f32 to vector<2x128xf32>
    %274 = arith.minimumf %220, %273 : vector<2x128xf32>
    %275 = vector.broadcast %63 : f32 to vector<2x128xf32>
    %276 = arith.maximumf %217, %275 : vector<2x128xf32>
    %277 = arith.subf %274, %276 : vector<2x128xf32>
    %cst_106 = arith.constant 0.000000e+00 : f32
    %278 = vector.broadcast %cst_106 : f32 to vector<2x128xf32>
    %279 = arith.maximumf %277, %278 : vector<2x128xf32>
    %280 = vector.broadcast %69 : f32 to vector<2x128xf32>
    %281 = arith.minimumf %226, %280 : vector<2x128xf32>
    %282 = vector.broadcast %67 : f32 to vector<2x128xf32>
    %283 = arith.maximumf %223, %282 : vector<2x128xf32>
    %284 = arith.subf %281, %283 : vector<2x128xf32>
    %cst_107 = arith.constant 0.000000e+00 : f32
    %285 = vector.broadcast %cst_107 : f32 to vector<2x128xf32>
    %286 = arith.maximumf %284, %285 : vector<2x128xf32>
    %287 = arith.mulf %279, %286 : vector<2x128xf32>
    %288 = vector.broadcast %70 : f32 to vector<2x128xf32>
    %289 = arith.addf %288, %227 : vector<2x128xf32>
    %290 = arith.subf %289, %287 : vector<2x128xf32>
    %cst_108 = arith.constant 5.000000e-01 : f32
    %291 = vector.broadcast %cst_108 : f32 to vector<2x128xf32>
    %292 = arith.mulf %291, %290 : vector<2x128xf32>
    %293 = arith.cmpf ogt, %287, %292 : vector<2x128xf32>
    %294 = arith.ori %272, %293 : vector<2x128xi1>
    %295 = vector.broadcast %87 : f32 to vector<2x128xf32>
    %296 = arith.minimumf %220, %295 : vector<2x128xf32>
    %297 = vector.broadcast %85 : f32 to vector<2x128xf32>
    %298 = arith.maximumf %217, %297 : vector<2x128xf32>
    %299 = arith.subf %296, %298 : vector<2x128xf32>
    %cst_109 = arith.constant 0.000000e+00 : f32
    %300 = vector.broadcast %cst_109 : f32 to vector<2x128xf32>
    %301 = arith.maximumf %299, %300 : vector<2x128xf32>
    %302 = vector.broadcast %91 : f32 to vector<2x128xf32>
    %303 = arith.minimumf %226, %302 : vector<2x128xf32>
    %304 = vector.broadcast %89 : f32 to vector<2x128xf32>
    %305 = arith.maximumf %223, %304 : vector<2x128xf32>
    %306 = arith.subf %303, %305 : vector<2x128xf32>
    %cst_110 = arith.constant 0.000000e+00 : f32
    %307 = vector.broadcast %cst_110 : f32 to vector<2x128xf32>
    %308 = arith.maximumf %306, %307 : vector<2x128xf32>
    %309 = arith.mulf %301, %308 : vector<2x128xf32>
    %310 = vector.broadcast %92 : f32 to vector<2x128xf32>
    %311 = arith.addf %310, %227 : vector<2x128xf32>
    %312 = arith.subf %311, %309 : vector<2x128xf32>
    %cst_111 = arith.constant 5.000000e-01 : f32
    %313 = vector.broadcast %cst_111 : f32 to vector<2x128xf32>
    %314 = arith.mulf %313, %312 : vector<2x128xf32>
    %315 = arith.cmpf ogt, %309, %314 : vector<2x128xf32>
    %316 = arith.ori %294, %315 : vector<2x128xi1>
    %317 = vector.broadcast %109 : f32 to vector<2x128xf32>
    %318 = arith.minimumf %220, %317 : vector<2x128xf32>
    %319 = vector.broadcast %107 : f32 to vector<2x128xf32>
    %320 = arith.maximumf %217, %319 : vector<2x128xf32>
    %321 = arith.subf %318, %320 : vector<2x128xf32>
    %cst_112 = arith.constant 0.000000e+00 : f32
    %322 = vector.broadcast %cst_112 : f32 to vector<2x128xf32>
    %323 = arith.maximumf %321, %322 : vector<2x128xf32>
    %324 = vector.broadcast %113 : f32 to vector<2x128xf32>
    %325 = arith.minimumf %226, %324 : vector<2x128xf32>
    %326 = vector.broadcast %111 : f32 to vector<2x128xf32>
    %327 = arith.maximumf %223, %326 : vector<2x128xf32>
    %328 = arith.subf %325, %327 : vector<2x128xf32>
    %cst_113 = arith.constant 0.000000e+00 : f32
    %329 = vector.broadcast %cst_113 : f32 to vector<2x128xf32>
    %330 = arith.maximumf %328, %329 : vector<2x128xf32>
    %331 = arith.mulf %323, %330 : vector<2x128xf32>
    %332 = vector.broadcast %114 : f32 to vector<2x128xf32>
    %333 = arith.addf %332, %227 : vector<2x128xf32>
    %334 = arith.subf %333, %331 : vector<2x128xf32>
    %cst_114 = arith.constant 5.000000e-01 : f32
    %335 = vector.broadcast %cst_114 : f32 to vector<2x128xf32>
    %336 = arith.mulf %335, %334 : vector<2x128xf32>
    %337 = arith.cmpf ogt, %331, %336 : vector<2x128xf32>
    %338 = arith.ori %316, %337 : vector<2x128xi1>
    %339 = vector.broadcast %131 : f32 to vector<2x128xf32>
    %340 = arith.minimumf %220, %339 : vector<2x128xf32>
    %341 = vector.broadcast %129 : f32 to vector<2x128xf32>
    %342 = arith.maximumf %217, %341 : vector<2x128xf32>
    %343 = arith.subf %340, %342 : vector<2x128xf32>
    %cst_115 = arith.constant 0.000000e+00 : f32
    %344 = vector.broadcast %cst_115 : f32 to vector<2x128xf32>
    %345 = arith.maximumf %343, %344 : vector<2x128xf32>
    %346 = vector.broadcast %135 : f32 to vector<2x128xf32>
    %347 = arith.minimumf %226, %346 : vector<2x128xf32>
    %348 = vector.broadcast %133 : f32 to vector<2x128xf32>
    %349 = arith.maximumf %223, %348 : vector<2x128xf32>
    %350 = arith.subf %347, %349 : vector<2x128xf32>
    %cst_116 = arith.constant 0.000000e+00 : f32
    %351 = vector.broadcast %cst_116 : f32 to vector<2x128xf32>
    %352 = arith.maximumf %350, %351 : vector<2x128xf32>
    %353 = arith.mulf %345, %352 : vector<2x128xf32>
    %354 = vector.broadcast %136 : f32 to vector<2x128xf32>
    %355 = arith.addf %354, %227 : vector<2x128xf32>
    %356 = arith.subf %355, %353 : vector<2x128xf32>
    %cst_117 = arith.constant 5.000000e-01 : f32
    %357 = vector.broadcast %cst_117 : f32 to vector<2x128xf32>
    %358 = arith.mulf %357, %356 : vector<2x128xf32>
    %359 = arith.cmpf ogt, %353, %358 : vector<2x128xf32>
    %360 = arith.ori %338, %359 : vector<2x128xi1>
    %361 = vector.broadcast %153 : f32 to vector<2x128xf32>
    %362 = arith.minimumf %220, %361 : vector<2x128xf32>
    %363 = vector.broadcast %151 : f32 to vector<2x128xf32>
    %364 = arith.maximumf %217, %363 : vector<2x128xf32>
    %365 = arith.subf %362, %364 : vector<2x128xf32>
    %cst_118 = arith.constant 0.000000e+00 : f32
    %366 = vector.broadcast %cst_118 : f32 to vector<2x128xf32>
    %367 = arith.maximumf %365, %366 : vector<2x128xf32>
    %368 = vector.broadcast %157 : f32 to vector<2x128xf32>
    %369 = arith.minimumf %226, %368 : vector<2x128xf32>
    %370 = vector.broadcast %155 : f32 to vector<2x128xf32>
    %371 = arith.maximumf %223, %370 : vector<2x128xf32>
    %372 = arith.subf %369, %371 : vector<2x128xf32>
    %cst_119 = arith.constant 0.000000e+00 : f32
    %373 = vector.broadcast %cst_119 : f32 to vector<2x128xf32>
    %374 = arith.maximumf %372, %373 : vector<2x128xf32>
    %375 = arith.mulf %367, %374 : vector<2x128xf32>
    %376 = vector.broadcast %158 : f32 to vector<2x128xf32>
    %377 = arith.addf %376, %227 : vector<2x128xf32>
    %378 = arith.subf %377, %375 : vector<2x128xf32>
    %cst_120 = arith.constant 5.000000e-01 : f32
    %379 = vector.broadcast %cst_120 : f32 to vector<2x128xf32>
    %380 = arith.mulf %379, %378 : vector<2x128xf32>
    %381 = arith.cmpf ogt, %375, %380 : vector<2x128xf32>
    %382 = arith.ori %360, %381 : vector<2x128xi1>
    %383 = vector.broadcast %175 : f32 to vector<2x128xf32>
    %384 = arith.minimumf %220, %383 : vector<2x128xf32>
    %385 = vector.broadcast %173 : f32 to vector<2x128xf32>
    %386 = arith.maximumf %217, %385 : vector<2x128xf32>
    %387 = arith.subf %384, %386 : vector<2x128xf32>
    %cst_121 = arith.constant 0.000000e+00 : f32
    %388 = vector.broadcast %cst_121 : f32 to vector<2x128xf32>
    %389 = arith.maximumf %387, %388 : vector<2x128xf32>
    %390 = vector.broadcast %179 : f32 to vector<2x128xf32>
    %391 = arith.minimumf %226, %390 : vector<2x128xf32>
    %392 = vector.broadcast %177 : f32 to vector<2x128xf32>
    %393 = arith.maximumf %223, %392 : vector<2x128xf32>
    %394 = arith.subf %391, %393 : vector<2x128xf32>
    %cst_122 = arith.constant 0.000000e+00 : f32
    %395 = vector.broadcast %cst_122 : f32 to vector<2x128xf32>
    %396 = arith.maximumf %394, %395 : vector<2x128xf32>
    %397 = arith.mulf %389, %396 : vector<2x128xf32>
    %398 = vector.broadcast %180 : f32 to vector<2x128xf32>
    %399 = arith.addf %398, %227 : vector<2x128xf32>
    %400 = arith.subf %399, %397 : vector<2x128xf32>
    %cst_123 = arith.constant 5.000000e-01 : f32
    %401 = vector.broadcast %cst_123 : f32 to vector<2x128xf32>
    %402 = arith.mulf %401, %400 : vector<2x128xf32>
    %403 = arith.cmpf ogt, %397, %402 : vector<2x128xf32>
    %404 = arith.ori %382, %403 : vector<2x128xi1>
    %c0_124 = arith.constant 0 : index
    %c0_125 = arith.constant 0 : index
    %c0_126 = arith.constant 0 : index
    %c0_127 = arith.constant 0 : index
    %405 = vector.load %arg5[%c0_124, %c0_125, %c0_126, %c0_127] : memref<1x3x2x128xf32, #tpu.memory_space<vmem>>, vector<1x1x2x128xf32>
    %406 = vector.shape_cast %405 : vector<1x1x2x128xf32> to vector<2x128xf32>
    %cst_128 = arith.constant 0.000000e+00 : f32
    %407 = vector.broadcast %cst_128 : f32 to vector<2x128xf32>
    %408 = arith.select %404, %407, %406 : vector<2x128xi1>, vector<2x128xf32>
    %c0_129 = arith.constant 0 : index
    %c0_130 = arith.constant 0 : index
    %c0_131 = arith.constant 0 : index
    %c0_132 = arith.constant 0 : index
    %c0_133 = arith.constant 0 : index
    %409 = vector.load %arg4[%c0_129, %c0_130, %c0_131, %c0_132, %c0_133] : memref<1x3x9x2x128xf32, #tpu.memory_space<vmem>>, vector<1x1x1x2x128xf32>
    %410 = vector.shape_cast %409 : vector<1x1x1x2x128xf32> to vector<2x128xf32>
    %c0_134 = arith.constant 0 : index
    %c0_135 = arith.constant 0 : index
    %c1_136 = arith.constant 1 : index
    %c0_137 = arith.constant 0 : index
    %c0_138 = arith.constant 0 : index
    %411 = vector.load %arg4[%c0_134, %c0_135, %c1_136, %c0_137, %c0_138] : memref<1x3x9x2x128xf32, #tpu.memory_space<vmem>>, vector<1x1x1x2x128xf32>
    %412 = vector.shape_cast %411 : vector<1x1x1x2x128xf32> to vector<2x128xf32>
    %c0_139 = arith.constant 0 : index
    %c0_140 = arith.constant 0 : index
    %c2_141 = arith.constant 2 : index
    %c0_142 = arith.constant 0 : index
    %c0_143 = arith.constant 0 : index
    %413 = vector.load %arg4[%c0_139, %c0_140, %c2_141, %c0_142, %c0_143] : memref<1x3x9x2x128xf32, #tpu.memory_space<vmem>>, vector<1x1x1x2x128xf32>
    %414 = vector.shape_cast %413 : vector<1x1x1x2x128xf32> to vector<2x128xf32>
    %c0_144 = arith.constant 0 : index
    %c0_145 = arith.constant 0 : index
    %c3_146 = arith.constant 3 : index
    %c0_147 = arith.constant 0 : index
    %c0_148 = arith.constant 0 : index
    %415 = vector.load %arg4[%c0_144, %c0_145, %c3_146, %c0_147, %c0_148] : memref<1x3x9x2x128xf32, #tpu.memory_space<vmem>>, vector<1x1x1x2x128xf32>
    %416 = vector.shape_cast %415 : vector<1x1x1x2x128xf32> to vector<2x128xf32>
    %c0_149 = arith.constant 0 : index
    %c0_150 = arith.constant 0 : index
    %c4_151 = arith.constant 4 : index
    %c0_152 = arith.constant 0 : index
    %c0_153 = arith.constant 0 : index
    %417 = vector.load %arg4[%c0_149, %c0_150, %c4_151, %c0_152, %c0_153] : memref<1x3x9x2x128xf32, #tpu.memory_space<vmem>>, vector<1x1x1x2x128xf32>
    %418 = vector.shape_cast %417 : vector<1x1x1x2x128xf32> to vector<2x128xf32>
    %cst_154 = arith.constant 1.000000e+00 : f32
    %419 = vector.broadcast %cst_154 : f32 to vector<2x128xf32>
    %420 = arith.cmpf oeq, %418, %419 : vector<2x128xf32>
    %421 = arith.extui %420 : vector<2x128xi1> to vector<2x128xi32>
    %422 = arith.sitofp %421 : vector<2x128xi32> to vector<2x128xf32>
    %c0_155 = arith.constant 0 : index
    %c0_156 = arith.constant 0 : index
    %c5_157 = arith.constant 5 : index
    %c0_158 = arith.constant 0 : index
    %c0_159 = arith.constant 0 : index
    %423 = vector.load %arg4[%c0_155, %c0_156, %c5_157, %c0_158, %c0_159] : memref<1x3x9x2x128xf32, #tpu.memory_space<vmem>>, vector<1x1x4x2x128xf32>
    %424 = vector.shape_cast %423 : vector<1x1x4x2x128xf32> to vector<4x2x128xf32>
    %425 = vector.shape_cast %422 : vector<2x128xf32> to vector<1x2x128xf32>
    %cst_160 = arith.constant dense<0.000000e+00> : vector<1xf32>
    %426 = vector.multi_reduction <add>, %425, %cst_160 [1, 2] : vector<1x2x128xf32> to vector<1xf32>
    %427 = vector.shape_cast %426 : vector<1xf32> to vector<1x1x1xf32>
    %428 = vector.extract %427[0, 0, 0] : f32 from vector<1x1x1xf32>
    %cst_161 = arith.constant 0.000000e+00 : f32
    %429 = arith.addf %cst_161, %428 : f32
    %cst_162 = arith.constant 5.000000e-01 : f32
    %430 = vector.broadcast %cst_162 : f32 to vector<2x128xf32>
    %431 = arith.mulf %430, %414 : vector<2x128xf32>
    %432 = arith.subf %410, %431 : vector<2x128xf32>
    %cst_163 = arith.constant 5.000000e-01 : f32
    %433 = vector.broadcast %cst_163 : f32 to vector<2x128xf32>
    %434 = arith.mulf %433, %414 : vector<2x128xf32>
    %435 = arith.addf %410, %434 : vector<2x128xf32>
    %cst_164 = arith.constant 5.000000e-01 : f32
    %436 = vector.broadcast %cst_164 : f32 to vector<2x128xf32>
    %437 = arith.mulf %436, %416 : vector<2x128xf32>
    %438 = arith.subf %412, %437 : vector<2x128xf32>
    %cst_165 = arith.constant 5.000000e-01 : f32
    %439 = vector.broadcast %cst_165 : f32 to vector<2x128xf32>
    %440 = arith.mulf %439, %416 : vector<2x128xf32>
    %441 = arith.addf %412, %440 : vector<2x128xf32>
    %442 = arith.minimumf %220, %435 : vector<2x128xf32>
    %443 = arith.maximumf %217, %432 : vector<2x128xf32>
    %444 = arith.subf %442, %443 : vector<2x128xf32>
    %cst_166 = arith.constant 0.000000e+00 : f32
    %445 = vector.broadcast %cst_166 : f32 to vector<2x128xf32>
    %446 = arith.maximumf %444, %445 : vector<2x128xf32>
    %447 = arith.minimumf %226, %441 : vector<2x128xf32>
    %448 = arith.maximumf %223, %438 : vector<2x128xf32>
    %449 = arith.subf %447, %448 : vector<2x128xf32>
    %cst_167 = arith.constant 0.000000e+00 : f32
    %450 = vector.broadcast %cst_167 : f32 to vector<2x128xf32>
    %451 = arith.maximumf %449, %450 : vector<2x128xf32>
    %452 = arith.mulf %446, %451 : vector<2x128xf32>
    %453 = arith.mulf %414, %416 : vector<2x128xf32>
    %454 = arith.addf %227, %453 : vector<2x128xf32>
    %455 = arith.subf %454, %452 : vector<2x128xf32>
    %456 = tpu.reciprocal %455 {approx = true} : vector<2x128xf32> -> vector<2x128xf32>
    %457 = arith.mulf %452, %456 : vector<2x128xf32>
    %458 = arith.maximumf %220, %435 : vector<2x128xf32>
    %459 = arith.minimumf %217, %432 : vector<2x128xf32>
    %460 = arith.subf %458, %459 : vector<2x128xf32>
    %cst_168 = arith.constant 0.000000e+00 : f32
    %461 = vector.broadcast %cst_168 : f32 to vector<2x128xf32>
    %462 = arith.maximumf %460, %461 : vector<2x128xf32>
    %463 = arith.maximumf %226, %441 : vector<2x128xf32>
    %464 = arith.minimumf %223, %438 : vector<2x128xf32>
    %465 = arith.subf %463, %464 : vector<2x128xf32>
    %cst_169 = arith.constant 0.000000e+00 : f32
    %466 = vector.broadcast %cst_169 : f32 to vector<2x128xf32>
    %467 = arith.maximumf %465, %466 : vector<2x128xf32>
    %468 = arith.mulf %462, %467 : vector<2x128xf32>
    %469 = arith.subf %468, %455 : vector<2x128xf32>
    %470 = tpu.reciprocal %468 {approx = true} : vector<2x128xf32> -> vector<2x128xf32>
    %471 = arith.mulf %469, %470 : vector<2x128xf32>
    %472 = arith.subf %457, %471 : vector<2x128xf32>
    %cst_170 = arith.constant 0.000000e+00 : f32
    %473 = vector.broadcast %cst_170 : f32 to vector<2x128xf32>
    %474 = arith.cmpf ogt, %422, %473 : vector<2x128xf32>
    %cst_171 = arith.constant 1.000000e+00 : f32
    %475 = vector.broadcast %cst_171 : f32 to vector<2x128xf32>
    %476 = arith.subf %475, %472 : vector<2x128xf32>
    %cst_172 = arith.constant 0.000000e+00 : f32
    %477 = vector.broadcast %cst_172 : f32 to vector<2x128xf32>
    %478 = arith.select %474, %476, %477 : vector<2x128xi1>, vector<2x128xf32>
    %479 = vector.shape_cast %478 : vector<2x128xf32> to vector<1x2x128xf32>
    %cst_173 = arith.constant dense<0.000000e+00> : vector<1xf32>
    %480 = vector.multi_reduction <add>, %479, %cst_173 [1, 2] : vector<1x2x128xf32> to vector<1xf32>
    %481 = vector.shape_cast %480 : vector<1xf32> to vector<1x1x1xf32>
    %482 = vector.extract %481[0, 0, 0] : f32 from vector<1x1x1xf32>
    %cst_174 = arith.constant 0.000000e+00 : f32
    %483 = arith.addf %cst_174, %482 : f32
    %cst_175 = arith.constant 0.000000e+00 : f32
    %484 = vector.broadcast %cst_175 : f32 to vector<4x2x128xf32>
    %485 = arith.maximumf %212, %484 : vector<4x2x128xf32>
    %486 = arith.mulf %212, %424 : vector<4x2x128xf32>
    %487 = arith.subf %485, %486 : vector<4x2x128xf32>
    %488 = math.absf %212 : vector<4x2x128xf32>
    %cst_176 = arith.constant 0.000000e+00 : f32
    %489 = vector.broadcast %cst_176 : f32 to vector<4x2x128xf32>
    %490 = arith.subf %489, %488 : vector<4x2x128xf32>
    %491 = math.exp %490 : vector<4x2x128xf32>
    %cst_177 = arith.constant 1.000000e+00 : f32
    %492 = vector.broadcast %cst_177 : f32 to vector<4x2x128xf32>
    %493 = arith.addf %492, %491 : vector<4x2x128xf32>
    %494 = math.log %493 : vector<4x2x128xf32>
    %495 = arith.addf %487, %494 : vector<4x2x128xf32>
    %496 = vector.shape_cast %422 : vector<2x128xf32> to vector<1x2x128xf32>
    %497 = vector.broadcast %496 : vector<1x2x128xf32> to vector<4x2x128xf32>
    %498 = arith.mulf %495, %497 : vector<4x2x128xf32>
    %499 = vector.shape_cast %498 : vector<4x2x128xf32> to vector<1x4x2x128xf32>
    %cst_178 = arith.constant dense<0.000000e+00> : vector<1xf32>
    %500 = vector.multi_reduction <add>, %499, %cst_178 [1, 2, 3] : vector<1x4x2x128xf32> to vector<1xf32>
    %501 = vector.shape_cast %500 : vector<1xf32> to vector<1x1x1x1xf32>
    %502 = vector.extract %501[0, 0, 0, 0] : f32 from vector<1x1x1x1xf32>
    %cst_179 = arith.constant 0.000000e+00 : f32
    %503 = arith.addf %cst_179, %502 : f32
    %cst_180 = arith.constant 0.000000e+00 : f32
    %504 = vector.broadcast %cst_180 : f32 to vector<2x128xf32>
    %505 = arith.maximumf %210, %504 : vector<2x128xf32>
    %506 = arith.mulf %210, %422 : vector<2x128xf32>
    %507 = arith.subf %505, %506 : vector<2x128xf32>
    %508 = math.absf %210 : vector<2x128xf32>
    %cst_181 = arith.constant 0.000000e+00 : f32
    %509 = vector.broadcast %cst_181 : f32 to vector<2x128xf32>
    %510 = arith.subf %509, %508 : vector<2x128xf32>
    %511 = math.exp %510 : vector<2x128xf32>
    %cst_182 = arith.constant 1.000000e+00 : f32
    %512 = vector.broadcast %cst_182 : f32 to vector<2x128xf32>
    %513 = arith.addf %512, %511 : vector<2x128xf32>
    %514 = math.log %513 : vector<2x128xf32>
    %515 = arith.addf %507, %514 : vector<2x128xf32>
    %cst_183 = arith.constant 0.000000e+00 : f32
    %516 = vector.broadcast %cst_183 : f32 to vector<2x128xf32>
    %517 = arith.cmpf ogt, %408, %516 : vector<2x128xf32>
    %cst_184 = arith.constant 0.000000e+00 : f32
    %518 = vector.broadcast %cst_184 : f32 to vector<2x128xf32>
    %519 = arith.cmpf ogt, %422, %518 : vector<2x128xf32>
    %520 = arith.ori %517, %519 : vector<2x128xi1>
    %cst_185 = arith.constant 1.000000e+00 : f32
    %cst_186 = arith.constant 0.000000e+00 : f32
    %521 = vector.broadcast %cst_185 : f32 to vector<2x128xf32>
    %522 = vector.broadcast %cst_186 : f32 to vector<2x128xf32>
    %523 = arith.select %520, %521, %522 : vector<2x128xi1>, vector<2x128xf32>
    %524 = arith.mulf %515, %523 : vector<2x128xf32>
    %525 = vector.shape_cast %524 : vector<2x128xf32> to vector<1x2x128xf32>
    %cst_187 = arith.constant dense<0.000000e+00> : vector<1xf32>
    %526 = vector.multi_reduction <add>, %525, %cst_187 [1, 2] : vector<1x2x128xf32> to vector<1xf32>
    %527 = vector.shape_cast %526 : vector<1xf32> to vector<1x1x1xf32>
    %528 = vector.extract %527[0, 0, 0] : f32 from vector<1x1x1xf32>
    %cst_188 = arith.constant 0.000000e+00 : f32
    %529 = arith.addf %cst_188, %528 : f32
    %530 = vector.shape_cast %523 : vector<2x128xf32> to vector<1x2x128xf32>
    %cst_189 = arith.constant dense<0.000000e+00> : vector<1xf32>
    %531 = vector.multi_reduction <add>, %530, %cst_189 [1, 2] : vector<1x2x128xf32> to vector<1xf32>
    %532 = vector.shape_cast %531 : vector<1xf32> to vector<1x1x1xf32>
    %533 = vector.extract %532[0, 0, 0] : f32 from vector<1x1x1xf32>
    %cst_190 = arith.constant 0.000000e+00 : f32
    %534 = arith.addf %cst_190, %533 : f32
    %c2_191 = arith.constant 2 : index
    %535 = memref.load %arg2[%c2_191] : memref<6xf32, #tpu.memory_space<smem>>
    %c3_192 = arith.constant 3 : index
    %536 = memref.load %arg2[%c3_192] : memref<6xf32, #tpu.memory_space<smem>>
    %c0_193 = arith.constant 0 : index
    %c1_194 = arith.constant 1 : index
    %c0_195 = arith.constant 0 : index
    %c0_196 = arith.constant 0 : index
    %c0_197 = arith.constant 0 : index
    %537 = vector.load %arg3[%c0_193, %c1_194, %c0_195, %c0_196, %c0_197] : memref<1x3x9x2x128xf32, #tpu.memory_space<vmem>>, vector<1x1x1x2x128xf32>
    %538 = vector.shape_cast %537 : vector<1x1x1x2x128xf32> to vector<2x128xf32>
    %cst_198 = arith.constant 0.000000e+00 : f32
    %539 = vector.broadcast %cst_198 : f32 to vector<2x128xf32>
    %540 = arith.subf %539, %538 : vector<2x128xf32>
    %541 = math.exp %540 : vector<2x128xf32>
    %cst_199 = arith.constant 1.000000e+00 : f32
    %542 = vector.broadcast %cst_199 : f32 to vector<2x128xf32>
    %543 = arith.addf %542, %541 : vector<2x128xf32>
    %544 = tpu.reciprocal %543 {approx = true} : vector<2x128xf32> -> vector<2x128xf32>
    %c0_200 = arith.constant 0 : index
    %c1_201 = arith.constant 1 : index
    %c1_202 = arith.constant 1 : index
    %c0_203 = arith.constant 0 : index
    %c0_204 = arith.constant 0 : index
    %545 = vector.load %arg3[%c0_200, %c1_201, %c1_202, %c0_203, %c0_204] : memref<1x3x9x2x128xf32, #tpu.memory_space<vmem>>, vector<1x1x1x2x128xf32>
    %546 = vector.shape_cast %545 : vector<1x1x1x2x128xf32> to vector<2x128xf32>
    %cst_205 = arith.constant 0.000000e+00 : f32
    %547 = vector.broadcast %cst_205 : f32 to vector<2x128xf32>
    %548 = arith.subf %547, %546 : vector<2x128xf32>
    %549 = math.exp %548 : vector<2x128xf32>
    %cst_206 = arith.constant 1.000000e+00 : f32
    %550 = vector.broadcast %cst_206 : f32 to vector<2x128xf32>
    %551 = arith.addf %550, %549 : vector<2x128xf32>
    %552 = tpu.reciprocal %551 {approx = true} : vector<2x128xf32> -> vector<2x128xf32>
    %c0_207 = arith.constant 0 : index
    %c1_208 = arith.constant 1 : index
    %c2_209 = arith.constant 2 : index
    %c0_210 = arith.constant 0 : index
    %c0_211 = arith.constant 0 : index
    %553 = vector.load %arg3[%c0_207, %c1_208, %c2_209, %c0_210, %c0_211] : memref<1x3x9x2x128xf32, #tpu.memory_space<vmem>>, vector<1x1x1x2x128xf32>
    %554 = vector.shape_cast %553 : vector<1x1x1x2x128xf32> to vector<2x128xf32>
    %555 = math.exp %554 : vector<2x128xf32>
    %556 = vector.broadcast %535 : f32 to vector<2x128xf32>
    %557 = arith.mulf %555, %556 : vector<2x128xf32>
    %c0_212 = arith.constant 0 : index
    %c1_213 = arith.constant 1 : index
    %c3_214 = arith.constant 3 : index
    %c0_215 = arith.constant 0 : index
    %c0_216 = arith.constant 0 : index
    %558 = vector.load %arg3[%c0_212, %c1_213, %c3_214, %c0_215, %c0_216] : memref<1x3x9x2x128xf32, #tpu.memory_space<vmem>>, vector<1x1x1x2x128xf32>
    %559 = vector.shape_cast %558 : vector<1x1x1x2x128xf32> to vector<2x128xf32>
    %560 = math.exp %559 : vector<2x128xf32>
    %561 = vector.broadcast %536 : f32 to vector<2x128xf32>
    %562 = arith.mulf %560, %561 : vector<2x128xf32>
    %c0_217 = arith.constant 0 : index
    %c1_218 = arith.constant 1 : index
    %c4_219 = arith.constant 4 : index
    %c0_220 = arith.constant 0 : index
    %c0_221 = arith.constant 0 : index
    %563 = vector.load %arg3[%c0_217, %c1_218, %c4_219, %c0_220, %c0_221] : memref<1x3x9x2x128xf32, #tpu.memory_space<vmem>>, vector<1x1x1x2x128xf32>
    %564 = vector.shape_cast %563 : vector<1x1x1x2x128xf32> to vector<2x128xf32>
    %c0_222 = arith.constant 0 : index
    %c1_223 = arith.constant 1 : index
    %c5_224 = arith.constant 5 : index
    %c0_225 = arith.constant 0 : index
    %c0_226 = arith.constant 0 : index
    %565 = vector.load %arg3[%c0_222, %c1_223, %c5_224, %c0_225, %c0_226] : memref<1x3x9x2x128xf32, #tpu.memory_space<vmem>>, vector<1x1x4x2x128xf32>
    %566 = vector.shape_cast %565 : vector<1x1x4x2x128xf32> to vector<4x2x128xf32>
    %567 = arith.addf %544, %1 : vector<2x128xf32>
    %568 = arith.addf %552, %3 : vector<2x128xf32>
    %cst_227 = arith.constant 5.000000e-01 : f32
    %569 = vector.broadcast %cst_227 : f32 to vector<2x128xf32>
    %570 = arith.mulf %569, %557 : vector<2x128xf32>
    %571 = arith.subf %567, %570 : vector<2x128xf32>
    %cst_228 = arith.constant 5.000000e-01 : f32
    %572 = vector.broadcast %cst_228 : f32 to vector<2x128xf32>
    %573 = arith.mulf %572, %557 : vector<2x128xf32>
    %574 = arith.addf %567, %573 : vector<2x128xf32>
    %cst_229 = arith.constant 5.000000e-01 : f32
    %575 = vector.broadcast %cst_229 : f32 to vector<2x128xf32>
    %576 = arith.mulf %575, %562 : vector<2x128xf32>
    %577 = arith.subf %568, %576 : vector<2x128xf32>
    %cst_230 = arith.constant 5.000000e-01 : f32
    %578 = vector.broadcast %cst_230 : f32 to vector<2x128xf32>
    %579 = arith.mulf %578, %562 : vector<2x128xf32>
    %580 = arith.addf %568, %579 : vector<2x128xf32>
    %581 = arith.mulf %557, %562 : vector<2x128xf32>
    %false_231 = arith.constant false
    %582 = vector.broadcast %false_231 : i1 to vector<2x128xi1>
    %583 = vector.broadcast %21 : f32 to vector<2x128xf32>
    %584 = arith.minimumf %574, %583 : vector<2x128xf32>
    %585 = vector.broadcast %19 : f32 to vector<2x128xf32>
    %586 = arith.maximumf %571, %585 : vector<2x128xf32>
    %587 = arith.subf %584, %586 : vector<2x128xf32>
    %cst_232 = arith.constant 0.000000e+00 : f32
    %588 = vector.broadcast %cst_232 : f32 to vector<2x128xf32>
    %589 = arith.maximumf %587, %588 : vector<2x128xf32>
    %590 = vector.broadcast %25 : f32 to vector<2x128xf32>
    %591 = arith.minimumf %580, %590 : vector<2x128xf32>
    %592 = vector.broadcast %23 : f32 to vector<2x128xf32>
    %593 = arith.maximumf %577, %592 : vector<2x128xf32>
    %594 = arith.subf %591, %593 : vector<2x128xf32>
    %cst_233 = arith.constant 0.000000e+00 : f32
    %595 = vector.broadcast %cst_233 : f32 to vector<2x128xf32>
    %596 = arith.maximumf %594, %595 : vector<2x128xf32>
    %597 = arith.mulf %589, %596 : vector<2x128xf32>
    %598 = vector.broadcast %26 : f32 to vector<2x128xf32>
    %599 = arith.addf %598, %581 : vector<2x128xf32>
    %600 = arith.subf %599, %597 : vector<2x128xf32>
    %cst_234 = arith.constant 5.000000e-01 : f32
    %601 = vector.broadcast %cst_234 : f32 to vector<2x128xf32>
    %602 = arith.mulf %601, %600 : vector<2x128xf32>
    %603 = arith.cmpf ogt, %597, %602 : vector<2x128xf32>
    %604 = arith.ori %582, %603 : vector<2x128xi1>
    %605 = vector.broadcast %43 : f32 to vector<2x128xf32>
    %606 = arith.minimumf %574, %605 : vector<2x128xf32>
    %607 = vector.broadcast %41 : f32 to vector<2x128xf32>
    %608 = arith.maximumf %571, %607 : vector<2x128xf32>
    %609 = arith.subf %606, %608 : vector<2x128xf32>
    %cst_235 = arith.constant 0.000000e+00 : f32
    %610 = vector.broadcast %cst_235 : f32 to vector<2x128xf32>
    %611 = arith.maximumf %609, %610 : vector<2x128xf32>
    %612 = vector.broadcast %47 : f32 to vector<2x128xf32>
    %613 = arith.minimumf %580, %612 : vector<2x128xf32>
    %614 = vector.broadcast %45 : f32 to vector<2x128xf32>
    %615 = arith.maximumf %577, %614 : vector<2x128xf32>
    %616 = arith.subf %613, %615 : vector<2x128xf32>
    %cst_236 = arith.constant 0.000000e+00 : f32
    %617 = vector.broadcast %cst_236 : f32 to vector<2x128xf32>
    %618 = arith.maximumf %616, %617 : vector<2x128xf32>
    %619 = arith.mulf %611, %618 : vector<2x128xf32>
    %620 = vector.broadcast %48 : f32 to vector<2x128xf32>
    %621 = arith.addf %620, %581 : vector<2x128xf32>
    %622 = arith.subf %621, %619 : vector<2x128xf32>
    %cst_237 = arith.constant 5.000000e-01 : f32
    %623 = vector.broadcast %cst_237 : f32 to vector<2x128xf32>
    %624 = arith.mulf %623, %622 : vector<2x128xf32>
    %625 = arith.cmpf ogt, %619, %624 : vector<2x128xf32>
    %626 = arith.ori %604, %625 : vector<2x128xi1>
    %627 = vector.broadcast %65 : f32 to vector<2x128xf32>
    %628 = arith.minimumf %574, %627 : vector<2x128xf32>
    %629 = vector.broadcast %63 : f32 to vector<2x128xf32>
    %630 = arith.maximumf %571, %629 : vector<2x128xf32>
    %631 = arith.subf %628, %630 : vector<2x128xf32>
    %cst_238 = arith.constant 0.000000e+00 : f32
    %632 = vector.broadcast %cst_238 : f32 to vector<2x128xf32>
    %633 = arith.maximumf %631, %632 : vector<2x128xf32>
    %634 = vector.broadcast %69 : f32 to vector<2x128xf32>
    %635 = arith.minimumf %580, %634 : vector<2x128xf32>
    %636 = vector.broadcast %67 : f32 to vector<2x128xf32>
    %637 = arith.maximumf %577, %636 : vector<2x128xf32>
    %638 = arith.subf %635, %637 : vector<2x128xf32>
    %cst_239 = arith.constant 0.000000e+00 : f32
    %639 = vector.broadcast %cst_239 : f32 to vector<2x128xf32>
    %640 = arith.maximumf %638, %639 : vector<2x128xf32>
    %641 = arith.mulf %633, %640 : vector<2x128xf32>
    %642 = vector.broadcast %70 : f32 to vector<2x128xf32>
    %643 = arith.addf %642, %581 : vector<2x128xf32>
    %644 = arith.subf %643, %641 : vector<2x128xf32>
    %cst_240 = arith.constant 5.000000e-01 : f32
    %645 = vector.broadcast %cst_240 : f32 to vector<2x128xf32>
    %646 = arith.mulf %645, %644 : vector<2x128xf32>
    %647 = arith.cmpf ogt, %641, %646 : vector<2x128xf32>
    %648 = arith.ori %626, %647 : vector<2x128xi1>
    %649 = vector.broadcast %87 : f32 to vector<2x128xf32>
    %650 = arith.minimumf %574, %649 : vector<2x128xf32>
    %651 = vector.broadcast %85 : f32 to vector<2x128xf32>
    %652 = arith.maximumf %571, %651 : vector<2x128xf32>
    %653 = arith.subf %650, %652 : vector<2x128xf32>
    %cst_241 = arith.constant 0.000000e+00 : f32
    %654 = vector.broadcast %cst_241 : f32 to vector<2x128xf32>
    %655 = arith.maximumf %653, %654 : vector<2x128xf32>
    %656 = vector.broadcast %91 : f32 to vector<2x128xf32>
    %657 = arith.minimumf %580, %656 : vector<2x128xf32>
    %658 = vector.broadcast %89 : f32 to vector<2x128xf32>
    %659 = arith.maximumf %577, %658 : vector<2x128xf32>
    %660 = arith.subf %657, %659 : vector<2x128xf32>
    %cst_242 = arith.constant 0.000000e+00 : f32
    %661 = vector.broadcast %cst_242 : f32 to vector<2x128xf32>
    %662 = arith.maximumf %660, %661 : vector<2x128xf32>
    %663 = arith.mulf %655, %662 : vector<2x128xf32>
    %664 = vector.broadcast %92 : f32 to vector<2x128xf32>
    %665 = arith.addf %664, %581 : vector<2x128xf32>
    %666 = arith.subf %665, %663 : vector<2x128xf32>
    %cst_243 = arith.constant 5.000000e-01 : f32
    %667 = vector.broadcast %cst_243 : f32 to vector<2x128xf32>
    %668 = arith.mulf %667, %666 : vector<2x128xf32>
    %669 = arith.cmpf ogt, %663, %668 : vector<2x128xf32>
    %670 = arith.ori %648, %669 : vector<2x128xi1>
    %671 = vector.broadcast %109 : f32 to vector<2x128xf32>
    %672 = arith.minimumf %574, %671 : vector<2x128xf32>
    %673 = vector.broadcast %107 : f32 to vector<2x128xf32>
    %674 = arith.maximumf %571, %673 : vector<2x128xf32>
    %675 = arith.subf %672, %674 : vector<2x128xf32>
    %cst_244 = arith.constant 0.000000e+00 : f32
    %676 = vector.broadcast %cst_244 : f32 to vector<2x128xf32>
    %677 = arith.maximumf %675, %676 : vector<2x128xf32>
    %678 = vector.broadcast %113 : f32 to vector<2x128xf32>
    %679 = arith.minimumf %580, %678 : vector<2x128xf32>
    %680 = vector.broadcast %111 : f32 to vector<2x128xf32>
    %681 = arith.maximumf %577, %680 : vector<2x128xf32>
    %682 = arith.subf %679, %681 : vector<2x128xf32>
    %cst_245 = arith.constant 0.000000e+00 : f32
    %683 = vector.broadcast %cst_245 : f32 to vector<2x128xf32>
    %684 = arith.maximumf %682, %683 : vector<2x128xf32>
    %685 = arith.mulf %677, %684 : vector<2x128xf32>
    %686 = vector.broadcast %114 : f32 to vector<2x128xf32>
    %687 = arith.addf %686, %581 : vector<2x128xf32>
    %688 = arith.subf %687, %685 : vector<2x128xf32>
    %cst_246 = arith.constant 5.000000e-01 : f32
    %689 = vector.broadcast %cst_246 : f32 to vector<2x128xf32>
    %690 = arith.mulf %689, %688 : vector<2x128xf32>
    %691 = arith.cmpf ogt, %685, %690 : vector<2x128xf32>
    %692 = arith.ori %670, %691 : vector<2x128xi1>
    %693 = vector.broadcast %131 : f32 to vector<2x128xf32>
    %694 = arith.minimumf %574, %693 : vector<2x128xf32>
    %695 = vector.broadcast %129 : f32 to vector<2x128xf32>
    %696 = arith.maximumf %571, %695 : vector<2x128xf32>
    %697 = arith.subf %694, %696 : vector<2x128xf32>
    %cst_247 = arith.constant 0.000000e+00 : f32
    %698 = vector.broadcast %cst_247 : f32 to vector<2x128xf32>
    %699 = arith.maximumf %697, %698 : vector<2x128xf32>
    %700 = vector.broadcast %135 : f32 to vector<2x128xf32>
    %701 = arith.minimumf %580, %700 : vector<2x128xf32>
    %702 = vector.broadcast %133 : f32 to vector<2x128xf32>
    %703 = arith.maximumf %577, %702 : vector<2x128xf32>
    %704 = arith.subf %701, %703 : vector<2x128xf32>
    %cst_248 = arith.constant 0.000000e+00 : f32
    %705 = vector.broadcast %cst_248 : f32 to vector<2x128xf32>
    %706 = arith.maximumf %704, %705 : vector<2x128xf32>
    %707 = arith.mulf %699, %706 : vector<2x128xf32>
    %708 = vector.broadcast %136 : f32 to vector<2x128xf32>
    %709 = arith.addf %708, %581 : vector<2x128xf32>
    %710 = arith.subf %709, %707 : vector<2x128xf32>
    %cst_249 = arith.constant 5.000000e-01 : f32
    %711 = vector.broadcast %cst_249 : f32 to vector<2x128xf32>
    %712 = arith.mulf %711, %710 : vector<2x128xf32>
    %713 = arith.cmpf ogt, %707, %712 : vector<2x128xf32>
    %714 = arith.ori %692, %713 : vector<2x128xi1>
    %715 = vector.broadcast %153 : f32 to vector<2x128xf32>
    %716 = arith.minimumf %574, %715 : vector<2x128xf32>
    %717 = vector.broadcast %151 : f32 to vector<2x128xf32>
    %718 = arith.maximumf %571, %717 : vector<2x128xf32>
    %719 = arith.subf %716, %718 : vector<2x128xf32>
    %cst_250 = arith.constant 0.000000e+00 : f32
    %720 = vector.broadcast %cst_250 : f32 to vector<2x128xf32>
    %721 = arith.maximumf %719, %720 : vector<2x128xf32>
    %722 = vector.broadcast %157 : f32 to vector<2x128xf32>
    %723 = arith.minimumf %580, %722 : vector<2x128xf32>
    %724 = vector.broadcast %155 : f32 to vector<2x128xf32>
    %725 = arith.maximumf %577, %724 : vector<2x128xf32>
    %726 = arith.subf %723, %725 : vector<2x128xf32>
    %cst_251 = arith.constant 0.000000e+00 : f32
    %727 = vector.broadcast %cst_251 : f32 to vector<2x128xf32>
    %728 = arith.maximumf %726, %727 : vector<2x128xf32>
    %729 = arith.mulf %721, %728 : vector<2x128xf32>
    %730 = vector.broadcast %158 : f32 to vector<2x128xf32>
    %731 = arith.addf %730, %581 : vector<2x128xf32>
    %732 = arith.subf %731, %729 : vector<2x128xf32>
    %cst_252 = arith.constant 5.000000e-01 : f32
    %733 = vector.broadcast %cst_252 : f32 to vector<2x128xf32>
    %734 = arith.mulf %733, %732 : vector<2x128xf32>
    %735 = arith.cmpf ogt, %729, %734 : vector<2x128xf32>
    %736 = arith.ori %714, %735 : vector<2x128xi1>
    %737 = vector.broadcast %175 : f32 to vector<2x128xf32>
    %738 = arith.minimumf %574, %737 : vector<2x128xf32>
    %739 = vector.broadcast %173 : f32 to vector<2x128xf32>
    %740 = arith.maximumf %571, %739 : vector<2x128xf32>
    %741 = arith.subf %738, %740 : vector<2x128xf32>
    %cst_253 = arith.constant 0.000000e+00 : f32
    %742 = vector.broadcast %cst_253 : f32 to vector<2x128xf32>
    %743 = arith.maximumf %741, %742 : vector<2x128xf32>
    %744 = vector.broadcast %179 : f32 to vector<2x128xf32>
    %745 = arith.minimumf %580, %744 : vector<2x128xf32>
    %746 = vector.broadcast %177 : f32 to vector<2x128xf32>
    %747 = arith.maximumf %577, %746 : vector<2x128xf32>
    %748 = arith.subf %745, %747 : vector<2x128xf32>
    %cst_254 = arith.constant 0.000000e+00 : f32
    %749 = vector.broadcast %cst_254 : f32 to vector<2x128xf32>
    %750 = arith.maximumf %748, %749 : vector<2x128xf32>
    %751 = arith.mulf %743, %750 : vector<2x128xf32>
    %752 = vector.broadcast %180 : f32 to vector<2x128xf32>
    %753 = arith.addf %752, %581 : vector<2x128xf32>
    %754 = arith.subf %753, %751 : vector<2x128xf32>
    %cst_255 = arith.constant 5.000000e-01 : f32
    %755 = vector.broadcast %cst_255 : f32 to vector<2x128xf32>
    %756 = arith.mulf %755, %754 : vector<2x128xf32>
    %757 = arith.cmpf ogt, %751, %756 : vector<2x128xf32>
    %758 = arith.ori %736, %757 : vector<2x128xi1>
    %c0_256 = arith.constant 0 : index
    %c1_257 = arith.constant 1 : index
    %c0_258 = arith.constant 0 : index
    %c0_259 = arith.constant 0 : index
    %759 = vector.load %arg5[%c0_256, %c1_257, %c0_258, %c0_259] : memref<1x3x2x128xf32, #tpu.memory_space<vmem>>, vector<1x1x2x128xf32>
    %760 = vector.shape_cast %759 : vector<1x1x2x128xf32> to vector<2x128xf32>
    %cst_260 = arith.constant 0.000000e+00 : f32
    %761 = vector.broadcast %cst_260 : f32 to vector<2x128xf32>
    %762 = arith.select %758, %761, %760 : vector<2x128xi1>, vector<2x128xf32>
    %c0_261 = arith.constant 0 : index
    %c1_262 = arith.constant 1 : index
    %c0_263 = arith.constant 0 : index
    %c0_264 = arith.constant 0 : index
    %c0_265 = arith.constant 0 : index
    %763 = vector.load %arg4[%c0_261, %c1_262, %c0_263, %c0_264, %c0_265] : memref<1x3x9x2x128xf32, #tpu.memory_space<vmem>>, vector<1x1x1x2x128xf32>
    %764 = vector.shape_cast %763 : vector<1x1x1x2x128xf32> to vector<2x128xf32>
    %c0_266 = arith.constant 0 : index
    %c1_267 = arith.constant 1 : index
    %c1_268 = arith.constant 1 : index
    %c0_269 = arith.constant 0 : index
    %c0_270 = arith.constant 0 : index
    %765 = vector.load %arg4[%c0_266, %c1_267, %c1_268, %c0_269, %c0_270] : memref<1x3x9x2x128xf32, #tpu.memory_space<vmem>>, vector<1x1x1x2x128xf32>
    %766 = vector.shape_cast %765 : vector<1x1x1x2x128xf32> to vector<2x128xf32>
    %c0_271 = arith.constant 0 : index
    %c1_272 = arith.constant 1 : index
    %c2_273 = arith.constant 2 : index
    %c0_274 = arith.constant 0 : index
    %c0_275 = arith.constant 0 : index
    %767 = vector.load %arg4[%c0_271, %c1_272, %c2_273, %c0_274, %c0_275] : memref<1x3x9x2x128xf32, #tpu.memory_space<vmem>>, vector<1x1x1x2x128xf32>
    %768 = vector.shape_cast %767 : vector<1x1x1x2x128xf32> to vector<2x128xf32>
    %c0_276 = arith.constant 0 : index
    %c1_277 = arith.constant 1 : index
    %c3_278 = arith.constant 3 : index
    %c0_279 = arith.constant 0 : index
    %c0_280 = arith.constant 0 : index
    %769 = vector.load %arg4[%c0_276, %c1_277, %c3_278, %c0_279, %c0_280] : memref<1x3x9x2x128xf32, #tpu.memory_space<vmem>>, vector<1x1x1x2x128xf32>
    %770 = vector.shape_cast %769 : vector<1x1x1x2x128xf32> to vector<2x128xf32>
    %c0_281 = arith.constant 0 : index
    %c1_282 = arith.constant 1 : index
    %c4_283 = arith.constant 4 : index
    %c0_284 = arith.constant 0 : index
    %c0_285 = arith.constant 0 : index
    %771 = vector.load %arg4[%c0_281, %c1_282, %c4_283, %c0_284, %c0_285] : memref<1x3x9x2x128xf32, #tpu.memory_space<vmem>>, vector<1x1x1x2x128xf32>
    %772 = vector.shape_cast %771 : vector<1x1x1x2x128xf32> to vector<2x128xf32>
    %cst_286 = arith.constant 1.000000e+00 : f32
    %773 = vector.broadcast %cst_286 : f32 to vector<2x128xf32>
    %774 = arith.cmpf oeq, %772, %773 : vector<2x128xf32>
    %775 = arith.extui %774 : vector<2x128xi1> to vector<2x128xi32>
    %776 = arith.sitofp %775 : vector<2x128xi32> to vector<2x128xf32>
    %c0_287 = arith.constant 0 : index
    %c1_288 = arith.constant 1 : index
    %c5_289 = arith.constant 5 : index
    %c0_290 = arith.constant 0 : index
    %c0_291 = arith.constant 0 : index
    %777 = vector.load %arg4[%c0_287, %c1_288, %c5_289, %c0_290, %c0_291] : memref<1x3x9x2x128xf32, #tpu.memory_space<vmem>>, vector<1x1x4x2x128xf32>
    %778 = vector.shape_cast %777 : vector<1x1x4x2x128xf32> to vector<4x2x128xf32>
    %779 = vector.shape_cast %776 : vector<2x128xf32> to vector<1x2x128xf32>
    %cst_292 = arith.constant dense<0.000000e+00> : vector<1xf32>
    %780 = vector.multi_reduction <add>, %779, %cst_292 [1, 2] : vector<1x2x128xf32> to vector<1xf32>
    %781 = vector.shape_cast %780 : vector<1xf32> to vector<1x1x1xf32>
    %782 = vector.extract %781[0, 0, 0] : f32 from vector<1x1x1xf32>
    %783 = arith.addf %429, %782 : f32
    %cst_293 = arith.constant 5.000000e-01 : f32
    %784 = vector.broadcast %cst_293 : f32 to vector<2x128xf32>
    %785 = arith.mulf %784, %768 : vector<2x128xf32>
    %786 = arith.subf %764, %785 : vector<2x128xf32>
    %cst_294 = arith.constant 5.000000e-01 : f32
    %787 = vector.broadcast %cst_294 : f32 to vector<2x128xf32>
    %788 = arith.mulf %787, %768 : vector<2x128xf32>
    %789 = arith.addf %764, %788 : vector<2x128xf32>
    %cst_295 = arith.constant 5.000000e-01 : f32
    %790 = vector.broadcast %cst_295 : f32 to vector<2x128xf32>
    %791 = arith.mulf %790, %770 : vector<2x128xf32>
    %792 = arith.subf %766, %791 : vector<2x128xf32>
    %cst_296 = arith.constant 5.000000e-01 : f32
    %793 = vector.broadcast %cst_296 : f32 to vector<2x128xf32>
    %794 = arith.mulf %793, %770 : vector<2x128xf32>
    %795 = arith.addf %766, %794 : vector<2x128xf32>
    %796 = arith.minimumf %574, %789 : vector<2x128xf32>
    %797 = arith.maximumf %571, %786 : vector<2x128xf32>
    %798 = arith.subf %796, %797 : vector<2x128xf32>
    %cst_297 = arith.constant 0.000000e+00 : f32
    %799 = vector.broadcast %cst_297 : f32 to vector<2x128xf32>
    %800 = arith.maximumf %798, %799 : vector<2x128xf32>
    %801 = arith.minimumf %580, %795 : vector<2x128xf32>
    %802 = arith.maximumf %577, %792 : vector<2x128xf32>
    %803 = arith.subf %801, %802 : vector<2x128xf32>
    %cst_298 = arith.constant 0.000000e+00 : f32
    %804 = vector.broadcast %cst_298 : f32 to vector<2x128xf32>
    %805 = arith.maximumf %803, %804 : vector<2x128xf32>
    %806 = arith.mulf %800, %805 : vector<2x128xf32>
    %807 = arith.mulf %768, %770 : vector<2x128xf32>
    %808 = arith.addf %581, %807 : vector<2x128xf32>
    %809 = arith.subf %808, %806 : vector<2x128xf32>
    %810 = tpu.reciprocal %809 {approx = true} : vector<2x128xf32> -> vector<2x128xf32>
    %811 = arith.mulf %806, %810 : vector<2x128xf32>
    %812 = arith.maximumf %574, %789 : vector<2x128xf32>
    %813 = arith.minimumf %571, %786 : vector<2x128xf32>
    %814 = arith.subf %812, %813 : vector<2x128xf32>
    %cst_299 = arith.constant 0.000000e+00 : f32
    %815 = vector.broadcast %cst_299 : f32 to vector<2x128xf32>
    %816 = arith.maximumf %814, %815 : vector<2x128xf32>
    %817 = arith.maximumf %580, %795 : vector<2x128xf32>
    %818 = arith.minimumf %577, %792 : vector<2x128xf32>
    %819 = arith.subf %817, %818 : vector<2x128xf32>
    %cst_300 = arith.constant 0.000000e+00 : f32
    %820 = vector.broadcast %cst_300 : f32 to vector<2x128xf32>
    %821 = arith.maximumf %819, %820 : vector<2x128xf32>
    %822 = arith.mulf %816, %821 : vector<2x128xf32>
    %823 = arith.subf %822, %809 : vector<2x128xf32>
    %824 = tpu.reciprocal %822 {approx = true} : vector<2x128xf32> -> vector<2x128xf32>
    %825 = arith.mulf %823, %824 : vector<2x128xf32>
    %826 = arith.subf %811, %825 : vector<2x128xf32>
    %cst_301 = arith.constant 0.000000e+00 : f32
    %827 = vector.broadcast %cst_301 : f32 to vector<2x128xf32>
    %828 = arith.cmpf ogt, %776, %827 : vector<2x128xf32>
    %cst_302 = arith.constant 1.000000e+00 : f32
    %829 = vector.broadcast %cst_302 : f32 to vector<2x128xf32>
    %830 = arith.subf %829, %826 : vector<2x128xf32>
    %cst_303 = arith.constant 0.000000e+00 : f32
    %831 = vector.broadcast %cst_303 : f32 to vector<2x128xf32>
    %832 = arith.select %828, %830, %831 : vector<2x128xi1>, vector<2x128xf32>
    %833 = vector.shape_cast %832 : vector<2x128xf32> to vector<1x2x128xf32>
    %cst_304 = arith.constant dense<0.000000e+00> : vector<1xf32>
    %834 = vector.multi_reduction <add>, %833, %cst_304 [1, 2] : vector<1x2x128xf32> to vector<1xf32>
    %835 = vector.shape_cast %834 : vector<1xf32> to vector<1x1x1xf32>
    %836 = vector.extract %835[0, 0, 0] : f32 from vector<1x1x1xf32>
    %837 = arith.addf %483, %836 : f32
    %cst_305 = arith.constant 0.000000e+00 : f32
    %838 = vector.broadcast %cst_305 : f32 to vector<4x2x128xf32>
    %839 = arith.maximumf %566, %838 : vector<4x2x128xf32>
    %840 = arith.mulf %566, %778 : vector<4x2x128xf32>
    %841 = arith.subf %839, %840 : vector<4x2x128xf32>
    %842 = math.absf %566 : vector<4x2x128xf32>
    %cst_306 = arith.constant 0.000000e+00 : f32
    %843 = vector.broadcast %cst_306 : f32 to vector<4x2x128xf32>
    %844 = arith.subf %843, %842 : vector<4x2x128xf32>
    %845 = math.exp %844 : vector<4x2x128xf32>
    %cst_307 = arith.constant 1.000000e+00 : f32
    %846 = vector.broadcast %cst_307 : f32 to vector<4x2x128xf32>
    %847 = arith.addf %846, %845 : vector<4x2x128xf32>
    %848 = math.log %847 : vector<4x2x128xf32>
    %849 = arith.addf %841, %848 : vector<4x2x128xf32>
    %850 = vector.shape_cast %776 : vector<2x128xf32> to vector<1x2x128xf32>
    %851 = vector.broadcast %850 : vector<1x2x128xf32> to vector<4x2x128xf32>
    %852 = arith.mulf %849, %851 : vector<4x2x128xf32>
    %853 = vector.shape_cast %852 : vector<4x2x128xf32> to vector<1x4x2x128xf32>
    %cst_308 = arith.constant dense<0.000000e+00> : vector<1xf32>
    %854 = vector.multi_reduction <add>, %853, %cst_308 [1, 2, 3] : vector<1x4x2x128xf32> to vector<1xf32>
    %855 = vector.shape_cast %854 : vector<1xf32> to vector<1x1x1x1xf32>
    %856 = vector.extract %855[0, 0, 0, 0] : f32 from vector<1x1x1x1xf32>
    %857 = arith.addf %503, %856 : f32
    %cst_309 = arith.constant 0.000000e+00 : f32
    %858 = vector.broadcast %cst_309 : f32 to vector<2x128xf32>
    %859 = arith.maximumf %564, %858 : vector<2x128xf32>
    %860 = arith.mulf %564, %776 : vector<2x128xf32>
    %861 = arith.subf %859, %860 : vector<2x128xf32>
    %862 = math.absf %564 : vector<2x128xf32>
    %cst_310 = arith.constant 0.000000e+00 : f32
    %863 = vector.broadcast %cst_310 : f32 to vector<2x128xf32>
    %864 = arith.subf %863, %862 : vector<2x128xf32>
    %865 = math.exp %864 : vector<2x128xf32>
    %cst_311 = arith.constant 1.000000e+00 : f32
    %866 = vector.broadcast %cst_311 : f32 to vector<2x128xf32>
    %867 = arith.addf %866, %865 : vector<2x128xf32>
    %868 = math.log %867 : vector<2x128xf32>
    %869 = arith.addf %861, %868 : vector<2x128xf32>
    %cst_312 = arith.constant 0.000000e+00 : f32
    %870 = vector.broadcast %cst_312 : f32 to vector<2x128xf32>
    %871 = arith.cmpf ogt, %762, %870 : vector<2x128xf32>
    %cst_313 = arith.constant 0.000000e+00 : f32
    %872 = vector.broadcast %cst_313 : f32 to vector<2x128xf32>
    %873 = arith.cmpf ogt, %776, %872 : vector<2x128xf32>
    %874 = arith.ori %871, %873 : vector<2x128xi1>
    %cst_314 = arith.constant 1.000000e+00 : f32
    %cst_315 = arith.constant 0.000000e+00 : f32
    %875 = vector.broadcast %cst_314 : f32 to vector<2x128xf32>
    %876 = vector.broadcast %cst_315 : f32 to vector<2x128xf32>
    %877 = arith.select %874, %875, %876 : vector<2x128xi1>, vector<2x128xf32>
    %878 = arith.mulf %869, %877 : vector<2x128xf32>
    %879 = vector.shape_cast %878 : vector<2x128xf32> to vector<1x2x128xf32>
    %cst_316 = arith.constant dense<0.000000e+00> : vector<1xf32>
    %880 = vector.multi_reduction <add>, %879, %cst_316 [1, 2] : vector<1x2x128xf32> to vector<1xf32>
    %881 = vector.shape_cast %880 : vector<1xf32> to vector<1x1x1xf32>
    %882 = vector.extract %881[0, 0, 0] : f32 from vector<1x1x1xf32>
    %883 = arith.addf %529, %882 : f32
    %884 = vector.shape_cast %877 : vector<2x128xf32> to vector<1x2x128xf32>
    %cst_317 = arith.constant dense<0.000000e+00> : vector<1xf32>
    %885 = vector.multi_reduction <add>, %884, %cst_317 [1, 2] : vector<1x2x128xf32> to vector<1xf32>
    %886 = vector.shape_cast %885 : vector<1xf32> to vector<1x1x1xf32>
    %887 = vector.extract %886[0, 0, 0] : f32 from vector<1x1x1xf32>
    %888 = arith.addf %534, %887 : f32
    %c4_318 = arith.constant 4 : index
    %889 = memref.load %arg2[%c4_318] : memref<6xf32, #tpu.memory_space<smem>>
    %c5_319 = arith.constant 5 : index
    %890 = memref.load %arg2[%c5_319] : memref<6xf32, #tpu.memory_space<smem>>
    %c0_320 = arith.constant 0 : index
    %c2_321 = arith.constant 2 : index
    %c0_322 = arith.constant 0 : index
    %c0_323 = arith.constant 0 : index
    %c0_324 = arith.constant 0 : index
    %891 = vector.load %arg3[%c0_320, %c2_321, %c0_322, %c0_323, %c0_324] : memref<1x3x9x2x128xf32, #tpu.memory_space<vmem>>, vector<1x1x1x2x128xf32>
    %892 = vector.shape_cast %891 : vector<1x1x1x2x128xf32> to vector<2x128xf32>
    %cst_325 = arith.constant 0.000000e+00 : f32
    %893 = vector.broadcast %cst_325 : f32 to vector<2x128xf32>
    %894 = arith.subf %893, %892 : vector<2x128xf32>
    %895 = math.exp %894 : vector<2x128xf32>
    %cst_326 = arith.constant 1.000000e+00 : f32
    %896 = vector.broadcast %cst_326 : f32 to vector<2x128xf32>
    %897 = arith.addf %896, %895 : vector<2x128xf32>
    %898 = tpu.reciprocal %897 {approx = true} : vector<2x128xf32> -> vector<2x128xf32>
    %c0_327 = arith.constant 0 : index
    %c2_328 = arith.constant 2 : index
    %c1_329 = arith.constant 1 : index
    %c0_330 = arith.constant 0 : index
    %c0_331 = arith.constant 0 : index
    %899 = vector.load %arg3[%c0_327, %c2_328, %c1_329, %c0_330, %c0_331] : memref<1x3x9x2x128xf32, #tpu.memory_space<vmem>>, vector<1x1x1x2x128xf32>
    %900 = vector.shape_cast %899 : vector<1x1x1x2x128xf32> to vector<2x128xf32>
    %cst_332 = arith.constant 0.000000e+00 : f32
    %901 = vector.broadcast %cst_332 : f32 to vector<2x128xf32>
    %902 = arith.subf %901, %900 : vector<2x128xf32>
    %903 = math.exp %902 : vector<2x128xf32>
    %cst_333 = arith.constant 1.000000e+00 : f32
    %904 = vector.broadcast %cst_333 : f32 to vector<2x128xf32>
    %905 = arith.addf %904, %903 : vector<2x128xf32>
    %906 = tpu.reciprocal %905 {approx = true} : vector<2x128xf32> -> vector<2x128xf32>
    %c0_334 = arith.constant 0 : index
    %c2_335 = arith.constant 2 : index
    %c2_336 = arith.constant 2 : index
    %c0_337 = arith.constant 0 : index
    %c0_338 = arith.constant 0 : index
    %907 = vector.load %arg3[%c0_334, %c2_335, %c2_336, %c0_337, %c0_338] : memref<1x3x9x2x128xf32, #tpu.memory_space<vmem>>, vector<1x1x1x2x128xf32>
    %908 = vector.shape_cast %907 : vector<1x1x1x2x128xf32> to vector<2x128xf32>
    %909 = math.exp %908 : vector<2x128xf32>
    %910 = vector.broadcast %889 : f32 to vector<2x128xf32>
    %911 = arith.mulf %909, %910 : vector<2x128xf32>
    %c0_339 = arith.constant 0 : index
    %c2_340 = arith.constant 2 : index
    %c3_341 = arith.constant 3 : index
    %c0_342 = arith.constant 0 : index
    %c0_343 = arith.constant 0 : index
    %912 = vector.load %arg3[%c0_339, %c2_340, %c3_341, %c0_342, %c0_343] : memref<1x3x9x2x128xf32, #tpu.memory_space<vmem>>, vector<1x1x1x2x128xf32>
    %913 = vector.shape_cast %912 : vector<1x1x1x2x128xf32> to vector<2x128xf32>
    %914 = math.exp %913 : vector<2x128xf32>
    %915 = vector.broadcast %890 : f32 to vector<2x128xf32>
    %916 = arith.mulf %914, %915 : vector<2x128xf32>
    %c0_344 = arith.constant 0 : index
    %c2_345 = arith.constant 2 : index
    %c4_346 = arith.constant 4 : index
    %c0_347 = arith.constant 0 : index
    %c0_348 = arith.constant 0 : index
    %917 = vector.load %arg3[%c0_344, %c2_345, %c4_346, %c0_347, %c0_348] : memref<1x3x9x2x128xf32, #tpu.memory_space<vmem>>, vector<1x1x1x2x128xf32>
    %918 = vector.shape_cast %917 : vector<1x1x1x2x128xf32> to vector<2x128xf32>
    %c0_349 = arith.constant 0 : index
    %c2_350 = arith.constant 2 : index
    %c5_351 = arith.constant 5 : index
    %c0_352 = arith.constant 0 : index
    %c0_353 = arith.constant 0 : index
    %919 = vector.load %arg3[%c0_349, %c2_350, %c5_351, %c0_352, %c0_353] : memref<1x3x9x2x128xf32, #tpu.memory_space<vmem>>, vector<1x1x4x2x128xf32>
    %920 = vector.shape_cast %919 : vector<1x1x4x2x128xf32> to vector<4x2x128xf32>
    %921 = arith.addf %898, %1 : vector<2x128xf32>
    %922 = arith.addf %906, %3 : vector<2x128xf32>
    %cst_354 = arith.constant 5.000000e-01 : f32
    %923 = vector.broadcast %cst_354 : f32 to vector<2x128xf32>
    %924 = arith.mulf %923, %911 : vector<2x128xf32>
    %925 = arith.subf %921, %924 : vector<2x128xf32>
    %cst_355 = arith.constant 5.000000e-01 : f32
    %926 = vector.broadcast %cst_355 : f32 to vector<2x128xf32>
    %927 = arith.mulf %926, %911 : vector<2x128xf32>
    %928 = arith.addf %921, %927 : vector<2x128xf32>
    %cst_356 = arith.constant 5.000000e-01 : f32
    %929 = vector.broadcast %cst_356 : f32 to vector<2x128xf32>
    %930 = arith.mulf %929, %916 : vector<2x128xf32>
    %931 = arith.subf %922, %930 : vector<2x128xf32>
    %cst_357 = arith.constant 5.000000e-01 : f32
    %932 = vector.broadcast %cst_357 : f32 to vector<2x128xf32>
    %933 = arith.mulf %932, %916 : vector<2x128xf32>
    %934 = arith.addf %922, %933 : vector<2x128xf32>
    %935 = arith.mulf %911, %916 : vector<2x128xf32>
    %false_358 = arith.constant false
    %936 = vector.broadcast %false_358 : i1 to vector<2x128xi1>
    %937 = vector.broadcast %21 : f32 to vector<2x128xf32>
    %938 = arith.minimumf %928, %937 : vector<2x128xf32>
    %939 = vector.broadcast %19 : f32 to vector<2x128xf32>
    %940 = arith.maximumf %925, %939 : vector<2x128xf32>
    %941 = arith.subf %938, %940 : vector<2x128xf32>
    %cst_359 = arith.constant 0.000000e+00 : f32
    %942 = vector.broadcast %cst_359 : f32 to vector<2x128xf32>
    %943 = arith.maximumf %941, %942 : vector<2x128xf32>
    %944 = vector.broadcast %25 : f32 to vector<2x128xf32>
    %945 = arith.minimumf %934, %944 : vector<2x128xf32>
    %946 = vector.broadcast %23 : f32 to vector<2x128xf32>
    %947 = arith.maximumf %931, %946 : vector<2x128xf32>
    %948 = arith.subf %945, %947 : vector<2x128xf32>
    %cst_360 = arith.constant 0.000000e+00 : f32
    %949 = vector.broadcast %cst_360 : f32 to vector<2x128xf32>
    %950 = arith.maximumf %948, %949 : vector<2x128xf32>
    %951 = arith.mulf %943, %950 : vector<2x128xf32>
    %952 = vector.broadcast %26 : f32 to vector<2x128xf32>
    %953 = arith.addf %952, %935 : vector<2x128xf32>
    %954 = arith.subf %953, %951 : vector<2x128xf32>
    %cst_361 = arith.constant 5.000000e-01 : f32
    %955 = vector.broadcast %cst_361 : f32 to vector<2x128xf32>
    %956 = arith.mulf %955, %954 : vector<2x128xf32>
    %957 = arith.cmpf ogt, %951, %956 : vector<2x128xf32>
    %958 = arith.ori %936, %957 : vector<2x128xi1>
    %959 = vector.broadcast %43 : f32 to vector<2x128xf32>
    %960 = arith.minimumf %928, %959 : vector<2x128xf32>
    %961 = vector.broadcast %41 : f32 to vector<2x128xf32>
    %962 = arith.maximumf %925, %961 : vector<2x128xf32>
    %963 = arith.subf %960, %962 : vector<2x128xf32>
    %cst_362 = arith.constant 0.000000e+00 : f32
    %964 = vector.broadcast %cst_362 : f32 to vector<2x128xf32>
    %965 = arith.maximumf %963, %964 : vector<2x128xf32>
    %966 = vector.broadcast %47 : f32 to vector<2x128xf32>
    %967 = arith.minimumf %934, %966 : vector<2x128xf32>
    %968 = vector.broadcast %45 : f32 to vector<2x128xf32>
    %969 = arith.maximumf %931, %968 : vector<2x128xf32>
    %970 = arith.subf %967, %969 : vector<2x128xf32>
    %cst_363 = arith.constant 0.000000e+00 : f32
    %971 = vector.broadcast %cst_363 : f32 to vector<2x128xf32>
    %972 = arith.maximumf %970, %971 : vector<2x128xf32>
    %973 = arith.mulf %965, %972 : vector<2x128xf32>
    %974 = vector.broadcast %48 : f32 to vector<2x128xf32>
    %975 = arith.addf %974, %935 : vector<2x128xf32>
    %976 = arith.subf %975, %973 : vector<2x128xf32>
    %cst_364 = arith.constant 5.000000e-01 : f32
    %977 = vector.broadcast %cst_364 : f32 to vector<2x128xf32>
    %978 = arith.mulf %977, %976 : vector<2x128xf32>
    %979 = arith.cmpf ogt, %973, %978 : vector<2x128xf32>
    %980 = arith.ori %958, %979 : vector<2x128xi1>
    %981 = vector.broadcast %65 : f32 to vector<2x128xf32>
    %982 = arith.minimumf %928, %981 : vector<2x128xf32>
    %983 = vector.broadcast %63 : f32 to vector<2x128xf32>
    %984 = arith.maximumf %925, %983 : vector<2x128xf32>
    %985 = arith.subf %982, %984 : vector<2x128xf32>
    %cst_365 = arith.constant 0.000000e+00 : f32
    %986 = vector.broadcast %cst_365 : f32 to vector<2x128xf32>
    %987 = arith.maximumf %985, %986 : vector<2x128xf32>
    %988 = vector.broadcast %69 : f32 to vector<2x128xf32>
    %989 = arith.minimumf %934, %988 : vector<2x128xf32>
    %990 = vector.broadcast %67 : f32 to vector<2x128xf32>
    %991 = arith.maximumf %931, %990 : vector<2x128xf32>
    %992 = arith.subf %989, %991 : vector<2x128xf32>
    %cst_366 = arith.constant 0.000000e+00 : f32
    %993 = vector.broadcast %cst_366 : f32 to vector<2x128xf32>
    %994 = arith.maximumf %992, %993 : vector<2x128xf32>
    %995 = arith.mulf %987, %994 : vector<2x128xf32>
    %996 = vector.broadcast %70 : f32 to vector<2x128xf32>
    %997 = arith.addf %996, %935 : vector<2x128xf32>
    %998 = arith.subf %997, %995 : vector<2x128xf32>
    %cst_367 = arith.constant 5.000000e-01 : f32
    %999 = vector.broadcast %cst_367 : f32 to vector<2x128xf32>
    %1000 = arith.mulf %999, %998 : vector<2x128xf32>
    %1001 = arith.cmpf ogt, %995, %1000 : vector<2x128xf32>
    %1002 = arith.ori %980, %1001 : vector<2x128xi1>
    %1003 = vector.broadcast %87 : f32 to vector<2x128xf32>
    %1004 = arith.minimumf %928, %1003 : vector<2x128xf32>
    %1005 = vector.broadcast %85 : f32 to vector<2x128xf32>
    %1006 = arith.maximumf %925, %1005 : vector<2x128xf32>
    %1007 = arith.subf %1004, %1006 : vector<2x128xf32>
    %cst_368 = arith.constant 0.000000e+00 : f32
    %1008 = vector.broadcast %cst_368 : f32 to vector<2x128xf32>
    %1009 = arith.maximumf %1007, %1008 : vector<2x128xf32>
    %1010 = vector.broadcast %91 : f32 to vector<2x128xf32>
    %1011 = arith.minimumf %934, %1010 : vector<2x128xf32>
    %1012 = vector.broadcast %89 : f32 to vector<2x128xf32>
    %1013 = arith.maximumf %931, %1012 : vector<2x128xf32>
    %1014 = arith.subf %1011, %1013 : vector<2x128xf32>
    %cst_369 = arith.constant 0.000000e+00 : f32
    %1015 = vector.broadcast %cst_369 : f32 to vector<2x128xf32>
    %1016 = arith.maximumf %1014, %1015 : vector<2x128xf32>
    %1017 = arith.mulf %1009, %1016 : vector<2x128xf32>
    %1018 = vector.broadcast %92 : f32 to vector<2x128xf32>
    %1019 = arith.addf %1018, %935 : vector<2x128xf32>
    %1020 = arith.subf %1019, %1017 : vector<2x128xf32>
    %cst_370 = arith.constant 5.000000e-01 : f32
    %1021 = vector.broadcast %cst_370 : f32 to vector<2x128xf32>
    %1022 = arith.mulf %1021, %1020 : vector<2x128xf32>
    %1023 = arith.cmpf ogt, %1017, %1022 : vector<2x128xf32>
    %1024 = arith.ori %1002, %1023 : vector<2x128xi1>
    %1025 = vector.broadcast %109 : f32 to vector<2x128xf32>
    %1026 = arith.minimumf %928, %1025 : vector<2x128xf32>
    %1027 = vector.broadcast %107 : f32 to vector<2x128xf32>
    %1028 = arith.maximumf %925, %1027 : vector<2x128xf32>
    %1029 = arith.subf %1026, %1028 : vector<2x128xf32>
    %cst_371 = arith.constant 0.000000e+00 : f32
    %1030 = vector.broadcast %cst_371 : f32 to vector<2x128xf32>
    %1031 = arith.maximumf %1029, %1030 : vector<2x128xf32>
    %1032 = vector.broadcast %113 : f32 to vector<2x128xf32>
    %1033 = arith.minimumf %934, %1032 : vector<2x128xf32>
    %1034 = vector.broadcast %111 : f32 to vector<2x128xf32>
    %1035 = arith.maximumf %931, %1034 : vector<2x128xf32>
    %1036 = arith.subf %1033, %1035 : vector<2x128xf32>
    %cst_372 = arith.constant 0.000000e+00 : f32
    %1037 = vector.broadcast %cst_372 : f32 to vector<2x128xf32>
    %1038 = arith.maximumf %1036, %1037 : vector<2x128xf32>
    %1039 = arith.mulf %1031, %1038 : vector<2x128xf32>
    %1040 = vector.broadcast %114 : f32 to vector<2x128xf32>
    %1041 = arith.addf %1040, %935 : vector<2x128xf32>
    %1042 = arith.subf %1041, %1039 : vector<2x128xf32>
    %cst_373 = arith.constant 5.000000e-01 : f32
    %1043 = vector.broadcast %cst_373 : f32 to vector<2x128xf32>
    %1044 = arith.mulf %1043, %1042 : vector<2x128xf32>
    %1045 = arith.cmpf ogt, %1039, %1044 : vector<2x128xf32>
    %1046 = arith.ori %1024, %1045 : vector<2x128xi1>
    %1047 = vector.broadcast %131 : f32 to vector<2x128xf32>
    %1048 = arith.minimumf %928, %1047 : vector<2x128xf32>
    %1049 = vector.broadcast %129 : f32 to vector<2x128xf32>
    %1050 = arith.maximumf %925, %1049 : vector<2x128xf32>
    %1051 = arith.subf %1048, %1050 : vector<2x128xf32>
    %cst_374 = arith.constant 0.000000e+00 : f32
    %1052 = vector.broadcast %cst_374 : f32 to vector<2x128xf32>
    %1053 = arith.maximumf %1051, %1052 : vector<2x128xf32>
    %1054 = vector.broadcast %135 : f32 to vector<2x128xf32>
    %1055 = arith.minimumf %934, %1054 : vector<2x128xf32>
    %1056 = vector.broadcast %133 : f32 to vector<2x128xf32>
    %1057 = arith.maximumf %931, %1056 : vector<2x128xf32>
    %1058 = arith.subf %1055, %1057 : vector<2x128xf32>
    %cst_375 = arith.constant 0.000000e+00 : f32
    %1059 = vector.broadcast %cst_375 : f32 to vector<2x128xf32>
    %1060 = arith.maximumf %1058, %1059 : vector<2x128xf32>
    %1061 = arith.mulf %1053, %1060 : vector<2x128xf32>
    %1062 = vector.broadcast %136 : f32 to vector<2x128xf32>
    %1063 = arith.addf %1062, %935 : vector<2x128xf32>
    %1064 = arith.subf %1063, %1061 : vector<2x128xf32>
    %cst_376 = arith.constant 5.000000e-01 : f32
    %1065 = vector.broadcast %cst_376 : f32 to vector<2x128xf32>
    %1066 = arith.mulf %1065, %1064 : vector<2x128xf32>
    %1067 = arith.cmpf ogt, %1061, %1066 : vector<2x128xf32>
    %1068 = arith.ori %1046, %1067 : vector<2x128xi1>
    %1069 = vector.broadcast %153 : f32 to vector<2x128xf32>
    %1070 = arith.minimumf %928, %1069 : vector<2x128xf32>
    %1071 = vector.broadcast %151 : f32 to vector<2x128xf32>
    %1072 = arith.maximumf %925, %1071 : vector<2x128xf32>
    %1073 = arith.subf %1070, %1072 : vector<2x128xf32>
    %cst_377 = arith.constant 0.000000e+00 : f32
    %1074 = vector.broadcast %cst_377 : f32 to vector<2x128xf32>
    %1075 = arith.maximumf %1073, %1074 : vector<2x128xf32>
    %1076 = vector.broadcast %157 : f32 to vector<2x128xf32>
    %1077 = arith.minimumf %934, %1076 : vector<2x128xf32>
    %1078 = vector.broadcast %155 : f32 to vector<2x128xf32>
    %1079 = arith.maximumf %931, %1078 : vector<2x128xf32>
    %1080 = arith.subf %1077, %1079 : vector<2x128xf32>
    %cst_378 = arith.constant 0.000000e+00 : f32
    %1081 = vector.broadcast %cst_378 : f32 to vector<2x128xf32>
    %1082 = arith.maximumf %1080, %1081 : vector<2x128xf32>
    %1083 = arith.mulf %1075, %1082 : vector<2x128xf32>
    %1084 = vector.broadcast %158 : f32 to vector<2x128xf32>
    %1085 = arith.addf %1084, %935 : vector<2x128xf32>
    %1086 = arith.subf %1085, %1083 : vector<2x128xf32>
    %cst_379 = arith.constant 5.000000e-01 : f32
    %1087 = vector.broadcast %cst_379 : f32 to vector<2x128xf32>
    %1088 = arith.mulf %1087, %1086 : vector<2x128xf32>
    %1089 = arith.cmpf ogt, %1083, %1088 : vector<2x128xf32>
    %1090 = arith.ori %1068, %1089 : vector<2x128xi1>
    %1091 = vector.broadcast %175 : f32 to vector<2x128xf32>
    %1092 = arith.minimumf %928, %1091 : vector<2x128xf32>
    %1093 = vector.broadcast %173 : f32 to vector<2x128xf32>
    %1094 = arith.maximumf %925, %1093 : vector<2x128xf32>
    %1095 = arith.subf %1092, %1094 : vector<2x128xf32>
    %cst_380 = arith.constant 0.000000e+00 : f32
    %1096 = vector.broadcast %cst_380 : f32 to vector<2x128xf32>
    %1097 = arith.maximumf %1095, %1096 : vector<2x128xf32>
    %1098 = vector.broadcast %179 : f32 to vector<2x128xf32>
    %1099 = arith.minimumf %934, %1098 : vector<2x128xf32>
    %1100 = vector.broadcast %177 : f32 to vector<2x128xf32>
    %1101 = arith.maximumf %931, %1100 : vector<2x128xf32>
    %1102 = arith.subf %1099, %1101 : vector<2x128xf32>
    %cst_381 = arith.constant 0.000000e+00 : f32
    %1103 = vector.broadcast %cst_381 : f32 to vector<2x128xf32>
    %1104 = arith.maximumf %1102, %1103 : vector<2x128xf32>
    %1105 = arith.mulf %1097, %1104 : vector<2x128xf32>
    %1106 = vector.broadcast %180 : f32 to vector<2x128xf32>
    %1107 = arith.addf %1106, %935 : vector<2x128xf32>
    %1108 = arith.subf %1107, %1105 : vector<2x128xf32>
    %cst_382 = arith.constant 5.000000e-01 : f32
    %1109 = vector.broadcast %cst_382 : f32 to vector<2x128xf32>
    %1110 = arith.mulf %1109, %1108 : vector<2x128xf32>
    %1111 = arith.cmpf ogt, %1105, %1110 : vector<2x128xf32>
    %1112 = arith.ori %1090, %1111 : vector<2x128xi1>
    %c0_383 = arith.constant 0 : index
    %c2_384 = arith.constant 2 : index
    %c0_385 = arith.constant 0 : index
    %c0_386 = arith.constant 0 : index
    %1113 = vector.load %arg5[%c0_383, %c2_384, %c0_385, %c0_386] : memref<1x3x2x128xf32, #tpu.memory_space<vmem>>, vector<1x1x2x128xf32>
    %1114 = vector.shape_cast %1113 : vector<1x1x2x128xf32> to vector<2x128xf32>
    %cst_387 = arith.constant 0.000000e+00 : f32
    %1115 = vector.broadcast %cst_387 : f32 to vector<2x128xf32>
    %1116 = arith.select %1112, %1115, %1114 : vector<2x128xi1>, vector<2x128xf32>
    %c0_388 = arith.constant 0 : index
    %c2_389 = arith.constant 2 : index
    %c0_390 = arith.constant 0 : index
    %c0_391 = arith.constant 0 : index
    %c0_392 = arith.constant 0 : index
    %1117 = vector.load %arg4[%c0_388, %c2_389, %c0_390, %c0_391, %c0_392] : memref<1x3x9x2x128xf32, #tpu.memory_space<vmem>>, vector<1x1x1x2x128xf32>
    %1118 = vector.shape_cast %1117 : vector<1x1x1x2x128xf32> to vector<2x128xf32>
    %c0_393 = arith.constant 0 : index
    %c2_394 = arith.constant 2 : index
    %c1_395 = arith.constant 1 : index
    %c0_396 = arith.constant 0 : index
    %c0_397 = arith.constant 0 : index
    %1119 = vector.load %arg4[%c0_393, %c2_394, %c1_395, %c0_396, %c0_397] : memref<1x3x9x2x128xf32, #tpu.memory_space<vmem>>, vector<1x1x1x2x128xf32>
    %1120 = vector.shape_cast %1119 : vector<1x1x1x2x128xf32> to vector<2x128xf32>
    %c0_398 = arith.constant 0 : index
    %c2_399 = arith.constant 2 : index
    %c2_400 = arith.constant 2 : index
    %c0_401 = arith.constant 0 : index
    %c0_402 = arith.constant 0 : index
    %1121 = vector.load %arg4[%c0_398, %c2_399, %c2_400, %c0_401, %c0_402] : memref<1x3x9x2x128xf32, #tpu.memory_space<vmem>>, vector<1x1x1x2x128xf32>
    %1122 = vector.shape_cast %1121 : vector<1x1x1x2x128xf32> to vector<2x128xf32>
    %c0_403 = arith.constant 0 : index
    %c2_404 = arith.constant 2 : index
    %c3_405 = arith.constant 3 : index
    %c0_406 = arith.constant 0 : index
    %c0_407 = arith.constant 0 : index
    %1123 = vector.load %arg4[%c0_403, %c2_404, %c3_405, %c0_406, %c0_407] : memref<1x3x9x2x128xf32, #tpu.memory_space<vmem>>, vector<1x1x1x2x128xf32>
    %1124 = vector.shape_cast %1123 : vector<1x1x1x2x128xf32> to vector<2x128xf32>
    %c0_408 = arith.constant 0 : index
    %c2_409 = arith.constant 2 : index
    %c4_410 = arith.constant 4 : index
    %c0_411 = arith.constant 0 : index
    %c0_412 = arith.constant 0 : index
    %1125 = vector.load %arg4[%c0_408, %c2_409, %c4_410, %c0_411, %c0_412] : memref<1x3x9x2x128xf32, #tpu.memory_space<vmem>>, vector<1x1x1x2x128xf32>
    %1126 = vector.shape_cast %1125 : vector<1x1x1x2x128xf32> to vector<2x128xf32>
    %cst_413 = arith.constant 1.000000e+00 : f32
    %1127 = vector.broadcast %cst_413 : f32 to vector<2x128xf32>
    %1128 = arith.cmpf oeq, %1126, %1127 : vector<2x128xf32>
    %1129 = arith.extui %1128 : vector<2x128xi1> to vector<2x128xi32>
    %1130 = arith.sitofp %1129 : vector<2x128xi32> to vector<2x128xf32>
    %c0_414 = arith.constant 0 : index
    %c2_415 = arith.constant 2 : index
    %c5_416 = arith.constant 5 : index
    %c0_417 = arith.constant 0 : index
    %c0_418 = arith.constant 0 : index
    %1131 = vector.load %arg4[%c0_414, %c2_415, %c5_416, %c0_417, %c0_418] : memref<1x3x9x2x128xf32, #tpu.memory_space<vmem>>, vector<1x1x4x2x128xf32>
    %1132 = vector.shape_cast %1131 : vector<1x1x4x2x128xf32> to vector<4x2x128xf32>
    %1133 = vector.shape_cast %1130 : vector<2x128xf32> to vector<1x2x128xf32>
    %cst_419 = arith.constant dense<0.000000e+00> : vector<1xf32>
    %1134 = vector.multi_reduction <add>, %1133, %cst_419 [1, 2] : vector<1x2x128xf32> to vector<1xf32>
    %1135 = vector.shape_cast %1134 : vector<1xf32> to vector<1x1x1xf32>
    %1136 = vector.extract %1135[0, 0, 0] : f32 from vector<1x1x1xf32>
    %1137 = arith.addf %783, %1136 : f32
    %cst_420 = arith.constant 5.000000e-01 : f32
    %1138 = vector.broadcast %cst_420 : f32 to vector<2x128xf32>
    %1139 = arith.mulf %1138, %1122 : vector<2x128xf32>
    %1140 = arith.subf %1118, %1139 : vector<2x128xf32>
    %cst_421 = arith.constant 5.000000e-01 : f32
    %1141 = vector.broadcast %cst_421 : f32 to vector<2x128xf32>
    %1142 = arith.mulf %1141, %1122 : vector<2x128xf32>
    %1143 = arith.addf %1118, %1142 : vector<2x128xf32>
    %cst_422 = arith.constant 5.000000e-01 : f32
    %1144 = vector.broadcast %cst_422 : f32 to vector<2x128xf32>
    %1145 = arith.mulf %1144, %1124 : vector<2x128xf32>
    %1146 = arith.subf %1120, %1145 : vector<2x128xf32>
    %cst_423 = arith.constant 5.000000e-01 : f32
    %1147 = vector.broadcast %cst_423 : f32 to vector<2x128xf32>
    %1148 = arith.mulf %1147, %1124 : vector<2x128xf32>
    %1149 = arith.addf %1120, %1148 : vector<2x128xf32>
    %1150 = arith.minimumf %928, %1143 : vector<2x128xf32>
    %1151 = arith.maximumf %925, %1140 : vector<2x128xf32>
    %1152 = arith.subf %1150, %1151 : vector<2x128xf32>
    %cst_424 = arith.constant 0.000000e+00 : f32
    %1153 = vector.broadcast %cst_424 : f32 to vector<2x128xf32>
    %1154 = arith.maximumf %1152, %1153 : vector<2x128xf32>
    %1155 = arith.minimumf %934, %1149 : vector<2x128xf32>
    %1156 = arith.maximumf %931, %1146 : vector<2x128xf32>
    %1157 = arith.subf %1155, %1156 : vector<2x128xf32>
    %cst_425 = arith.constant 0.000000e+00 : f32
    %1158 = vector.broadcast %cst_425 : f32 to vector<2x128xf32>
    %1159 = arith.maximumf %1157, %1158 : vector<2x128xf32>
    %1160 = arith.mulf %1154, %1159 : vector<2x128xf32>
    %1161 = arith.mulf %1122, %1124 : vector<2x128xf32>
    %1162 = arith.addf %935, %1161 : vector<2x128xf32>
    %1163 = arith.subf %1162, %1160 : vector<2x128xf32>
    %1164 = tpu.reciprocal %1163 {approx = true} : vector<2x128xf32> -> vector<2x128xf32>
    %1165 = arith.mulf %1160, %1164 : vector<2x128xf32>
    %1166 = arith.maximumf %928, %1143 : vector<2x128xf32>
    %1167 = arith.minimumf %925, %1140 : vector<2x128xf32>
    %1168 = arith.subf %1166, %1167 : vector<2x128xf32>
    %cst_426 = arith.constant 0.000000e+00 : f32
    %1169 = vector.broadcast %cst_426 : f32 to vector<2x128xf32>
    %1170 = arith.maximumf %1168, %1169 : vector<2x128xf32>
    %1171 = arith.maximumf %934, %1149 : vector<2x128xf32>
    %1172 = arith.minimumf %931, %1146 : vector<2x128xf32>
    %1173 = arith.subf %1171, %1172 : vector<2x128xf32>
    %cst_427 = arith.constant 0.000000e+00 : f32
    %1174 = vector.broadcast %cst_427 : f32 to vector<2x128xf32>
    %1175 = arith.maximumf %1173, %1174 : vector<2x128xf32>
    %1176 = arith.mulf %1170, %1175 : vector<2x128xf32>
    %1177 = arith.subf %1176, %1163 : vector<2x128xf32>
    %1178 = tpu.reciprocal %1176 {approx = true} : vector<2x128xf32> -> vector<2x128xf32>
    %1179 = arith.mulf %1177, %1178 : vector<2x128xf32>
    %1180 = arith.subf %1165, %1179 : vector<2x128xf32>
    %cst_428 = arith.constant 0.000000e+00 : f32
    %1181 = vector.broadcast %cst_428 : f32 to vector<2x128xf32>
    %1182 = arith.cmpf ogt, %1130, %1181 : vector<2x128xf32>
    %cst_429 = arith.constant 1.000000e+00 : f32
    %1183 = vector.broadcast %cst_429 : f32 to vector<2x128xf32>
    %1184 = arith.subf %1183, %1180 : vector<2x128xf32>
    %cst_430 = arith.constant 0.000000e+00 : f32
    %1185 = vector.broadcast %cst_430 : f32 to vector<2x128xf32>
    %1186 = arith.select %1182, %1184, %1185 : vector<2x128xi1>, vector<2x128xf32>
    %1187 = vector.shape_cast %1186 : vector<2x128xf32> to vector<1x2x128xf32>
    %cst_431 = arith.constant dense<0.000000e+00> : vector<1xf32>
    %1188 = vector.multi_reduction <add>, %1187, %cst_431 [1, 2] : vector<1x2x128xf32> to vector<1xf32>
    %1189 = vector.shape_cast %1188 : vector<1xf32> to vector<1x1x1xf32>
    %1190 = vector.extract %1189[0, 0, 0] : f32 from vector<1x1x1xf32>
    %1191 = arith.addf %837, %1190 : f32
    %cst_432 = arith.constant 0.000000e+00 : f32
    %1192 = vector.broadcast %cst_432 : f32 to vector<4x2x128xf32>
    %1193 = arith.maximumf %920, %1192 : vector<4x2x128xf32>
    %1194 = arith.mulf %920, %1132 : vector<4x2x128xf32>
    %1195 = arith.subf %1193, %1194 : vector<4x2x128xf32>
    %1196 = math.absf %920 : vector<4x2x128xf32>
    %cst_433 = arith.constant 0.000000e+00 : f32
    %1197 = vector.broadcast %cst_433 : f32 to vector<4x2x128xf32>
    %1198 = arith.subf %1197, %1196 : vector<4x2x128xf32>
    %1199 = math.exp %1198 : vector<4x2x128xf32>
    %cst_434 = arith.constant 1.000000e+00 : f32
    %1200 = vector.broadcast %cst_434 : f32 to vector<4x2x128xf32>
    %1201 = arith.addf %1200, %1199 : vector<4x2x128xf32>
    %1202 = math.log %1201 : vector<4x2x128xf32>
    %1203 = arith.addf %1195, %1202 : vector<4x2x128xf32>
    %1204 = vector.shape_cast %1130 : vector<2x128xf32> to vector<1x2x128xf32>
    %1205 = vector.broadcast %1204 : vector<1x2x128xf32> to vector<4x2x128xf32>
    %1206 = arith.mulf %1203, %1205 : vector<4x2x128xf32>
    %1207 = vector.shape_cast %1206 : vector<4x2x128xf32> to vector<1x4x2x128xf32>
    %cst_435 = arith.constant dense<0.000000e+00> : vector<1xf32>
    %1208 = vector.multi_reduction <add>, %1207, %cst_435 [1, 2, 3] : vector<1x4x2x128xf32> to vector<1xf32>
    %1209 = vector.shape_cast %1208 : vector<1xf32> to vector<1x1x1x1xf32>
    %1210 = vector.extract %1209[0, 0, 0, 0] : f32 from vector<1x1x1x1xf32>
    %1211 = arith.addf %857, %1210 : f32
    %cst_436 = arith.constant 0.000000e+00 : f32
    %1212 = vector.broadcast %cst_436 : f32 to vector<2x128xf32>
    %1213 = arith.maximumf %918, %1212 : vector<2x128xf32>
    %1214 = arith.mulf %918, %1130 : vector<2x128xf32>
    %1215 = arith.subf %1213, %1214 : vector<2x128xf32>
    %1216 = math.absf %918 : vector<2x128xf32>
    %cst_437 = arith.constant 0.000000e+00 : f32
    %1217 = vector.broadcast %cst_437 : f32 to vector<2x128xf32>
    %1218 = arith.subf %1217, %1216 : vector<2x128xf32>
    %1219 = math.exp %1218 : vector<2x128xf32>
    %cst_438 = arith.constant 1.000000e+00 : f32
    %1220 = vector.broadcast %cst_438 : f32 to vector<2x128xf32>
    %1221 = arith.addf %1220, %1219 : vector<2x128xf32>
    %1222 = math.log %1221 : vector<2x128xf32>
    %1223 = arith.addf %1215, %1222 : vector<2x128xf32>
    %cst_439 = arith.constant 0.000000e+00 : f32
    %1224 = vector.broadcast %cst_439 : f32 to vector<2x128xf32>
    %1225 = arith.cmpf ogt, %1116, %1224 : vector<2x128xf32>
    %cst_440 = arith.constant 0.000000e+00 : f32
    %1226 = vector.broadcast %cst_440 : f32 to vector<2x128xf32>
    %1227 = arith.cmpf ogt, %1130, %1226 : vector<2x128xf32>
    %1228 = arith.ori %1225, %1227 : vector<2x128xi1>
    %cst_441 = arith.constant 1.000000e+00 : f32
    %cst_442 = arith.constant 0.000000e+00 : f32
    %1229 = vector.broadcast %cst_441 : f32 to vector<2x128xf32>
    %1230 = vector.broadcast %cst_442 : f32 to vector<2x128xf32>
    %1231 = arith.select %1228, %1229, %1230 : vector<2x128xi1>, vector<2x128xf32>
    %1232 = arith.mulf %1223, %1231 : vector<2x128xf32>
    %1233 = vector.shape_cast %1232 : vector<2x128xf32> to vector<1x2x128xf32>
    %cst_443 = arith.constant dense<0.000000e+00> : vector<1xf32>
    %1234 = vector.multi_reduction <add>, %1233, %cst_443 [1, 2] : vector<1x2x128xf32> to vector<1xf32>
    %1235 = vector.shape_cast %1234 : vector<1xf32> to vector<1x1x1xf32>
    %1236 = vector.extract %1235[0, 0, 0] : f32 from vector<1x1x1xf32>
    %1237 = arith.addf %883, %1236 : f32
    %1238 = vector.shape_cast %1231 : vector<2x128xf32> to vector<1x2x128xf32>
    %cst_444 = arith.constant dense<0.000000e+00> : vector<1xf32>
    %1239 = vector.multi_reduction <add>, %1238, %cst_444 [1, 2] : vector<1x2x128xf32> to vector<1xf32>
    %1240 = vector.shape_cast %1239 : vector<1xf32> to vector<1x1x1xf32>
    %1241 = vector.extract %1240[0, 0, 0] : f32 from vector<1x1x1xf32>
    %1242 = arith.addf %888, %1241 : f32
    %1243 = tpu.iota {dimensions = array<i32: 0>} : vector<8x128xi32>
    %c0_i32_445 = arith.constant 0 : i32
    %1244 = vector.broadcast %c0_i32_445 : i32 to vector<8x128xi32>
    %1245 = arith.cmpi eq, %1243, %1244 : vector<8x128xi32>
    %cst_446 = arith.constant 0.000000e+00 : f32
    %1246 = vector.broadcast %1191 : f32 to vector<8x128xf32>
    %1247 = vector.broadcast %cst_446 : f32 to vector<8x128xf32>
    %1248 = arith.select %1245, %1246, %1247 : vector<8x128xi1>, vector<8x128xf32>
    %c1_i32_447 = arith.constant 1 : i32
    %1249 = vector.broadcast %c1_i32_447 : i32 to vector<8x128xi32>
    %1250 = arith.cmpi eq, %1243, %1249 : vector<8x128xi32>
    %cst_448 = arith.constant 0.000000e+00 : f32
    %1251 = vector.broadcast %1137 : f32 to vector<8x128xf32>
    %1252 = vector.broadcast %cst_448 : f32 to vector<8x128xf32>
    %1253 = arith.select %1250, %1251, %1252 : vector<8x128xi1>, vector<8x128xf32>
    %1254 = arith.addf %1248, %1253 : vector<8x128xf32>
    %c2_i32_449 = arith.constant 2 : i32
    %1255 = vector.broadcast %c2_i32_449 : i32 to vector<8x128xi32>
    %1256 = arith.cmpi eq, %1243, %1255 : vector<8x128xi32>
    %cst_450 = arith.constant 0.000000e+00 : f32
    %1257 = vector.broadcast %1211 : f32 to vector<8x128xf32>
    %1258 = vector.broadcast %cst_450 : f32 to vector<8x128xf32>
    %1259 = arith.select %1256, %1257, %1258 : vector<8x128xi1>, vector<8x128xf32>
    %1260 = arith.addf %1254, %1259 : vector<8x128xf32>
    %c3_i32_451 = arith.constant 3 : i32
    %1261 = vector.broadcast %c3_i32_451 : i32 to vector<8x128xi32>
    %1262 = arith.cmpi eq, %1243, %1261 : vector<8x128xi32>
    %cst_452 = arith.constant 0.000000e+00 : f32
    %1263 = vector.broadcast %1237 : f32 to vector<8x128xf32>
    %1264 = vector.broadcast %cst_452 : f32 to vector<8x128xf32>
    %1265 = arith.select %1262, %1263, %1264 : vector<8x128xi1>, vector<8x128xf32>
    %1266 = arith.addf %1260, %1265 : vector<8x128xf32>
    %c4_i32_453 = arith.constant 4 : i32
    %1267 = vector.broadcast %c4_i32_453 : i32 to vector<8x128xi32>
    %1268 = arith.cmpi eq, %1243, %1267 : vector<8x128xi32>
    %cst_454 = arith.constant 0.000000e+00 : f32
    %1269 = vector.broadcast %1242 : f32 to vector<8x128xf32>
    %1270 = vector.broadcast %cst_454 : f32 to vector<8x128xf32>
    %1271 = arith.select %1268, %1269, %1270 : vector<8x128xi1>, vector<8x128xf32>
    %1272 = arith.addf %1266, %1271 : vector<8x128xf32>
    %c0_455 = arith.constant 0 : index
    %c0_456 = arith.constant 0 : index
    %c0_457 = arith.constant 0 : index
    %1273 = vector.load %arg7[%c0_455, %c0_456, %c0_457] : memref<1x8x128xf32, #tpu.memory_space<vmem>>, vector<1x8x128xf32>
    %1274 = vector.shape_cast %1273 : vector<1x8x128xf32> to vector<8x128xf32>
    %1275 = vector.shape_cast %1272 : vector<8x128xf32> to vector<1x8x128xf32>
    tpu.vector_store %arg7[%c0_455, %c0_456, %c0_457], %1275 {strides = array<i32>} : memref<1x8x128xf32, #tpu.memory_space<vmem>>, vector<1x8x128xf32>,
    return
  }
  func.func @transform_0(%arg0: i32) -> i32 {
    %c0_i32 = arith.constant 0 : i32
    %c0_i32_0 = arith.constant 0 : i32
    return %c0_i32 : i32
  }
  func.func @transform_1(%arg0: i32) -> i32 {
    %c0_i32 = arith.constant 0 : i32
    %c0_i32_0 = arith.constant 0 : i32
    return %c0_i32 : i32
  }
  func.func @transform_2(%arg0: i32) -> (i32, i32, i32, i32, i32) {
    %c0_i32 = arith.constant 0 : i32
    %c0_i32_0 = arith.constant 0 : i32
    %c0_i32_1 = arith.constant 0 : i32
    %c0_i32_2 = arith.constant 0 : i32
    %c0_i32_3 = arith.constant 0 : i32
    return %arg0, %c0_i32, %c0_i32_0, %c0_i32_1, %c0_i32_2 : i32, i32, i32, i32, i32
  }
  func.func @transform_3(%arg0: i32) -> (i32, i32, i32, i32, i32) {
    %c0_i32 = arith.constant 0 : i32
    %c0_i32_0 = arith.constant 0 : i32
    %c0_i32_1 = arith.constant 0 : i32
    %c0_i32_2 = arith.constant 0 : i32
    %c0_i32_3 = arith.constant 0 : i32
    return %arg0, %c0_i32, %c0_i32_0, %c0_i32_1, %c0_i32_2 : i32, i32, i32, i32, i32
  }
  func.func @transform_4(%arg0: i32) -> (i32, i32, i32, i32) {
    %c0_i32 = arith.constant 0 : i32
    %c0_i32_0 = arith.constant 0 : i32
    %c0_i32_1 = arith.constant 0 : i32
    %c0_i32_2 = arith.constant 0 : i32
    return %arg0, %c0_i32, %c0_i32_0, %c0_i32_1 : i32, i32, i32, i32
  }
  func.func @transform_5(%arg0: i32) -> (i32, i32, i32) {
    %c0_i32 = arith.constant 0 : i32
    %c0_i32_0 = arith.constant 0 : i32
    %c0_i32_1 = arith.constant 0 : i32
    %c0_i32_2 = arith.constant 0 : i32
    return %c0_i32, %c0_i32_0, %c0_i32_1 : i32, i32, i32
  }
  func.func @transform_6(%arg0: i32) -> (i32, i32, i32) {
    %c0_i32 = arith.constant 0 : i32
    %c0_i32_0 = arith.constant 0 : i32
    %c0_i32_1 = arith.constant 0 : i32
    return %arg0, %c0_i32, %c0_i32_0 : i32, i32, i32
  }
}

</mosaic_0001>

<bundles_post_ra>
// kernel: run.1
= control target key start
LH: loop header
LB: loop body
LE: loop exit
PB: predicated region body
PF: predicated region fallthrough
CT: control target
= control target key end

     0   :  { %s3140_s0 = inlined_call_operand.vmem [shape: f32[64], index: 0, kind: input, shape index: {}]   ;;  %s3141_s1 = inlined_call_operand.vmem [shape: f32[6], index: 1, kind: input, shape index: {}]   ;;  %s3142_s2 = inlined_call_operand.vmem [shape: f32[2,3,9,2,128], index: 2, kind: input, shape index: {}]   ;;  %s3143_s3 = inlined_call_operand.vmem [shape: f32[2,3,9,2,128], index: 3, kind: input, shape index: {}]   ;;  %s3144_s4 = inlined_call_operand.vmem [shape: f32[2,3,2,128], index: 4, kind: input, shape index: {}]   ;;  %s3145_s5 = inlined_call_operand.vmem [shape: f32[2,2,128], index: 5, kind: input, shape index: {}]   ;;  %s3146_s6 = inlined_call_operand.vmem [shape: f32[2,8,128], index: 6, kind: output, shape index: {}]  }
   0x1   :  { %3205 = sst [smem:[#allocation47_spill]] %s3140_s0 }
   0x2   :  { %3206 = sst [smem:[#allocation48_spill]] %s3141_s1 }
   0x3   :  { %3207 = sst [smem:[#allocation49_spill]] %s3142_s2 }
   0x4   :  { %3208 = sst [smem:[#allocation50_spill]] %s3143_s3 }
   0x5   :  { %3209 = sst [smem:[#allocation51_spill]] %s3144_s4 }
   0x6   :  { %3210 = sst [smem:[#allocation52_spill]] %s3145_s5 }
   0x7   :  { %3211 = sst [smem:[#allocation53_spill]] %s3146_s6 }
   0x8   :  { %11 = vsyncpa [#allocation3], 0 }
   0x9   :  { %12 = vsyncpa [#allocation5], 0  ;;  %s1940_s21 = smov 0  }
   0xa LB: > { %3212 = sst [smem:[#allocation8_spill]] %s1900_s21  ;;  %s1946_s22 = sadd.s32 4294967295, %s1900_s21   ;;  %s1900_s21 = sphi %s1940_s21, %s18_s21  }
   0xb   : > { %p1609_p0 = scmp.ge.s32.totalorder %s1900_s21, 1  ;;  %p190_p1 = scmp.lt.s32.totalorder %s1900_s21, 3 }
   0xc   : > { %s3213_s0 = sld [smem:[#allocation47_spill]]  ;;  %p1733_p3 = scmp.eq.s32.totalorder %s1946_s22, 0 }
   0xd   : > { %p191_p2 = pnand %p1609_p0, %p190_p1  ;;  %s3214_s1 = sld [smem:[#allocation48_spill]] }
   0xe   : > { %s1902_s29 = smov [#allocation2]   ;;  %s1903_s30 = smov [#allocation4]  }
   0xf   : > { %p1726_p4 = pneg %p191_p2 }
  0x11   : > { %p1727_p5 = pnand %p1733_p3, %p1726_p4  ;;  %252 = sbr.rel (%p191_p2) target bundleno = 453 (0x1c5), region = 44 }
  0x12   : > { %s202_s25 = sshll.u32 %s3213_s0, 4  ;;  %s203_s25 = int_to_ptr.vmem [resolvable:$true] %s202_s25 }
  0x13   : > { %s212_s28 = sshll.u32 %s3214_s1, 4  ;;  %s213_s28 = int_to_ptr.vmem [resolvable:$true] %s212_s28 }
  0x14   : > { %1729 = dma.vmem_to_smem (!%p1727_p5), %s203_s25, 16, %s1902_s29, [#allocation3]  }
  0x15   : > { %1732 = dma.vmem_to_smem (!%p1727_p5), %s213_s28, 16, %s1903_s30, [#allocation5]  }
  0x16   : > { %1891 = dma.done.wait (%p1733_p3), [#allocation3], 16  }
  0x17   : > { %1893 = vsyncadd (%p1733_p3), [#allocation3], 4294967280 }
  0x18   : > { %1895 = dma.done.wait (%p1733_p3), [#allocation5], 16  }
  0x19   : > { %1897 = vsyncadd (%p1733_p3), [#allocation5], 4294967280 }
  0x1a   : > { %264 = sfence }
  0x1b   : > { %p298_p6 = scmp.lt.s32.totalorder %s1946_s22, 1  ;;  %s3216_s3 = sld [smem:[#allocation50_spill]]  ;;  %vm653_vm0 = vcmask 1041408   ;;  %v3157_v2 = vmov 0.0  }
  0x1c   : > { %s3218_s2 = sld [smem:[#allocation49_spill]]  ;;  %s2009_s15 = sshll.u32 %s1946_s22, 5 }
  0x1d   : > { %s1969_s7 = scalar_select %p298_p6, %s1946_s22, 1 }
  0x1e   : > { %s2017_s16 = sld [smem:[#allocation4]]  ;;  %s324_s17 = sadd.s32 2, %s2009_s15 }
  0x1f   : > { %3215 = sst [smem:[#allocation9_spill]] %s1969_s7  ;;  %s1686_s8 = smul.u32 54, %s1969_s7 }
  0x20   : > { %s2034_s18 = sld [smem:[#allocation2 + %s324_s17]]  ;;  %s322_s20 = sadd.s32 1, %s2009_s15 }
  0x21   : > { %s1975_s11 = scalar_lea.vmem %s3216_s3, %s1686_s8  ;;  %s2037_s19 = sld [smem:[#allocation2 + %s2009_s15]] }
  0x22   : > { %3217 = sst [smem:[#allocation10_spill]] %s1975_s11  ;;  %s1980_s14 = scalar_lea.vmem %s3218_s2, %s1686_s8  ;;  %v1678_v0 = vld [vmem:[%s1975_s11 + $0x2c] sm:$0x3]  ;;  %v1634_v1 = vld [vmem:[%s1975_s11 + $0x8] sm:$0x3] }
  0x23   : > { %3219 = sst [smem:[#allocation11_spill]] %s1980_s14  ;;  %vm1318_vm1 = vcmp.eq.f32.partialorder %v1678_v0, 1.0  ;;  %vm645_vm2 = vcmp.eq.f32.partialorder %v1634_v1, 1.0  ;;  %v1991_v5 = vld [vmem:[%s1980_s14 + $0xa] sm:$0x3]  ;;  %s326_s22 = sadd.s32 3, %s2009_s15 }
  0x24   : > { %v1985_v3 = vsel %vm1318_vm1, 1.0, %v3157_v2  ;;  %v1988_v4 = vsel %vm645_vm2, 1.0, %v3157_v2  ;;  %v1994_v6 = vld [vmem:[%s1980_s14 + $0xc] sm:$0x3]  ;;  %v2001_v9 = vld [vmem:[%s1980_s14 + $0xe] sm:$0x3] }
  0x25   : > { %3220 = vst [vmem:[#allocation12_spill] sm:$0xff] %v1985_v3  ;;  %v1326_v7 = vsel %vm653_vm0, %v1985_v3, 0.0  ;;  %v654_v8 = vsel %vm653_vm0, %v1988_v4, 0.0  ;;  %v2004_v10 = vld [vmem:[%s1980_s14 + $0x10] sm:$0x3]  ;;  %v712_v37 = vmax.f32 %v1991_v5, 0.0 }
  0x26   : > { %1327 = vadd.xlane.f32.xlu1 %v1326_v7  ;;  %655 = vadd.xlane.f32.xlu0 %v654_v8  ;;  %v724_v11 = vand.u32 2147483647, %v1991_v5  ;;  %v1656_v12 = vld [vmem:[%s1975_s11 + $0x1a] sm:$0x3]  ;;  %v725_v13 = vand.u32 2147483647, %v1994_v6 }
  0x27   : > { %v726_v14 = vand.u32 2147483647, %v2001_v9  ;;  %v727_v15 = vand.u32 2147483647, %v2004_v10  ;;  %vm982_vm3 = vcmp.eq.f32.partialorder %v1656_v12, 1.0  ;;  %v713_v38 = vmax.f32 %v1994_v6, 0.0 }
  0x28   : > { %v728_v16 = vsub.f32 0.0, %v724_v11  ;;  %v729_v17 = vsub.f32 0.0, %v725_v13  ;;  %v2015_v21 = vsel %vm982_vm3, 1.0, %v3157_v2  ;;  %v2023_v26 = vld [vmem:[%s1980_s14 + $0x1c] sm:$0x3]  ;;  %v714_v42 = vmax.f32 %v2001_v9, 0.0 }
  0x29   : > { %v730_v18 = vsub.f32 0.0, %v726_v14  ;;  %v731_v19 = vsub.f32 0.0, %v727_v15  ;;  %3221 = vst [vmem:[#allocation13_spill] sm:$0xff] %v2015_v21  ;;  %v990_v25 = vsel %vm653_vm0, %v2015_v21, 0.0  ;;  %v2026_v27 = vld [vmem:[%s1980_s14 + $0x1e] sm:$0x3] }
  0x2a   : > { %v732_v20 = vmul.f32 1.442695, %v728_v16  ;;  %v734_v22 = vmul.f32 1.442695, %v729_v17  ;;  %991 = vadd.xlane.f32.xlu2 %v990_v25  ;;  %v2029_v28 = vld [vmem:[%s1980_s14 + $0x20] sm:$0x3] }
  0x2b   : > { %v736_v23 = vmul.f32 1.442695, %v730_v18  ;;  %v738_v24 = vmul.f32 1.442695, %v731_v19  ;;  %v2032_v29 = vld [vmem:[%s1980_s14 + $0x22] sm:$0x3] }
  0x2c   : > { %1748 = vpow2.f32 %v732_v20  ;;  %v1060_v30 = vand.u32 2147483647, %v2023_v26  ;;  %v1061_v31 = vand.u32 2147483647, %v2026_v27  ;;  %v1624_v32 = vld [vmem:[%s1980_s14 + $0x4] sm:$0x3] }
  0x2d   : > { %1750 = vpow2.f32 %v734_v22  ;;  %v1636_v33 = vld [vmem:[%s1975_s11 + $0xa] sm:$0x3]  ;;  %v1062_v34 = vand.u32 2147483647, %v2029_v28  ;;  %v1063_v35 = vand.u32 2147483647, %v2032_v29 }
  0x2e   : > { %1752 = vpow2.f32 %v736_v23  ;;  %v1637_v36 = vld [vmem:[%s1975_s11 + $0xc] sm:$0x3]  ;;  %v1064_v39 = vsub.f32 0.0, %v1060_v30  ;;  %v1638_v41 = vld [vmem:[%s1975_s11 + $0xe] sm:$0x3]  ;;  %v1065_v43 = vsub.f32 0.0, %v1061_v31  ;;  %v716_v48 = vmul.f32 %v1636_v33, %v1991_v5 }
  0x2f   : > { %1754 = vpow2.f32 %v738_v24  ;;  %v442_v44 = vld [vmem:[%s1980_s14] sm:$0x3]  ;;  %v457_v45 = vmul.f32 1.442695, %v1624_v32  ;;  %v715_v47 = vmax.f32 %v2004_v10, 0.0  ;;  %v1066_v50 = vsub.f32 0.0, %v1062_v34 }
  0x30   : > { %v1623_v51 = vld [vmem:[%s1980_s14 + $0x2] sm:$0x3]  ;;  %v1639_v53 = vld [vmem:[%s1975_s11 + $0x10] sm:$0x3]  ;;  %v717_v54 = vmul.f32 %v1637_v36, %v1994_v6  ;;  %v1067_v56 = vsub.f32 0.0, %v1063_v35  ;;  %s2058_s23 = sld [smem:[#allocation2 + %s326_s22]]  ;;  %v718_v0 = vmul.f32 %v1638_v41, %v2001_v9  ;;  %v720_v8 = vsub.f32 %v712_v37, %v716_v48 }
  0x31   : > { %1756 = vpow2.f32 %v457_v45  ;;  %v1068_v59 = vmul.f32 1.442695, %v1064_v39  ;;  %v443_v60 = vsub.f32 0.0, %v442_v44  ;;  %s2060_s24 = sld [smem:[#allocation2 + %s322_s20]]  ;;  %s328_s25 = smul.f32 0.5, %s2034_s18  ;;  %v450_v63 = vsub.f32 0.0, %v1623_v51 }
  0x32   : > { %v1749_v40 = vpop.eup %1748  ;;  %v1070_v62 = vmul.f32 1.442695, %v1065_v43  ;;  %v719_v1 = vmul.f32 %v1639_v53, %v2004_v10  ;;  %v1072_v5 = vmul.f32 1.442695, %v1066_v50  ;;  %s2065_s26 = sld [smem:[#allocation4 + $0x1]]  ;;  %s335_s27 = sadd.s32 4, %s2009_s15  ;;  %v721_v12 = vsub.f32 %v713_v38, %v717_v54 }
  0x33   : > { %v1751_v46 = vpop.eup %1750  ;;  %v740_v49 = vadd.f32 1.0, %v1749_v40  ;;  %v1074_v6 = vmul.f32 1.442695, %v1067_v56  ;;  %v1625_v7 = vld [vmem:[%s1980_s14 + $0x6] sm:$0x3]  ;;  %s2070_s28 = ssub.f32 %s2037_s19, %s328_s25  ;;  %s339_s29 = sadd.s32 6, %s2009_s15  ;;  %v722_v16 = vsub.f32 %v714_v42, %v718_v0  ;;  %v459_v34 = vstv %s2017_s16 }
  0x34   : > { %v1753_v52 = vpop.eup %1752  ;;  %v741_v55 = vadd.f32 1.0, %v1751_v46  ;;  %v1658_v11 = vld [vmem:[%s1975_s11 + $0x1c] sm:$0x3]  ;;  %v444_v9 = vmul.f32 1.442695, %v443_v60  ;;  %s2075_s30 = sadd.f32 %s328_s25, %s2037_s19  ;;  %s337_s8 = sadd.s32 5, %s2009_s15  ;;  %v723_v17 = vsub.f32 %v715_v47, %v719_v1 }
  0x35   : > { %v1755_v57 = vpop.eup %1754  ;;  %v742_v58 = vadd.f32 1.0, %v1753_v52  ;;  %1758 = vlog2.f32 %v740_v49  ;;  %v1048_v13 = vmax.f32 %v2023_v26, 0.0  ;;  %v451_v14 = vmul.f32 1.442695, %v450_v63  ;;  %s2082_s10 = sld [smem:[#allocation2 + %s335_s27]]  ;;  %s341_s13 = sadd.s32 7, %s2009_s15 }
  0x36   : > { %v743_v61 = vadd.f32 1.0, %v1755_v57  ;;  %1760 = vlog2.f32 %v741_v55  ;;  %s331_s9 = smul.f32 0.5, %s2058_s23  ;;  %v1659_v18 = vld [vmem:[%s1975_s11 + $0x1e] sm:$0x3]  ;;  %v463_v19 = vmul.f32 1.442695, %v1625_v7  ;;  %v2091_v25 = vmul.f32 %v1658_v11, %v2023_v26 }
  0x37   : > { %1762 = vlog2.f32 %v742_v58  ;;  %v2078_v10 = vpop.eup %1756  ;;  %s2085_s12 = sld [smem:[#allocation2 + %s339_s29]]  ;;  %v1660_v23 = vld [vmem:[%s1975_s11 + $0x20] sm:$0x3]  ;;  %v1049_v24 = vmax.f32 %v2026_v27, 0.0  ;;  %v1661_v32 = vld [vmem:[%s1975_s11 + $0x22] sm:$0x3]  ;;  %v1053_v42 = vmul.f32 %v1659_v18, %v2026_v27 }
  0x38   : > { %1764 = vlog2.f32 %v743_v61  ;;  %s2093_s17 = sld [smem:[#allocation2 + %s337_s8]]  ;;  %v1050_v33 = vmax.f32 %v2029_v28, 0.0  ;;  %s350_s20 = sadd.s32 8, %s2009_s15  ;;  %v1051_v38 = vmax.f32 %v2032_v29, 0.0  ;;  %v1054_v46 = vmul.f32 %v1660_v23, %v2029_v28  ;;  %v1632_v61 = vld [vmem:[%s1975_s11 + $0x4] sm:$0x3] }
  0x39   : > { %1766 = vpow2.f32 %v1068_v59  ;;  %s2101_s19 = ssub.f32 %s2060_s24, %s331_s9  ;;  %s354_s25 = sadd.s32 10, %s2009_s15  ;;  %v1055_v51 = vmul.f32 %v1661_v32, %v2032_v29  ;;  %v1633_v11 = vld [vmem:[%s1975_s11 + $0x6] sm:$0x3]  ;;  %vm698_vm4 = vcmp.gt.f32.partialorder %v1988_v4, 0.0 }
  0x3a   : > { %1768 = vpow2.f32 %v1070_v62  ;;  %s2105_s22 = sld [smem:[#allocation2 + %s341_s13]]  ;;  %s356_s29 = sadd.s32 11, %s2009_s15  ;;  %v680_v29 = vmul.f32 %v1633_v11, %v1632_v61 }
  0x3b   : > { %v1759_v15 = vpop.eup %1758  ;;  %1770 = vpow2.f32 %v1072_v5  ;;  %s2112_s27 = sadd.f32 %s331_s9, %s2060_s24  ;;  %s352_s13 = sadd.s32 9, %s2009_s15 }
  0x3c   : > { %v1761_v20 = vpop.eup %1760  ;;  %v745_v22 = vmul.f32 0.6931472, %v1759_v15  ;;  %1772 = vpow2.f32 %v1074_v6  ;;  %s2117_s8 = sld [smem:[#allocation2 + %s350_s20]]  ;;  %s365_s24 = sadd.s32 12, %s2009_s15  ;;  %v460_v15 = vmul.f32 %v2078_v10, %v459_v34  ;;  %v1058_v10 = vsub.f32 %v1050_v33, %v1054_v46 }
  0x3d   : > { %v1763_v30 = vpop.eup %1762  ;;  %v747_v31 = vmul.f32 0.6931472, %v1761_v20  ;;  %1774 = vpow2.f32 %v444_v9  ;;  %s2123_s9 = sld [smem:[#allocation2 + %s354_s25]]  ;;  %s367_s3 = sadd.s32 13, %s2009_s15 }
  0x3e   : > { %v1765_v35 = vpop.eup %1764  ;;  %v749_v36 = vmul.f32 0.6931472, %v1763_v30  ;;  %v752_v37 = vadd.f32 %v745_v22, %v720_v8  ;;  %1776 = vpow2.f32 %v451_v14  ;;  %s2127_s20 = sld [smem:[#allocation2 + %s356_s29]]  ;;  %s3222_s29 = smul.f32 0.5, %s2085_s12  ;;  %v465_v8 = vstv %s2065_s26 }
  0x3f   : > { %v1767_v39 = vpop.eup %1766  ;;  %v751_v40 = vmul.f32 0.6931472, %v1765_v35  ;;  %v753_v41 = vadd.f32 %v747_v31, %v721_v12  ;;  %1778 = vpow2.f32 %v463_v19  ;;  %s2132_s25 = sld [smem:[#allocation2 + %s352_s13]]  ;;  %v665_v12 = vmul.f32 0.5, %v1632_v61  ;;  %s369_s16 = sadd.s32 14, %s2009_s15 }
  0x40   : > { %v1769_v43 = vpop.eup %1768  ;;  %v754_v44 = vadd.f32 %v749_v36, %v722_v16  ;;  %v756_v45 = vmul.f32 %v1988_v4, %v752_v37  ;;  %v1076_v47 = vadd.f32 1.0, %v1767_v39  ;;  %s2139_s0 = ssub.f32 %s2082_s10, %s3222_s29  ;;  %s346_s1 = smul.f32 0.5, %s2105_s22  ;;  %v1056_v14 = vsub.f32 %v1048_v13, %v2091_v25  ;;  %v636_v16 = vld [vmem:[%s1975_s11] sm:$0x3]  ;;  %v1631_v25 = vld [vmem:[%s1975_s11 + $0x2] sm:$0x3] }
  0x41   : > { %v1771_v48 = vpop.eup %1770  ;;  %v755_v49 = vadd.f32 %v751_v40, %v723_v17  ;;  %v757_v50 = vmul.f32 %v1988_v4, %v753_v41  ;;  %v1077_v52 = vadd.f32 1.0, %v1769_v43  ;;  %s3223_s13 = smov %s3222_s29  ;;  %s2150_s29 = sld [smem:[#allocation2 + %s365_s24]]  ;;  %v1057_v19 = vsub.f32 %v1049_v24, %v1053_v42 }
  0x42   : > { %v1773_v53 = vpop.eup %1772  ;;  %v758_v54 = vmul.f32 %v1988_v4, %v754_v44  ;;  %v760_v55 = vsel %vm653_vm0, %v756_v45, 0.0  ;;  %v1078_v56 = vadd.f32 1.0, %v1771_v48  ;;  %1780 = vlog2.f32 %v1076_v47  ;;  %s2148_s2 = sadd.f32 %s3223_s13, %s2082_s10  ;;  %s380_s21 = sadd.s32 16, %s2009_s15 }
  0x43   : > { %v1775_v57 = vpop.eup %1774  ;;  %v759_v58 = vmul.f32 %v1988_v4, %v755_v49  ;;  %v761_v59 = vsel %vm653_vm0, %v757_v50, 0.0  ;;  %v1079_v60 = vadd.f32 1.0, %v1773_v53  ;;  %1782 = vlog2.f32 %v1077_v52  ;;  %s2161_s26 = ssub.f32 %s2093_s17, %s346_s1  ;;  %s358_s10 = smul.f32 0.5, %s2123_s9 }
  0x44   : > { %v1777_v62 = vpop.eup %1776  ;;  %v762_v63 = vadd.f32 %v761_v59, %v760_v55  ;;  %v763_v0 = vsel %vm653_vm0, %v758_v54, 0.0  ;;  %1784 = vlog2.f32 %v1078_v56  ;;  %v446_v1 = vadd.f32 1.0, %v1775_v57  ;;  %s2167_s24 = sadd.f32 %s346_s1, %s2093_s17  ;;  %s371_s17 = sadd.s32 15, %s2009_s15 }
  0x45   : > { %v1779_v5 = vpop.eup %1778  ;;  %v765_v6 = vsel %vm653_vm0, %v759_v58, 0.0  ;;  %1786 = vlog2.f32 %v1079_v60  ;;  %v453_v7 = vadd.f32 1.0, %v1777_v62  ;;  %v668_v22 = vmul.f32 0.5, %v1633_v11  ;;  %s2175_s13 = sld [smem:[#allocation2 + %s367_s3]]  ;;  %s3225_s4 = smul.f32 0.5, %s2127_s20 }
  0x46   : > { %v764_v9 = vadd.f32 %v763_v0, %v762_v63  ;;  %1788 = vrcp.f32 %v446_v1  ;;  %v466_v20 = vmul.f32 %v1779_v5, %v465_v8  ;;  %v1059_v13 = vsub.f32 %v1051_v38, %v1055_v51  ;;  %s3224_s5 = sld [smem:[#allocation52_spill]]  ;;  %s382_s7 = sadd.s32 17, %s2009_s15 }
  0x47   : > { %1790 = vrcp.f32 %v453_v7  ;;  %v2184_v31 = vsub.f32 %v636_v16, %v665_v12  ;;  %s2189_s3 = ssub.f32 %s2117_s8, %s358_s10  ;;  %v476_v36 = vmul.f32 0.5, %v460_v15  ;;  %v667_v37 = vadd.f32 %v665_v12, %v636_v16  ;;  %s397_s14 = sadd.s32 21, %s2009_s15 }
  0x48   : > { %v1781_v17 = vpop.eup %1780  ;;  %v766_v18 = vadd.f32 %v765_v6, %v764_v9  ;;  %v2182_v28 = vmul.f32 %v466_v20, %v460_v15  ;;  %s2200_s1 = sadd.f32 %s358_s10, %s2117_s8  ;;  %v479_v41 = vmul.f32 0.5, %v466_v20  ;;  %v669_v42 = vsub.f32 %v1631_v25, %v668_v22  ;;  %s384_s8 = sadd.s32 18, %s2009_s15 }
  0x49   : > { %v1783_v26 = vpop.eup %1782  ;;  %v1081_v23 = vmul.f32 0.6931472, %v1781_v17  ;;  %s2206_s11 = ssub.f32 %s2132_s25, %s3225_s4  ;;  %v670_v47 = vadd.f32 %v1631_v25, %v668_v22  ;;  %s3228_s10 = smul.f32 0.5, %s2127_s20  ;;  %v2267_v15 = vstv %s2075_s30  ;;  %v2270_v16 = vstv %s2070_s28 }
  0x4a   : > { %v1785_v27 = vpop.eup %1784  ;;  %767 = vadd.xlane.f32.xlu1 %v766_v18  ;;  %v1083_v24 = vmul.f32 0.6931472, %v1783_v26  ;;  %s2210_s6 = sld [smem:[#allocation2 + %s369_s16]]  ;;  %v2216_v51 = vadd.f32 %v680_v29, %v2182_v28  ;;  %s349_s30 = smul.f32 %s2105_s22, %s2085_s12 }
  0x4b   : > { %v1787_v32 = vpop.eup %1786  ;;  %v1085_v33 = vmul.f32 0.6931472, %v1785_v27  ;;  %v1088_v34 = vadd.f32 %v1081_v23, %v1056_v14  ;;  %3226 = sst [smem:[#allocation14_spill]] %s2206_s11  ;;  %v2295_v27 = vstv %s2101_s19 }
  0x4c   : > { %v2180_v30 = vld [vmem:[%s3224_s5] sm:$0x3]  ;;  %v2195_v35 = vld [vmem:[%s3224_s5 + $0x2] sm:$0x3]  ;;  %v1789_v38 = vpop.eup %1788  ;;  %v1087_v39 = vmul.f32 0.6931472, %v1787_v32  ;;  %v1089_v40 = vadd.f32 %v1083_v24, %v1057_v19  ;;  %s2230_s16 = sadd.f32 %s3228_s10, %s2132_s25  ;;  %v2298_v24 = vstv %s2148_s2 }
  0x4d   : > { %v1791_v43 = vpop.eup %1790  ;;  %v1090_v44 = vadd.f32 %v1085_v33, %v1058_v10  ;;  %v1092_v45 = vmul.f32 %v2015_v21, %v1088_v34  ;;  %v474_v46 = vadd.f32 %v1789_v38, %v2180_v30  ;;  %s2218_s4 = sld [smem:[#allocation2 + %s371_s17]]  ;;  %s386_s5 = sadd.s32 19, %s2009_s15  ;;  %v2325_v38 = vstv %s2167_s24 }
  0x4e   : > { %v1091_v48 = vadd.f32 %v1087_v39, %v1059_v13  ;;  %v1093_v49 = vmul.f32 %v2015_v21, %v1089_v40  ;;  %v475_v50 = vadd.f32 %v1791_v43, %v2195_v35  ;;  %3229 = sst [smem:[#allocation16_spill]] %s2230_s16  ;;  %s395_s10 = sadd.s32 20, %s2009_s15  ;;  %v2286_v13 = vstv %s2112_s27 }
  0x4f   : > { %v1094_v52 = vmul.f32 %v2015_v21, %v1090_v44  ;;  %v1096_v53 = vsel %vm653_vm0, %v1092_v45, 0.0  ;;  %v2223_v54 = vsub.f32 %v474_v46, %v476_v36  ;;  %v2225_v55 = vadd.f32 %v476_v36, %v474_v46  ;;  %s2239_s17 = sld [smem:[#allocation2 + %s380_s21]] }
  0x50   : > { %3227 = sst [smem:[#allocation15_spill]] %s2210_s6  ;;  %v1095_v56 = vmul.f32 %v2015_v21, %v1091_v48  ;;  %v1097_v57 = vsel %vm653_vm0, %v1093_v49, 0.0  ;;  %v2235_v58 = vsub.f32 %v475_v50, %v479_v41  ;;  %v2237_v59 = vadd.f32 %v479_v41, %v475_v50 }
  0x51   : > { %v1098_v60 = vadd.f32 %v1097_v57, %v1096_v53  ;;  %v1099_v61 = vsel %vm653_vm0, %v1094_v52, 0.0  ;;  %v671_v62 = vmin.f32 %v2225_v55, %v667_v37  ;;  %v672_v63 = vmax.f32 %v2223_v54, %v2184_v31  ;;  %s2246_s25 = sld [smem:[#allocation2 + %s384_s8]]  ;;  %s373_s8 = smul.f32 0.5, %s2210_s6 }
  0x52   : > { %v1101_v0 = vsel %vm653_vm0, %v1095_v56, 0.0  ;;  %v675_v1 = vmin.f32 %v2237_v59, %v670_v47  ;;  %v676_v5 = vmax.f32 %v2235_v58, %v669_v42  ;;  %v685_v6 = vmax.f32 %v2225_v55, %v667_v37  ;;  %s2253_s21 = sld [smem:[#allocation2 + %s386_s5]] }
  0x53   : > { %v1100_v7 = vadd.f32 %v1099_v61, %v1098_v60  ;;  %v673_v8 = vsub.f32 %v671_v62, %v672_v63  ;;  %v686_v11 = vmin.f32 %v2223_v54, %v2184_v31  ;;  %v689_v9 = vmax.f32 %v2237_v59, %v670_v47  ;;  %s2260_s11 = sld [smem:[#allocation2 + %s382_s7]]  ;;  %s376_s5 = smul.f32 0.5, %s2218_s4 }
  0x54   : > { %v677_v12 = vsub.f32 %v675_v1, %v676_v5  ;;  %v690_v14 = vmin.f32 %v2235_v58, %v669_v42  ;;  %s2264_s16 = sld [smem:[#allocation2 + %s395_s10]]  ;;  %s334_s7 = smul.f32 %s2058_s23, %s2034_s18  ;;  %v484_v20 = vmin.f32 %v2225_v55, %v2267_v15  ;;  %v486_v10 = vmax.f32 %v2223_v54, %v2270_v16 }
  0x55   : > { %v1102_v17 = vadd.f32 %v1101_v0, %v1100_v7  ;;  %v674_v18 = vmax.f32 %v673_v8, 0.0  ;;  %v687_v19 = vsub.f32 %v685_v6, %v686_v11  ;;  %s2274_s6 = sld [smem:[#allocation2 + %s397_s14]]  ;;  %v490_v25 = vmin.f32 %v2237_v59, %v2286_v13 }
  0x56   : > { %v678_v22 = vmax.f32 %v677_v12, 0.0  ;;  %v691_v26 = vsub.f32 %v689_v9, %v690_v14  ;;  %s2281_s28 = ssub.f32 %s2150_s29, %s373_s8  ;;  %v487_v32 = vsub.f32 %v484_v20, %v486_v10  ;;  %v492_v33 = vmax.f32 %v2235_v58, %v2295_v27 }
  0x57   : > { %1103 = vadd.xlane.f32.xlu1 %v1102_v17  ;;  %v688_v23 = vmax.f32 %v687_v19, 0.0  ;;  %s2289_s14 = sadd.f32 %s373_s8, %s2150_s29  ;;  %s388_s18 = smul.f32 0.5, %s2246_s25  ;;  %v2317_v34 = vstv %s334_s7  ;;  %v502_v36 = vmin.f32 %v2225_v55, %v2298_v24  ;;  %v2322_v37 = vstv %s2139_s0 }
  0x58   : > { %v2300_v31 = vmul.f32 %v678_v22, %v674_v18  ;;  %v692_v29 = vmax.f32 %v691_v26, 0.0  ;;  %s2305_s23 = ssub.f32 %s2175_s13, %s376_s5  ;;  %s3156_s27 = smul.f32 0.5, %s2253_s21  ;;  %v488_v41 = vmax.f32 %v487_v32, 0.0  ;;  %v493_v42 = vsub.f32 %v490_v25, %v492_v33 }
  0x59   : > { %s2315_s19 = sadd.f32 %s376_s5, %s2175_s13  ;;  %s399_s13 = sadd.s32 22, %s2009_s15  ;;  %v504_v43 = vmax.f32 %v2223_v54, %v2322_v37  ;;  %v508_v44 = vmin.f32 %v2237_v59, %v2325_v38  ;;  %v2346_v45 = vstv %s2161_s26  ;;  %v497_v47 = vadd.f32 %v2317_v34, %v2182_v28 }
  0x5a   : > { %v2329_v39 = vsub.f32 %v2216_v51, %v2300_v31  ;;  %v2331_v40 = vmul.f32 %v692_v29, %v688_v23  ;;  %s2334_s2 = ssub.f32 %s2239_s17, %s388_s18  ;;  %s401_s0 = sadd.s32 23, %s2009_s15  ;;  %v494_v46 = vmax.f32 %v493_v42, 0.0  ;;  %v510_v48 = vmax.f32 %v2235_v58, %v2346_v45 }
  0x5b   : > { %s2338_s10 = sadd.f32 %s388_s18, %s2239_s17  ;;  %s410_s8 = sadd.s32 24, %s2009_s15  ;;  %v505_v49 = vsub.f32 %v502_v36, %v504_v43  ;;  %v2366_v50 = vstv %s349_s30  ;;  %v2369_v51 = vstv %s2200_s1  ;;  %v2388_v61 = vstv %s2189_s3 }
  0x5c   : > { %1792 = vrcp.f32 %v2329_v39  ;;  %s2352_s24 = ssub.f32 %s2260_s11, %s3156_s27  ;;  %s412_s5 = sadd.s32 25, %s2009_s15  ;;  %3235 = vst [vmem:[#allocation18_spill] sm:$0xff] %v2369_v51  ;;  %v694_v52 = vsub.f32 %v2331_v40, %v2329_v39  ;;  %v2376_v53 = vmul.f32 %v494_v46, %v488_v41  ;;  %v511_v56 = vsub.f32 %v508_v44, %v510_v48 }
  0x5d   : > { %1794 = vrcp.f32 %v2331_v40  ;;  %s2360_s26 = sld [smem:[#allocation2 + %s399_s13]]  ;;  %v521_v57 = vmin.f32 %v2225_v55, %v2369_v51  ;;  %s3236_s12 = smul.f32 0.5, %s2253_s21  ;;  %v506_v60 = vmax.f32 %v505_v49, 0.0  ;;  %3237 = vst [vmem:[#allocation19_spill] sm:$0xff] %v2388_v61  ;;  %v515_v5 = vadd.f32 %v2366_v50, %v2182_v28 }
  0x5e   : > { %3230 = sst [smem:[#allocation17_spill]] %s2352_s24  ;;  %s414_s24 = sadd.s32 26, %s2009_s15  ;;  %v512_v1 = vmax.f32 %v511_v56, 0.0  ;;  %v523_v6 = vmax.f32 %v2223_v54, %v2388_v61  ;;  %v2420_v9 = vstv %s2289_s14  ;;  %v2423_v12 = vstv %s2281_s28 }
  0x5f   : > { %s3231_s17 = sld [smem:[#allocation16_spill]]  ;;  %s416_s1 = sadd.s32 27, %s2009_s15  ;;  %3241 = vst [vmem:[#allocation22_spill] sm:$0xff] %v2420_v9  ;;  %v498_v17 = vsub.f32 %v497_v47, %v2376_v53  ;;  %v540_v23 = vmin.f32 %v2225_v55, %v2420_v9  ;;  %v542_v25 = vmax.f32 %v2223_v54, %v2423_v12  ;;  %v2451_v40 = vstv %s2315_s19 }
  0x60   : > { %s3232_s7 = sld [smem:[#allocation14_spill]]  ;;  %s425_s3 = sadd.s32 28, %s2009_s15  ;;  %3242 = vst [vmem:[#allocation23_spill] sm:$0xff] %v2423_v12  ;;  %v2429_v18 = vmul.f32 %v512_v1, %v506_v60  ;;  %v524_v19 = vsub.f32 %v521_v57, %v523_v6  ;;  %v2454_v41 = vstv %s2305_s23  ;;  %v546_v44 = vmin.f32 %v2237_v59, %v2451_v40 }
  0x61   : > { %s3233_s18 = sld [smem:[#allocation11_spill]]  ;;  %v543_v39 = vsub.f32 %v540_v23, %v542_v25  ;;  %3243 = vst [vmem:[#allocation24_spill] sm:$0xff] %v2451_v40  ;;  %v2461_v43 = vmul.f32 0.5, %v498_v17  ;;  %v548_v46 = vmax.f32 %v2235_v58, %v2454_v41 }
  0x62   : > { %s3234_s29 = sld [smem:[#allocation15_spill]]  ;;  %v1793_v14 = vpop.eup %1792  ;;  %v525_v32 = vmax.f32 %v524_v19, 0.0  ;;  %3244 = vst [vmem:[#allocation25_spill] sm:$0xff] %v2454_v41 }
  0x63   : > { %s2373_s27 = sld [smem:[#allocation2 + %s401_s0]]  ;;  %s3240_s0 = smul.f32 %s2127_s20, %s2123_s9  ;;  %v1795_v22 = vpop.eup %1794  ;;  %v684_v26 = vmul.f32 %v1793_v14, %v2300_v31  ;;  %v516_v31 = vsub.f32 %v515_v5, %v2429_v18  ;;  %v544_v57 = vmax.f32 %v543_v39, 0.0  ;;  %v549_v60 = vsub.f32 %v546_v44, %v548_v46 }
  0x64   : > { %s2384_s22 = sadd.f32 %s3236_s12, %s2260_s11  ;;  %s403_s9 = smul.f32 0.5, %s2360_s26  ;;  %v696_v29 = vmul.f32 %v1795_v22, %v694_v52  ;;  %v2481_v52 = vstv %s2338_s10  ;;  %vm500_vm5 = vcmp.gt.f32.partialorder %v2376_v53, %v2461_v43 }
  0x65   : > { %v2391_v62 = vstv %s3231_s17  ;;  %s2401_s13 = sld [smem:[#allocation2 + %s410_s8]]  ;;  %v2417_v11 = vstv %s3240_s0  ;;  %s427_s17 = sadd.s32 29, %s2009_s15  ;;  %v2471_v47 = vmul.f32 0.5, %v516_v31  ;;  %3245 = vst [vmem:[#allocation26_spill] sm:$0xff] %v2481_v52  ;;  %v559_v6 = vmin.f32 %v2225_v55, %v2481_v52 }
  0x66   : > { %3238 = vst [vmem:[#allocation20_spill] sm:$0xff] %v2391_v62  ;;  %v2394_v63 = vstv %s3232_s7  ;;  %v527_v7 = vmin.f32 %v2237_v59, %v2391_v62  ;;  %s2409_s11 = sld [smem:[#allocation2 + %s414_s24]]  ;;  %v534_v33 = vadd.f32 %v2417_v11, %v2182_v28  ;;  %v697_v42 = vsub.f32 %v684_v26, %v696_v29 }
  0x67   : > { %3239 = vst [vmem:[#allocation21_spill] sm:$0xff] %v2394_v63  ;;  %v2397_v0 = vld [vmem:[%s3233_s18 + $0x12] sm:$0x3]  ;;  %v529_v8 = vmax.f32 %v2235_v58, %v2394_v63  ;;  %s2425_s8 = sld [smem:[#allocation2 + %s416_s1]]  ;;  %v550_v17 = vmax.f32 %v549_v60, 0.0  ;;  %vm518_vm6 = vcmp.gt.f32.partialorder %v2429_v18, %v2471_v47 }
  0x68   : > { %s379_s30 = smul.f32 %s2218_s4, %s3234_s29  ;;  %s2436_s20 = sld [smem:[#allocation2 + %s412_s5]]  ;;  %v699_v56 = vsub.f32 1.0, %v697_v42  ;;  %vm2612_vm7 = vmor %vm500_vm5, %vm518_vm6 }
  0x69   : > { %v530_v10 = vsub.f32 %v527_v7, %v529_v8  ;;  %s406_s28 = smul.f32 0.5, %s2373_s27  ;;  %s2443_s14 = sld [smem:[#allocation2 + %s425_s3]]  ;;  %v2495_v7 = vstv %s2334_s2  ;;  %v2498_v8 = vstv %s2384_s22  ;;  %v2528_v25 = vmul.f32 %v550_v17, %v544_v57 }
  0x6a   : > { %s2448_s24 = sld [smem:[#allocation2 + %s427_s17]]  ;;  %s394_s5 = smul.f32 %s2253_s21, %s2246_s25  ;;  %v2478_v49 = vstv %s379_s30  ;;  %3247 = vst [vmem:[#allocation27_spill] sm:$0xff] %v2498_v8  ;;  %v700_v14 = vsel %vm698_vm4, %v699_v56, 0.0  ;;  %v561_v19 = vmax.f32 %v2223_v54, %v2495_v7  ;;  %v565_v22 = vmin.f32 %v2237_v59, %v2498_v8 }
  0x6b   : > { %v531_v36 = vmax.f32 %v530_v10, 0.0  ;;  %s2459_s7 = ssub.f32 %s2264_s16, %s403_s9  ;;  %v553_v1 = vadd.f32 %v2478_v49, %v2182_v28  ;;  %s429_s4 = sadd.s32 30, %s2009_s15  ;;  %v701_v26 = vsel %vm653_vm0, %v700_v14, 0.0 }
  0x6c   : > { %s2468_s12 = sadd.f32 %s403_s9, %s2264_s16  ;;  %s418_s19 = smul.f32 0.5, %s2409_s11  ;;  %702 = vadd.xlane.f32.xlu0 %v701_v26  ;;  %v562_v29 = vsub.f32 %v559_v6, %v561_v19 }
  0x6d   : > { %v2473_v48 = vmul.f32 %v531_v36, %v525_v32  ;;  %s2484_s23 = ssub.f32 %s2274_s6, %s406_s28  ;;  %s421_s1 = smul.f32 0.5, %s2425_s8  ;;  %v2537_v32 = vstv %s394_s5  ;;  %v2543_v36 = vstv %s2459_s7  ;;  %v554_v42 = vsub.f32 %v553_v1, %v2528_v25 }
  0x6e   : > { %s408_s16 = sadd.f32 %s406_s28, %s2274_s6  ;;  %s431_s30 = sadd.s32 31, %s2009_s15  ;;  %3249 = vst [vmem:[#allocation29_spill] sm:$0xff] %v2537_v32  ;;  %v563_v44 = vmax.f32 %v562_v29, 0.0  ;;  %v580_v57 = vmax.f32 %v2223_v54, %v2543_v36  ;;  %v572_v17 = vadd.f32 %v2537_v32, %v2182_v28 }
  0x6f   : > { %s3246_s29 = sld [smem:[#allocation17_spill]]  ;;  %v535_v5 = vsub.f32 %v534_v33, %v2473_v48  ;;  %s409_s6 = smul.f32 %s2373_s27, %s2360_s26  ;;  %v2540_v33 = vstv %s2468_s12  ;;  %3251 = vst [vmem:[#allocation31_spill] sm:$0xff] %v2543_v36  ;;  %v555_v1 = vmul.f32 0.5, %v554_v42 }
  0x70   : > { %s2503_s10 = ssub.f32 %s2401_s13, %s418_s19  ;;  %3250 = vst [vmem:[#allocation30_spill] sm:$0xff] %v2540_v33  ;;  %v2545_v39 = vstv %s408_s16  ;;  %v578_v56 = vmin.f32 %v2225_v55, %v2540_v33  ;;  %s424_s21 = smul.f32 %s2425_s8, %s2409_s11 }
  0x71   : > { %s2514_s2 = sadd.f32 %s418_s19, %s2401_s13  ;;  %v2526_v23 = vmul.f32 0.5, %v535_v5  ;;  %3252 = vst [vmem:[#allocation32_spill] sm:$0xff] %v2545_v39  ;;  %v584_v60 = vmin.f32 %v2237_v59, %v2545_v39  ;;  %v2560_v5 = vstv %s2484_s23  ;;  %v2562_v6 = vstv %s409_s6 }
  0x72   : > { %s423_s15 = sadd.f32 %s421_s1, %s2436_s20  ;;  %3253 = vst [vmem:[#allocation33_spill] sm:$0xff] %v2560_v5  ;;  %v586_v19 = vmax.f32 %v2235_v58, %v2560_v5  ;;  %v2574_v29 = vstv %s2503_s10  ;;  %vm556_vm9 = vcmp.gt.f32.partialorder %v2528_v25, %v555_v1 }
  0x73   : > { %s2532_s27 = sld [smem:[#allocation2 + %s429_s4]]  ;;  %3254 = vst [vmem:[#allocation34_spill] sm:$0xff] %v2562_v6  ;;  %v2571_v26 = vstv %s2514_s2  ;;  %vm537_vm8 = vcmp.gt.f32.partialorder %v2473_v48, %v2526_v23 }
  0x74   : > { %s2547_s26 = sld [smem:[#allocation2 + %s431_s30]]  ;;  %3255 = vst [vmem:[#allocation35_spill] sm:$0xff] %v2571_v26  ;;  %v587_v42 = vsub.f32 %v584_v60, %v586_v19  ;;  %v597_v20 = vmin.f32 %v2225_v55, %v2571_v26  ;;  %v2598_v26 = vld [vmem:[%s3233_s18 + $0x8] sm:$0x3]  ;;  %vm2630_vm10 = vmor %vm2612_vm7, %vm537_vm8 }
  0x75   : > { %v2521_v10 = vstv %s3246_s29  ;;  %s422_s25 = ssub.f32 %s2436_s20, %s421_s1  ;;  %3256 = vst [vmem:[#allocation36_spill] sm:$0xff] %v2574_v29  ;;  %v780_v53 = vand.u32 2147483647, %v2598_v26  ;;  %vm557_vm11 = vmor %vm2630_vm10, %vm556_vm9 }
  0x76   : > { %3248 = vst [vmem:[#allocation28_spill] sm:$0xff] %v2521_v10  ;;  %v567_v31 = vmax.f32 %v2235_v58, %v2521_v10  ;;  %s3270_s9 = sld [smem:[#allocation9_spill]] }
  0x77   : > { %s2648_s20 = sld [smem:[#allocation4 + $0x2]] }
  0x78   : > { %v568_v46 = vsub.f32 %v565_v22, %v567_v31  ;;  %v581_v22 = vsub.f32 %v578_v56, %v580_v57  ;;  %v2576_v31 = vstv %s423_s15  ;;  %v599_v57 = vmax.f32 %v2223_v54, %v2574_v29  ;;  %s2658_s28 = sld [smem:[#allocation4 + $0x3]] }
  0x79   : > { %3257 = vst [vmem:[#allocation37_spill] sm:$0xff] %v2576_v31  ;;  %s433_s22 = smul.f32 0.5, %s2532_s27  ;;  %v603_v3 = vmin.f32 %v2237_v59, %v2576_v31  ;;  %v3260_v31 = vsub.f32 0.0, %v2397_v0  ;;  %s3272_s12 = sld [smem:[#allocation51_spill]] }
  0x7a   : > { %v569_v14 = vmax.f32 %v568_v46, 0.0  ;;  %v591_v46 = vadd.f32 %v2562_v6, %v2182_v28  ;;  %v582_v56 = vmax.f32 %v581_v22, 0.0  ;;  %s436_s13 = smul.f32 0.5, %s2547_s26  ;;  %v2595_v6 = vstv %s424_s21  ;;  %s2685_s23 = sld [smem:[#allocation4 + $0x4]] }
  0x7b   : > { %3259 = vst [vmem:[#allocation39_spill] sm:$0xff] %v2595_v6  ;;  %s434_s11 = ssub.f32 %s2443_s14, %s433_s22  ;;  %s439_s3 = smul.f32 %s2547_s26, %s2532_s27  ;;  %v600_v22 = vsub.f32 %v597_v20, %v599_v57  ;;  %v819_v29 = vmul.f32 1.442695, %v3260_v31  ;;  %v610_v18 = vadd.f32 %v2595_v6, %v2182_v28 }
  0x7c   : > { %v2578_v2 = vmul.f32 %v569_v14, %v563_v44  ;;  %v2589_v44 = vstv %s422_s25  ;;  %v588_v14 = vmax.f32 %v587_v42, 0.0  ;;  %s435_s0 = sadd.f32 %s433_s22, %s2443_s14  ;;  %s1687_s14 = smul.u32 6, %s3270_s9 }
  0x7d   : > { %3258 = vst [vmem:[#allocation38_spill] sm:$0xff] %v2589_v44  ;;  %v605_v19 = vmax.f32 %v2235_v58, %v2589_v44  ;;  %s437_s8 = ssub.f32 %s2448_s24, %s436_s13  ;;  %v601_v0 = vmax.f32 %v600_v22, 0.0  ;;  %v2622_v47 = vstv %s434_s11  ;;  %1796 = vpow2.f32 %v819_v29  ;;  %s1619_s7 = sshll.u32 %s3270_s9, 3 }
  0x7e   : > { %v573_v60 = vsub.f32 %v572_v17, %v2578_v2  ;;  %v589_v20 = vmul.f32 %v588_v14, %v582_v56  ;;  %3263 = vst [vmem:[#allocation40_spill] sm:$0xff] %v2622_v47  ;;  %s438_s17 = sadd.f32 %s436_s13, %s2448_s24  ;;  %v2626_v48 = vstv %s435_s0  ;;  %v618_v56 = vmax.f32 %v2223_v54, %v2622_v47 }
  0x7f   : > { %v606_v42 = vsub.f32 %v603_v3, %v605_v19  ;;  %3264 = vst [vmem:[#allocation41_spill] sm:$0xff] %v2626_v48  ;;  %v616_v23 = vmin.f32 %v2225_v55, %v2626_v48  ;;  %v2638_v14 = vstv %s437_s8  ;;  %v1644_v19 = vld [vmem:[%s3233_s18 + $0x16] sm:$0x3]  ;;  %v781_v47 = vsub.f32 0.0, %v780_v53  ;;  %v1645_v48 = vld [vmem:[%s3233_s18 + $0x18] sm:$0x3]  ;;  %s2669_s19 = scalar_lea.vmem %s3272_s12, %s1687_s14 }
  0x80   : > { %v574_v43 = vmul.f32 0.5, %v573_v60  ;;  %v592_v31 = vsub.f32 %v591_v46, %v589_v20  ;;  %3267 = vst [vmem:[#allocation42_spill] sm:$0xff] %v2638_v14  ;;  %v2640_v60 = vstv %s439_s3  ;;  %v1643_v46 = vld [vmem:[%s3233_s18 + $0x14] sm:$0x3]  ;;  %v2644_v17 = vstv %s438_s17  ;;  %s3271_s24 = sld [smem:[#allocation10_spill]] }
  0x81   : > { %v607_v57 = vmax.f32 %v606_v42, 0.0  ;;  %3268 = vst [vmem:[#allocation43_spill] sm:$0xff] %v2640_v60  ;;  %v624_v6 = vmax.f32 %v2235_v58, %v2638_v14  ;;  %v619_v55 = vsub.f32 %v616_v23, %v618_v56  ;;  %v622_v54 = vmin.f32 %v2237_v59, %v2644_v17  ;;  %s2695_s1 = sld [smem:[#allocation4 + $0x5]] }
  0x82   : > { %v593_v22 = vmul.f32 0.5, %v592_v31  ;;  %3269 = vst [vmem:[#allocation44_spill] sm:$0xff] %v2644_v17  ;;  %vm575_vm12 = vcmp.gt.f32.partialorder %v2578_v2, %v574_v43  ;;  %v825_v31 = vsub.f32 0.0, %v1643_v46  ;;  %v832_v58 = vmul.f32 1.442695, %v1644_v19 }
  0x83   : > { %v608_v42 = vmul.f32 %v607_v57, %v601_v0  ;;  %v620_v57 = vmax.f32 %v619_v55, 0.0  ;;  %v625_v23 = vsub.f32 %v622_v54, %v624_v6  ;;  %v782_v56 = vmul.f32 1.442695, %v781_v47  ;;  %vm576_vm13 = vmor %vm557_vm11, %vm575_vm12  ;;  %v1665_v6 = vld [vmem:[%s3233_s18 + $0x26] sm:$0x3]  ;;  %v1797_v53 = vpop.eup %1796 }
  0x84   : > { %v826_v29 = vmul.f32 1.442695, %v825_v31  ;;  %1798 = vpow2.f32 %v832_v58  ;;  %v838_v25 = vmul.f32 1.442695, %v1645_v48  ;;  %vm594_vm14 = vcmp.gt.f32.partialorder %v589_v20, %v593_v22  ;;  %v1666_v47 = vld [vmem:[%s3233_s18 + $0x28] sm:$0x3] }
  0x85   : > { %v611_v0 = vsub.f32 %v610_v18, %v608_v42  ;;  %v626_v2 = vmax.f32 %v625_v23, 0.0  ;;  %v629_v1 = vadd.f32 %v2640_v60, %v2182_v28  ;;  %1800 = vpow2.f32 %v782_v56  ;;  %v1664_v18 = vld [vmem:[%s3233_s18 + $0x24] sm:$0x3]  ;;  %vm595_vm15 = vmor %vm576_vm13, %vm594_vm14 }
  0x86   : > { %1802 = vpow2.f32 %v826_v29  ;;  %v821_v20 = vadd.f32 1.0, %v1797_v53  ;;  %v834_v28 = vstv %s2648_s20  ;;  %v1154_v48 = vsub.f32 0.0, %v1664_v18  ;;  %v2673_v46 = vld [vmem:[%s3271_s24 + $0x16] sm:$0x3] }
  0x87   : > { %v612_v59 = vmul.f32 0.5, %v611_v0  ;;  %v627_v43 = vmul.f32 %v626_v2, %v620_v57  ;;  %1804 = vpow2.f32 %v838_v25  ;;  %v1161_v19 = vsub.f32 0.0, %v1665_v6  ;;  %v1667_v0 = vld [vmem:[%s3233_s18 + $0x2a] sm:$0x3]  ;;  %v634_v57 = vld [vmem:[%s2669_s19] sm:$0x3] }
  0x88   : > { %v1168_v22 = vmul.f32 1.442695, %v1666_v47  ;;  %1806 = vrcp.f32 %v821_v20  ;;  %v1155_v54 = vmul.f32 1.442695, %v1154_v48  ;;  %v840_v56 = vstv %s2658_s28  ;;  %v1655_v6 = vld [vmem:[%s3271_s24 + $0x18] sm:$0x3] }
  0x89   : > { %vm613_vm1 = vcmp.gt.f32.partialorder %v608_v42, %v612_v59  ;;  %v630_v3 = vsub.f32 %v629_v1, %v627_v43  ;;  %v1001_v25 = vmul.f32 0.5, %v2673_v46  ;;  %v1162_v2 = vmul.f32 1.442695, %v1161_v19 }
  0x8a   : > { %v1799_v55 = vpop.eup %1798  ;;  %vm2676_vm2 = vmor %vm595_vm15, %vm613_vm1  ;;  %1808 = vpow2.f32 %v1155_v54  ;;  %v1174_v47 = vmul.f32 1.442695, %v1667_v0  ;;  %v777_v53 = vmax.f32 %v2598_v26, 0.0  ;;  %v778_v20 = vmul.f32 %v1988_v4, %v2598_v26  ;;  %v1653_v54 = vld [vmem:[%s3271_s24 + $0x14] sm:$0x3] }
  0x8b   : > { %v1801_v31 = vpop.eup %1800  ;;  %v631_v42 = vmul.f32 0.5, %v630_v3  ;;  %v2681_v23 = vmul.f32 %v1799_v55, %v834_v28  ;;  %1810 = vpow2.f32 %v1168_v22  ;;  %v1652_v28 = vld [vmem:[%s3271_s24 + $0x12] sm:$0x3]  ;;  %v1004_v22 = vmul.f32 0.5, %v1655_v6 }
  0x8c   : > { %v1803_v59 = vpop.eup %1802  ;;  %v784_v29 = vadd.f32 1.0, %v1801_v31  ;;  %v1002_v26 = vsub.f32 %v1652_v28, %v1001_v25  ;;  %v1003_v0 = vadd.f32 %v1652_v28, %v1001_v25  ;;  %v3275_v58 = vmov 0.0  }
  0x8d   : > { %v1805_v1 = vpop.eup %1804  ;;  %vm632_vm3 = vcmp.gt.f32.partialorder %v627_v43, %v631_v42  ;;  %v828_v18 = vadd.f32 1.0, %v1803_v59  ;;  %v851_v3 = vmul.f32 0.5, %v2681_v23  ;;  %v1176_v44 = vstv %s2695_s1 }
  0x8e   : > { %vm633_vm5 = vmor %vm2676_vm2, %vm632_vm3  ;;  %1812 = vlog2.f32 %v784_v29  ;;  %v1807_v43 = vpop.eup %1806  ;;  %v841_v19 = vmul.f32 %v1805_v1, %v840_v56 }
  0x8f   : > { %v635_v48 = vsel %vm633_vm5, 0.0, %v634_v57  ;;  %1814 = vrcp.f32 %v828_v18  ;;  %v849_v55 = vadd.f32 %v1807_v43, %v2180_v30  ;;  %v779_v57 = vsub.f32 %v777_v53, %v778_v20 }
  0x90   : > { %vm788_vm6 = vcmp.gt.f32.partialorder %v635_v48, 0.0  ;;  %1816 = vpow2.f32 %v1162_v2  ;;  %v1809_v31 = vpop.eup %1808  ;;  %v854_v18 = vmul.f32 0.5, %v841_v19  ;;  %v1005_v48 = vsub.f32 %v1653_v54, %v1004_v22 }
  0x91   : > { %vm789_vm7 = vmor %vm788_vm6, %vm698_vm4  ;;  %1818 = vpow2.f32 %v1174_v47  ;;  %v1811_v59 = vpop.eup %1810  ;;  %v2703_v56 = vsub.f32 %v849_v55, %v851_v3  ;;  %v2705_v2 = vadd.f32 %v851_v3, %v849_v55  ;;  %v1157_v4 = vadd.f32 1.0, %v1809_v31 }
  0x92   : > { %v790_v42 = vsel %vm789_vm7, 1.0, %v3275_v58  ;;  %v1170_v43 = vstv %s2685_s23  ;;  %v1006_v3 = vadd.f32 %v1653_v54, %v1004_v22  ;;  %v2722_v22 = vmul.f32 %v841_v19, %v2681_v23  ;;  %s3333_s23 = sld [smem:[#allocation53_spill]] }
  0x93   : > { %v803_v29 = vsel %vm653_vm0, %v790_v42, 0.0  ;;  %3276 = vst [vmem:[#allocation45_spill] sm:$0xff] %v2705_v2  ;;  %v1007_v28 = vmin.f32 %v2705_v2, %v1003_v0  ;;  %v1008_v53 = vmax.f32 %v2703_v56, %v1002_v26  ;;  %v1021_v20 = vmax.f32 %v2705_v2, %v1003_v0 }
  0x94   : > { %v1813_v1 = vpop.eup %1812  ;;  %804 = vadd.xlane.f32.xlu2 %v803_v29  ;;  %v1022_v55 = vmin.f32 %v2703_v56, %v1002_v26  ;;  %1820 = vrcp.f32 %v1157_v4  ;;  %v2713_v60 = vmul.f32 %v1811_v59, %v1170_v43  ;;  %v1016_v0 = vmul.f32 %v1655_v6, %v2673_v46  ;;  %v2731_v6 = vld [vmem:[%s3271_s24 + $0x28] sm:$0x3] }
  0x95   : > { %v1815_v25 = vpop.eup %1814  ;;  %v786_v47 = vmul.f32 0.6931472, %v1813_v1  ;;  %v1009_v32 = vsub.f32 %v1007_v28, %v1008_v53  ;;  %vm1034_vm4 = vcmp.gt.f32.partialorder %v2015_v21, 0.0 }
  0x96   : > { %v1817_v58 = vpop.eup %1816  ;;  %v850_v14 = vadd.f32 %v1815_v25, %v2195_v35  ;;  %v1023_v54 = vsub.f32 %v1021_v20, %v1022_v55  ;;  %v1187_v46 = vmul.f32 0.5, %v2713_v60  ;;  %v2735_v25 = vld [vmem:[%s3271_s24 + $0x2a] sm:$0x3] }
  0x97   : > { %v1819_v31 = vpop.eup %1818  ;;  %v787_v29 = vadd.f32 %v786_v47, %v779_v57  ;;  %v1164_v17 = vadd.f32 1.0, %v1817_v58  ;;  %v1337_v47 = vmul.f32 0.5, %v2731_v6 }
  0x98   : > { %v2716_v1 = vsub.f32 %v850_v14, %v854_v18  ;;  %v2718_v5 = vadd.f32 %v854_v18, %v850_v14  ;;  %v1177_v59 = vmul.f32 %v1819_v31, %v1176_v44  ;;  %s316_s1 = scalar_lea.vmem %s3333_s23, %s1619_s7 }
  0x99   : > { %v791_v2 = vmul.f32 %v790_v42, %v787_v29  ;;  %1822 = vrcp.f32 %v1164_v17  ;;  %v1010_v17 = vmax.f32 %v1009_v32, 0.0  ;;  %v1024_v42 = vmax.f32 %v1023_v54, 0.0  ;;  %v1674_v32 = vld [vmem:[%s3271_s24 + $0x24] sm:$0x3] }
  0x9a   : > { %v1011_v26 = vmin.f32 %v2718_v5, %v1006_v3  ;;  %v1012_v58 = vmax.f32 %v2716_v1, %v1005_v48  ;;  %v1025_v57 = vmax.f32 %v2718_v5, %v1006_v3  ;;  %v1026_v4 = vmin.f32 %v2716_v1, %v1005_v48  ;;  %v1821_v23 = vpop.eup %1820 }
  0x9b   : > { %v792_v14 = vsel %vm653_vm0, %v791_v2, 0.0  ;;  %v1185_v43 = vadd.f32 %v1821_v23, %v2180_v30  ;;  %v1017_v2 = vadd.f32 %v1016_v0, %v2722_v22  ;;  %v1190_v48 = vmul.f32 0.5, %v1177_v59 }
  0x9c   : > { %793 = vadd.xlane.f32.xlu1 %v792_v14  ;;  %v1013_v19 = vsub.f32 %v1011_v26, %v1012_v58  ;;  %v1027_v18 = vsub.f32 %v1025_v57, %v1026_v4  ;;  %v1340_v30 = vmul.f32 0.5, %v2735_v25  ;;  %v1675_v26 = vld [vmem:[%s3271_s24 + $0x26] sm:$0x3]  ;;  %v2755_v4 = vsub.f32 %v1674_v32, %v1337_v47 }
  0x9d   : > { %v2739_v20 = vsub.f32 %v1185_v43, %v1187_v46  ;;  %v2741_v3 = vadd.f32 %v1187_v46, %v1185_v43  ;;  %v2761_v23 = vadd.f32 %v1674_v32, %v1337_v47 }
  0x9e   : > { %v1014_v44 = vmax.f32 %v1013_v19, 0.0  ;;  %v1028_v53 = vmax.f32 %v1027_v18, 0.0 }
  0x9f   : > { %v1823_v28 = vpop.eup %1822  ;;  %v1194_v54 = vmin.f32 %v2741_v3, %v2267_v15  ;;  %v1195_v0 = vmax.f32 %v2739_v20, %v2270_v16  ;;  %v1208_v46 = vmax.f32 %v2739_v20, %v2322_v37 }
  0xa0   : > { %v1015_v55 = vmul.f32 %v1014_v44, %v1010_v17  ;;  %v1186_v31 = vadd.f32 %v1823_v28, %v2195_v35  ;;  %v1029_v29 = vmul.f32 %v1028_v53, %v1024_v42  ;;  %v1207_v35 = vmin.f32 %v2741_v3, %v2298_v24 }
  0xa1   : > { %v2767_v42 = vsub.f32 %v1675_v26, %v1340_v30  ;;  %v1196_v18 = vsub.f32 %v1194_v54, %v1195_v0  ;;  %v1221_v28 = vmin.f32 %v2741_v3, %v2369_v51  ;;  %v1222_v53 = vmax.f32 %v2739_v20, %v2388_v61 }
  0xa2   : > { %v1018_v58 = vsub.f32 %v1017_v2, %v1015_v55  ;;  %v2751_v57 = vsub.f32 %v1186_v31, %v1190_v48  ;;  %v2753_v14 = vadd.f32 %v1190_v48, %v1186_v31  ;;  %1824 = vrcp.f32 %v1029_v29 }
  0xa3   : > { %v2773_v2 = vadd.f32 %v1675_v26, %v1340_v30  ;;  %v1209_v32 = vsub.f32 %v1207_v35, %v1208_v46  ;;  %v2785_v30 = vmul.f32 %v1177_v59, %v2713_v60  ;;  %v1236_v26 = vmax.f32 %v2739_v20, %v2423_v12 }
  0xa4   : > { %1826 = vrcp.f32 %v1018_v58  ;;  %v1198_v17 = vmin.f32 %v2753_v14, %v2286_v13  ;;  %v1199_v19 = vmax.f32 %v2751_v57, %v2295_v27  ;;  %v1211_v43 = vmin.f32 %v2753_v14, %v2325_v38 }
  0xa5   : > { %v1212_v44 = vmax.f32 %v2751_v57, %v2346_v45  ;;  %v1030_v48 = vsub.f32 %v1029_v29, %v1018_v58  ;;  %v1225_v54 = vmin.f32 %v2753_v14, %v2391_v62  ;;  %v1226_v0 = vmax.f32 %v2751_v57, %v2394_v63 }
  0xa6   : > { %v1200_v47 = vsub.f32 %v1198_v17, %v1199_v19  ;;  %v1235_v29 = vmin.f32 %v2741_v3, %v2420_v9  ;;  %v1239_v58 = vmin.f32 %v2753_v14, %v2451_v40  ;;  %v1197_v46 = vmax.f32 %v1196_v18, 0.0 }
  0xa7   : > { %v1213_v31 = vsub.f32 %v1211_v43, %v1212_v44  ;;  %v1240_v19 = vmax.f32 %v2751_v57, %v2454_v41  ;;  %v1249_v43 = vmin.f32 %v2741_v3, %v2481_v52  ;;  %v1203_v44 = vadd.f32 %v2785_v30, %v2317_v34 }
  0xa8   : > { %v1825_v35 = vpop.eup %1824  ;;  %v1201_v17 = vmax.f32 %v1200_v47, 0.0  ;;  %v1223_v9 = vsub.f32 %v1221_v28, %v1222_v53  ;;  %v1250_v12 = vmax.f32 %v2739_v20, %v2495_v7  ;;  %v1210_v40 = vmax.f32 %v1209_v32, 0.0 }
  0xa9   : > { %v1032_v59 = vmul.f32 %v1825_v35, %v1030_v48  ;;  %v1214_v62 = vmax.f32 %v1213_v31, 0.0  ;;  %v1227_v18 = vsub.f32 %v1225_v54, %v1226_v0  ;;  %v1216_v47 = vadd.f32 %v2785_v30, %v2366_v50 }
  0xaa   : > { %v1827_v60 = vpop.eup %1826  ;;  %v1237_v41 = vsub.f32 %v1235_v29, %v1236_v26  ;;  %v1241_v61 = vsub.f32 %v1239_v58, %v1240_v19  ;;  %v1253_v52 = vmin.f32 %v2753_v14, %v2498_v8  ;;  %v2805_v35 = vmul.f32 %v1201_v17, %v1197_v46 }
  0xab   : > { %v1020_v63 = vmul.f32 %v1827_v60, %v1015_v55  ;;  %v1251_v51 = vsub.f32 %v1249_v43, %v1250_v12  ;;  %v1254_v28 = vmax.f32 %v2751_v57, %v2521_v10  ;;  %v1224_v53 = vmax.f32 %v1223_v9, 0.0  ;;  %v3277_v43 = vld [vmem:[#allocation29_spill] sm:$0xff] }
  0xac   : > { %v1230_v55 = vadd.f32 %v2785_v30, %v2417_v11  ;;  %v2813_v32 = vadd.f32 %v2785_v30, %v2478_v49  ;;  %v1263_v31 = vmin.f32 %v2741_v3, %v2540_v33  ;;  %v2817_v0 = vmul.f32 %v1214_v62, %v1210_v40 }
  0xad   : > { %v1033_v48 = vsub.f32 %v1020_v63, %v1032_v59  ;;  %v1228_v63 = vmax.f32 %v1227_v18, 0.0  ;;  %v1255_v29 = vsub.f32 %v1253_v52, %v1254_v28  ;;  %v1238_v12 = vmax.f32 %v1237_v41, 0.0 }
  0xae   : > { %v1242_v26 = vmax.f32 %v1241_v61, 0.0  ;;  %v1264_v9 = vmax.f32 %v2739_v20, %v2543_v36  ;;  %v1267_v58 = vmin.f32 %v2753_v14, %v2545_v39  ;;  %v1204_v17 = vsub.f32 %v1203_v44, %v2805_v35  ;;  %v3278_v61 = vld [vmem:[#allocation33_spill] sm:$0xff]  ;;  %v3280_v44 = vld [vmem:[#allocation36_spill] sm:$0xff] }
  0xaf   : > { %v1035_v54 = vsub.f32 1.0, %v1033_v48  ;;  %v1252_v19 = vmax.f32 %v1251_v51, 0.0  ;;  %v1258_v62 = vadd.f32 %v2785_v30, %v3277_v43  ;;  %v1256_v52 = vmax.f32 %v1255_v29, 0.0  ;;  %v3279_v48 = vld [vmem:[#allocation35_spill] sm:$0xff]  ;;  %v3282_v29 = vld [vmem:[#allocation38_spill] sm:$0xff]  ;;  %v3287_v39 = vld [vmem:[#allocation41_spill] sm:$0xff] }
  0xb0   : > { %v1265_v41 = vsub.f32 %v1263_v31, %v1264_v9  ;;  %v1268_v60 = vmax.f32 %v2751_v57, %v3278_v61  ;;  %v1217_v59 = vsub.f32 %v1216_v47, %v2817_v0  ;;  %v2832_v18 = vmul.f32 %v1228_v63, %v1224_v53  ;;  %v3283_v47 = vld [vmem:[#allocation34_spill] sm:$0xff]  ;;  %v3284_v63 = vld [vmem:[#allocation39_spill] sm:$0xff] }
  0xb1   : > { %v1036_v46 = vsel %vm1034_vm4, %v1035_v54, 0.0  ;;  %v1277_v28 = vmin.f32 %v2741_v3, %v3279_v48  ;;  %v1278_v51 = vmax.f32 %v2739_v20, %v3280_v44  ;;  %v2838_v54 = vmul.f32 %v1242_v26, %v1238_v12  ;;  %v3285_v61 = vld [vmem:[#allocation43_spill] sm:$0xff] }
  0xb2   : > { %v1037_v40 = vsel %vm653_vm0, %v1036_v46, 0.0  ;;  %v1269_v21 = vsub.f32 %v1267_v58, %v1268_v60  ;;  %v3281_v46 = vld [vmem:[#allocation37_spill] sm:$0xff]  ;;  %v1282_v9 = vmax.f32 %v2751_v57, %v3282_v29  ;;  %v1272_v53 = vadd.f32 %v2785_v30, %v3283_v47 }
  0xb3   : > { %1038 = vadd.xlane.f32.xlu0 %v1037_v40  ;;  %v1281_v31 = vmin.f32 %v2753_v14, %v3281_v46  ;;  %v2844_v40 = vmul.f32 0.5, %v1204_v17  ;;  %v2850_v48 = vadd.f32 %v2785_v30, %v3284_v63  ;;  %v2854_v12 = vadd.f32 %v2785_v30, %v3285_v61 }
  0xb4   : > { %v2856_v26 = vmul.f32 %v1256_v52, %v1252_v19  ;;  %v1266_v58 = vmax.f32 %v1265_v41, 0.0  ;;  %v1270_v60 = vmax.f32 %v1269_v21, 0.0  ;;  %v1279_v46 = vsub.f32 %v1277_v28, %v1278_v51  ;;  %v3289_v52 = vld [vmem:[#allocation44_spill] sm:$0xff] }
  0xb5   : > { %3286 = vst [vmem:[#allocation46_spill] sm:$0xff] %v2854_v12  ;;  %v2858_v44 = vmul.f32 0.5, %v1217_v59  ;;  %v1231_v17 = vsub.f32 %v1230_v55, %v2832_v18  ;;  %v1283_v29 = vsub.f32 %v1281_v31, %v1282_v9  ;;  %v1343_v47 = vmin.f32 %v2741_v3, %v2761_v23  ;;  %v3288_v12 = vld [vmem:[#allocation40_spill] sm:$0xff]  ;;  %v3290_v55 = vld [vmem:[#allocation42_spill] sm:$0xff] }
  0xb6   : > { %v1245_v63 = vsub.f32 %v2813_v32, %v2838_v54  ;;  %v1291_v61 = vmin.f32 %v2741_v3, %v3287_v39  ;;  %v1292_v19 = vmax.f32 %v2739_v20, %v3288_v12  ;;  %v1344_v21 = vmax.f32 %v2739_v20, %v2755_v4 }
  0xb7   : > { %v1295_v41 = vmin.f32 %v2753_v14, %v3289_v52  ;;  %v1296_v59 = vmax.f32 %v2751_v57, %v3290_v55  ;;  %v1347_v28 = vmin.f32 %v2753_v14, %v2773_v2  ;;  %v1348_v32 = vmax.f32 %v2751_v57, %v2767_v42 }
  0xb8   : > { %v1259_v51 = vsub.f32 %v1258_v62, %v2856_v26  ;;  %v2880_v31 = vmul.f32 %v1270_v60, %v1266_v58  ;;  %v1280_v9 = vmax.f32 %v1279_v46, 0.0  ;;  %v1345_v12 = vsub.f32 %v1343_v47, %v1344_v21 }
  0xb9   : > { %v1284_v39 = vmax.f32 %v1283_v29, 0.0  ;;  %v1349_v36 = vsub.f32 %v1347_v28, %v1348_v32  ;;  %v1352_v52 = vmul.f32 %v2735_v25, %v2731_v6  ;;  %v1357_v55 = vmax.f32 %v2741_v3, %v2761_v23 }
  0xba   : > { %v2886_v33 = vmul.f32 0.5, %v1231_v17  ;;  %v1293_v43 = vsub.f32 %v1291_v61, %v1292_v19  ;;  %v1346_v10 = vmax.f32 %v1345_v12, 0.0  ;;  %v1358_v8 = vmin.f32 %v2739_v20, %v2755_v4 }
  0xbb   : > { %v1297_v62 = vsub.f32 %v1295_v41, %v1296_v59  ;;  %v1350_v58 = vmax.f32 %v1349_v36, 0.0  ;;  %v1353_v46 = vadd.f32 %v1352_v52, %v2785_v30  ;;  %v1361_v29 = vmax.f32 %v2753_v14, %v2773_v2  ;;  %v3291_v36 = vld [vmem:[#allocation45_spill] sm:$0xff] }
  0xbc   : > { %v2893_v47 = vmul.f32 0.5, %v1245_v63  ;;  %v1273_v6 = vsub.f32 %v1272_v53, %v2880_v31  ;;  %v1359_v25 = vsub.f32 %v1357_v55, %v1358_v8  ;;  %v1362_v3 = vmin.f32 %v2751_v57, %v2767_v42 }
  0xbd   : > { %v2898_v23 = vmul.f32 0.5, %v1259_v51  ;;  %v2900_v61 = vmul.f32 %v1284_v39, %v1280_v9  ;;  %v1351_v20 = vmul.f32 %v1350_v58, %v1346_v10  ;;  %v858_v4 = vmin.f32 %v3291_v36, %v2267_v15  ;;  %v3292_v51 = vld [vmem:[#allocation18_spill] sm:$0xff]  ;;  %v3293_v9 = vld [vmem:[#allocation19_spill] sm:$0xff]  ;;  %v3295_v58 = vld [vmem:[#allocation20_spill] sm:$0xff] }
  0xbe   : > { %v1294_v30 = vmax.f32 %v1293_v43, 0.0  ;;  %v1360_v12 = vmax.f32 %v1359_v25, 0.0  ;;  %v1363_v60 = vsub.f32 %v1361_v29, %v1362_v3  ;;  %v859_v14 = vmax.f32 %v2703_v56, %v2270_v16 }
  0xbf   : > { %v1298_v2 = vmax.f32 %v1297_v62, 0.0  ;;  %v1354_v53 = vsub.f32 %v1353_v46, %v1351_v20  ;;  %v862_v8 = vmin.f32 %v2718_v5, %v2286_v13  ;;  %v863_v57 = vmax.f32 %v2716_v1, %v2295_v27  ;;  %v3296_v46 = vld [vmem:[#allocation21_spill] sm:$0xff] }
  0xc0   : > { %v2910_v39 = vmul.f32 0.5, %v1273_v6  ;;  %v1364_v10 = vmax.f32 %v1363_v60, 0.0  ;;  %v860_v42 = vsub.f32 %v858_v4, %v859_v14  ;;  %v871_v15 = vmin.f32 %v3291_v36, %v2298_v24  ;;  %v3298_v60 = vld [vmem:[#allocation23_spill] sm:$0xff] }
  0xc1   : > { %v1287_v43 = vsub.f32 %v2850_v48, %v2900_v61  ;;  %1828 = vrcp.f32 %v1354_v53  ;;  %v864_v16 = vsub.f32 %v862_v8, %v863_v57  ;;  %v872_v63 = vmax.f32 %v2703_v56, %v2322_v37  ;;  %v3299_v57 = vld [vmem:[#allocation24_spill] sm:$0xff] }
  0xc2   : > { %v1365_v17 = vmul.f32 %v1364_v10, %v1360_v12  ;;  %v861_v13 = vmax.f32 %v860_v42, 0.0  ;;  %v875_v27 = vmin.f32 %v2718_v5, %v2325_v38  ;;  %v876_v19 = vmax.f32 %v2716_v1, %v2346_v45 }
  0xc3   : > { %v2922_v21 = vmul.f32 %v1298_v2, %v1294_v30  ;;  %v865_v52 = vmax.f32 %v864_v16, 0.0  ;;  %v867_v24 = vadd.f32 %v2722_v22, %v2317_v34  ;;  %v873_v41 = vsub.f32 %v871_v15, %v872_v63  ;;  %v3294_v34 = vld [vmem:[#allocation12_spill] sm:$0xff]  ;;  %v3297_v30 = vld [vmem:[#allocation22_spill] sm:$0xff]  ;;  %v3300_v16 = vld [vmem:[#allocation25_spill] sm:$0xff] }
  0xc4   : > { %v1366_v55 = vsub.f32 %v1365_v17, %v1354_v53  ;;  %1830 = vrcp.f32 %v1365_v17  ;;  %v877_v59 = vsub.f32 %v875_v27, %v876_v19  ;;  %v880_v37 = vadd.f32 %v2722_v22, %v2366_v50  ;;  %v3301_v19 = vld [vmem:[#allocation26_spill] sm:$0xff] }
  0xc5   : > { %v866_v28 = vmul.f32 %v865_v52, %v861_v13  ;;  %v874_v32 = vmax.f32 %v873_v41, 0.0  ;;  %v885_v38 = vmin.f32 %v3291_v36, %v3292_v51  ;;  %v886_v45 = vmax.f32 %v2703_v56, %v3293_v9 }
  0xc6   : > { %vm1206_vm8 = vcmp.gt.f32.partialorder %v2805_v35, %v2844_v40  ;;  %vm1219_vm9 = vcmp.gt.f32.partialorder %v2817_v0, %v2858_v44  ;;  %vm1370_vm10 = vcmp.gt.f32.partialorder %v3294_v34, 0.0  ;;  %v878_v62 = vmax.f32 %v877_v59, 0.0  ;;  %v3313_v0 = vld [vmem:[#allocation34_spill] sm:$0xff] }
  0xc7   : > { %v889_v50 = vmin.f32 %v2718_v5, %v3295_v58  ;;  %v890_v29 = vmax.f32 %v2716_v1, %v3296_v46  ;;  %v894_v6 = vadd.f32 %v2722_v22, %v2417_v11  ;;  %v1829_v25 = vpop.eup %1828  ;;  %v868_v3 = vsub.f32 %v867_v24, %v866_v28  ;;  %vm2983_vm1 = vmor %vm1206_vm8, %vm1219_vm9 }
  0xc8   : > { %v887_v4 = vsub.f32 %v885_v38, %v886_v45  ;;  %v899_v12 = vmin.f32 %v3291_v36, %v3297_v30  ;;  %v900_v14 = vmax.f32 %v2703_v56, %v3298_v60  ;;  %v1356_v2 = vmul.f32 %v1829_v25, %v1351_v20  ;;  %v3305_v25 = vld [vmem:[#allocation30_spill] sm:$0xff] }
  0xc9   : > { %v879_v53 = vmul.f32 %v878_v62, %v874_v32  ;;  %v891_v8 = vsub.f32 %v889_v50, %v890_v29  ;;  %v903_v10 = vmin.f32 %v2718_v5, %v3299_v57  ;;  %vm1233_vm11 = vcmp.gt.f32.partialorder %v2832_v18, %v2886_v33  ;;  %v3303_v62 = vld [vmem:[#allocation28_spill] sm:$0xff]  ;;  %v3319_v18 = vld [vmem:[#allocation41_spill] sm:$0xff] }
  0xca   : > { %v869_v42 = vmul.f32 0.5, %v868_v3  ;;  %v888_v11 = vmax.f32 %v887_v4, 0.0  ;;  %v901_v15 = vsub.f32 %v899_v12, %v900_v14  ;;  %v904_v63 = vmax.f32 %v2716_v1, %v3300_v16  ;;  %v1831_v17 = vpop.eup %1830  ;;  %v3306_v12 = vld [vmem:[#allocation31_spill] sm:$0xff]  ;;  %vm1234_vm5 = vmor %vm2983_vm1, %vm1233_vm11 }
  0xcb   : > { %v881_v13 = vsub.f32 %v880_v37, %v879_v53  ;;  %v892_v27 = vmax.f32 %v891_v8, 0.0  ;;  %v908_v20 = vadd.f32 %v2722_v22, %v2478_v49  ;;  %v913_v52 = vmin.f32 %v3291_v36, %v3301_v19  ;;  %v3302_v37 = vld [vmem:[#allocation27_spill] sm:$0xff]  ;;  %v3307_v8 = vld [vmem:[#allocation32_spill] sm:$0xff] }
  0xcc   : > { %v1368_v24 = vmul.f32 %v1831_v17, %v1366_v55  ;;  %vm870_vm12 = vcmp.gt.f32.partialorder %v866_v28, %v869_v42  ;;  %v902_v41 = vmax.f32 %v901_v15, 0.0  ;;  %v905_v59 = vsub.f32 %v903_v10, %v904_v63  ;;  %v3304_v55 = vld [vmem:[#allocation29_spill] sm:$0xff] }
  0xcd   : > { %vm1247_vm13 = vcmp.gt.f32.partialorder %v2838_v54, %v2893_v47  ;;  %v882_v32 = vmul.f32 0.5, %v881_v13  ;;  %v893_v51 = vmul.f32 %v892_v27, %v888_v11  ;;  %v914_v38 = vmax.f32 %v2703_v56, %v2495_v7  ;;  %v3308_v10 = vld [vmem:[#allocation33_spill] sm:$0xff] }
  0xce   : > { %v917_v9 = vmin.f32 %v2718_v5, %v3302_v37  ;;  %v1369_v45 = vsub.f32 %v1356_v2, %v1368_v24  ;;  %v906_v49 = vmax.f32 %v905_v59, 0.0  ;;  %v918_v58 = vmax.f32 %v2716_v1, %v3303_v62  ;;  %vm3022_vm8 = vmor %vm1234_vm5, %vm1247_vm13  ;;  %v3063_v27 = vld [vmem:[%s3233_s18 + $0x2e] sm:$0x3] }
  0xcf   : > { %v922_v50 = vadd.f32 %v2722_v22, %v3304_v55  ;;  %vm883_vm14 = vcmp.gt.f32.partialorder %v879_v53, %v882_v32  ;;  %v895_v46 = vsub.f32 %v894_v6, %v893_v51  ;;  %v915_v29 = vsub.f32 %v913_v52, %v914_v38  ;;  %v3315_v53 = vld [vmem:[#allocation36_spill] sm:$0xff]  ;;  %v3317_v32 = vld [vmem:[#allocation38_spill] sm:$0xff] }
  0xd0   : > { %v927_v3 = vmin.f32 %v3291_v36, %v3305_v25  ;;  %vm1261_vm15 = vcmp.gt.f32.partialorder %v2856_v26, %v2898_v23  ;;  %v1371_v7 = vsub.f32 1.0, %v1369_v45  ;;  %v907_v4 = vmul.f32 %v906_v49, %v902_v41  ;;  %vm2992_vm2 = vmor %vm870_vm12, %vm883_vm14  ;;  %v3316_v41 = vld [vmem:[#allocation37_spill] sm:$0xff]  ;;  %v3318_v38 = vld [vmem:[#allocation46_spill] sm:$0xff] }
  0xd1   : > { %v919_v30 = vsub.f32 %v917_v9, %v918_v58  ;;  %v928_v60 = vmax.f32 %v2703_v56, %v3306_v12  ;;  %v896_v14 = vmul.f32 0.5, %v895_v46  ;;  %v916_v2 = vmax.f32 %v915_v29, 0.0  ;;  %v3320_v58 = vld [vmem:[#allocation40_spill] sm:$0xff]  ;;  %v3323_v25 = vld [vmem:[#allocation39_spill] sm:$0xff]  ;;  %vm1262_vm13 = vmor %vm3022_vm8, %vm1261_vm15 }
  0xd2   : > { %v931_v57 = vmin.f32 %v2718_v5, %v3307_v8  ;;  %v932_v6 = vmax.f32 %v2716_v1, %v3308_v10  ;;  %v1372_v15 = vsel %vm1370_vm10, %v1371_v7, 0.0  ;;  %v909_v16 = vsub.f32 %v908_v20, %v907_v4  ;;  %v3314_v20 = vld [vmem:[#allocation35_spill] sm:$0xff]  ;;  %v3325_v7 = vld [vmem:[#allocation42_spill] sm:$0xff] }
  0xd3   : > { %v920_v63 = vmax.f32 %v919_v30, 0.0  ;;  %v929_v17 = vsub.f32 %v927_v3, %v928_v60  ;;  %v1373_v13 = vsel %vm653_vm0, %v1372_v15, 0.0  ;;  %vm897_vm3 = vcmp.gt.f32.partialorder %v893_v51, %v896_v14  ;;  %v3324_v3 = vld [vmem:[#allocation44_spill] sm:$0xff]  ;;  %v3033_v30 = vld [vmem:[%s3233_s18 + $0x1a] sm:$0x3] }
  0xd4   : > { %v933_v35 = vsub.f32 %v931_v57, %v932_v6  ;;  %v936_v44 = vadd.f32 %v2722_v22, %v3313_v0  ;;  %1374 = vadd.xlane.f32.xlu2 %v1373_v13  ;;  %v910_v40 = vmul.f32 0.5, %v909_v16  ;;  %v941_v24 = vmin.f32 %v3291_v36, %v3314_v20  ;;  %vm898_vm6 = vmor %vm2992_vm2, %vm897_vm3  ;;  %v3073_v0 = vld [vmem:[%s3233_s18 + $0x34] sm:$0x3]  ;;  %v1673_v20 = vld [vmem:[%s2669_s19 + $0x4] sm:$0x3] }
  0xd5   : > { %v921_v19 = vmul.f32 %v920_v63, %v916_v2  ;;  %v930_v52 = vmax.f32 %v929_v17, 0.0  ;;  %v942_v42 = vmax.f32 %v2703_v56, %v3315_v53  ;;  %v945_v59 = vmin.f32 %v2718_v5, %v3316_v41 }
  0xd6   : > { %v934_v28 = vmax.f32 %v933_v35, 0.0  ;;  %v946_v51 = vmax.f32 %v2716_v1, %v3317_v32  ;;  %v1301_v37 = vsub.f32 %v3318_v38, %v2922_v21  ;;  %vm911_vm7 = vcmp.gt.f32.partialorder %v907_v4, %v910_v40  ;;  %v3066_v35 = vld [vmem:[%s3233_s18 + $0x30] sm:$0x3] }
  0xd7   : > { %v923_v33 = vsub.f32 %v922_v50, %v921_v19  ;;  %v955_v9 = vmin.f32 %v3291_v36, %v3319_v18  ;;  %v943_v49 = vsub.f32 %v941_v24, %v942_v42  ;;  %v956_v55 = vmax.f32 %v2703_v56, %v3320_v58  ;;  %vm3035_vm9 = vmor %vm898_vm6, %vm911_vm7 }
  0xd8   : > { %v935_v45 = vmul.f32 %v934_v28, %v930_v52  ;;  %v947_v62 = vsub.f32 %v945_v59, %v946_v51  ;;  %v950_v50 = vadd.f32 %v2722_v22, %v3323_v25  ;;  %v959_v36 = vmin.f32 %v2718_v5, %v3324_v3 }
  0xd9   : > { %v924_v29 = vmul.f32 0.5, %v923_v33  ;;  %v960_v4 = vmax.f32 %v2716_v1, %v3325_v7  ;;  %v944_v47 = vmax.f32 %v943_v49, 0.0  ;;  %v957_v60 = vsub.f32 %v955_v9, %v956_v55  ;;  %v3045_v1 = vld [vmem:[%s3233_s18 + $0x2c] sm:$0x3]  ;;  %v656_v9 = vpop.xlane.xlu0 %655 }
  0xda   : > { %v937_v54 = vsub.f32 %v936_v44, %v935_v45  ;;  %v948_v12 = vmax.f32 %v947_v62, 0.0  ;;  %vm1275_vm11 = vcmp.gt.f32.partialorder %v2880_v31, %v2910_v39  ;;  %v1288_v5 = vmul.f32 0.5, %v1287_v43  ;;  %v3328_v43 = vld [vmem:[#allocation43_spill] sm:$0xff]  ;;  %v1651_v44 = vld [vmem:[%s2669_s19 + $0x2] sm:$0x3]  ;;  %v3331_v33 = vld [vmem:[#allocation13_spill] sm:$0xff] }
  0xdb   : > { %vm925_vm12 = vcmp.gt.f32.partialorder %v921_v19, %v924_v29  ;;  %v961_v14 = vsub.f32 %v959_v36, %v960_v4  ;;  %v958_v57 = vmax.f32 %v957_v60, 0.0  ;;  %v1116_v10 = vand.u32 2147483647, %v3033_v30  ;;  %vm1276_vm15 = vmor %vm1262_vm13, %vm1275_vm11 }
  0xdc   : > { %v938_v2 = vmul.f32 0.5, %v937_v54  ;;  %v949_v8 = vmul.f32 %v948_v12, %v944_v47  ;;  %v1302_v6 = vmul.f32 0.5, %v1301_v37  ;;  %vm926_vm14 = vmor %vm3035_vm9, %vm925_vm12  ;;  %v964_v11 = vadd.f32 %v2722_v22, %v3328_v43 }
  0xdd   : > { %v962_v48 = vmax.f32 %v961_v14, 0.0  ;;  %v1117_v23 = vsub.f32 0.0, %v1116_v10  ;;  %v1452_v15 = vand.u32 2147483647, %v3045_v1  ;;  %vm1289_vm2 = vcmp.gt.f32.partialorder %v2900_v61, %v1288_v5  ;;  %v3070_v61 = vld [vmem:[%s3233_s18 + $0x32] sm:$0x3] }
  0xde   : > { %vm939_vm1 = vcmp.gt.f32.partialorder %v935_v45, %v938_v2  ;;  %v951_v26 = vsub.f32 %v950_v50, %v949_v8  ;;  %vm1290_vm5 = vmor %vm1276_vm15, %vm1289_vm2  ;;  %vm1303_vm6 = vcmp.gt.f32.partialorder %v2922_v21, %v1302_v6  ;;  %v1396_v40 = vand.u32 2147483647, %v3063_v27  ;;  %v1681_v10 = vld [vmem:[%s3271_s24 + $0x30] sm:$0x3] }
  0xdf   : > { %v963_v16 = vmul.f32 %v962_v48, %v958_v57  ;;  %vm940_vm3 = vmor %vm926_vm14, %vm939_vm1  ;;  %v1118_v17 = vmul.f32 1.442695, %v1117_v23  ;;  %v1453_v13 = vsub.f32 0.0, %v1452_v15  ;;  %v1397_v19 = vand.u32 2147483647, %v3066_v35 }
  0xe0   : > { %v952_v63 = vmul.f32 0.5, %v951_v26  ;;  %vm3078_vm9 = vmor %vm1290_vm5, %vm1303_vm6  ;;  %v1398_v21 = vand.u32 2147483647, %v3070_v61  ;;  %v1399_v24 = vand.u32 2147483647, %v3073_v0  ;;  %v1400_v28 = vsub.f32 0.0, %v1396_v40 }
  0xe1   : > { %v965_v22 = vsub.f32 %v964_v11, %v963_v16  ;;  %1832 = vpow2.f32 %v1118_v17  ;;  %v1454_v31 = vmul.f32 1.442695, %v1453_v13  ;;  %v1401_v53 = vsub.f32 0.0, %v1397_v19  ;;  %v1682_v23 = vld [vmem:[%s3271_s24 + $0x32] sm:$0x3] }
  0xe2   : > { %vm953_vm7 = vcmp.gt.f32.partialorder %v949_v8, %v952_v63  ;;  %v1402_v41 = vsub.f32 0.0, %v1398_v21  ;;  %v1403_v32 = vsub.f32 0.0, %v1399_v24  ;;  %v1404_v51 = vmul.f32 1.442695, %v1400_v28 }
  0xe3   : > { %vm954_vm8 = vmor %vm940_vm3, %vm953_vm7  ;;  %v966_v39 = vmul.f32 0.5, %v965_v22  ;;  %1834 = vpow2.f32 %v1454_v31  ;;  %v1406_v38 = vmul.f32 1.442695, %v1401_v53  ;;  %v1307_v37 = vsel %vm3078_vm9, 0.0, %v1673_v20 }
  0xe4   : > { %v3332_v49 = vmov 0.0   ;;  %1836 = vpow2.f32 %v1404_v51  ;;  %v1408_v58 = vmul.f32 1.442695, %v1402_v41  ;;  %v1410_v55 = vmul.f32 1.442695, %v1403_v32 }
  0xe5   : > { %vm967_vm11 = vcmp.gt.f32.partialorder %v963_v16, %v966_v39  ;;  %v657_v25 = vrot.slane %v656_v9, 4  ;;  %v1113_v50 = vmax.f32 %v3033_v30, 0.0  ;;  %v1114_v3 = vmul.f32 %v3331_v33, %v3033_v30  ;;  %v1680_v30 = vld [vmem:[%s3271_s24 + $0x2e] sm:$0x3] }
  0xe6   : > { %vm968_vm12 = vmor %vm954_vm8, %vm967_vm11  ;;  %v1449_v7 = vmax.f32 %v3045_v1, 0.0  ;;  %v1450_v4 = vmul.f32 %v3294_v34, %v3045_v1  ;;  %v1384_v15 = vmax.f32 %v3063_v27, 0.0  ;;  %v1388_v16 = vmul.f32 %v1680_v30, %v3063_v27 }
  0xe7   : > { %v971_v42 = vsel %vm968_vm12, 0.0, %v1651_v44  ;;  %v1833_v59 = vpop.eup %1832  ;;  %v658_v36 = vadd.f32 %v657_v25, %v656_v9  ;;  %v1115_v47 = vsub.f32 %v1113_v50, %v1114_v3  ;;  %v1385_v17 = vmax.f32 %v3066_v35, 0.0  ;;  %v1683_v44 = vld [vmem:[%s3271_s24 + $0x34] sm:$0x3] }
  0xe8   : > { %vm1124_vm13 = vcmp.gt.f32.partialorder %v971_v42, 0.0  ;;  %v1120_v18 = vadd.f32 1.0, %v1833_v59  ;;  %v1451_v8 = vsub.f32 %v1449_v7, %v1450_v4  ;;  %v1389_v40 = vmul.f32 %v1681_v10, %v3066_v35 }
  0xe9   : > { %vm1125_vm14 = vmor %vm1124_vm13, %vm1034_vm4  ;;  %v1835_v45 = vpop.eup %1834  ;;  %vm1460_vm4 = vcmp.gt.f32.partialorder %v1307_v37, 0.0  ;;  %v659_v56 = vrot.slane %v658_v36, 2  ;;  %v1386_v52 = vmax.f32 %v3070_v61, 0.0  ;;  %v1390_v21 = vmul.f32 %v1682_v23, %v3070_v61 }
  0xea   : > { %v1126_v62 = vsel %vm1125_vm14, 1.0, %v3332_v49  ;;  %1838 = vlog2.f32 %v1120_v18  ;;  %v1456_v29 = vadd.f32 1.0, %v1835_v45  ;;  %v1837_v54 = vpop.eup %1836  ;;  %vm1461_vm1 = vmor %vm1460_vm4, %vm1370_vm10  ;;  %v1392_v24 = vsub.f32 %v1384_v15, %v1388_v16 }
  0xeb   : > { %v1139_v46 = vsel %vm653_vm0, %v1126_v62, 0.0  ;;  %1840 = vpow2.f32 %v1406_v38  ;;  %v1412_v60 = vadd.f32 1.0, %v1837_v54  ;;  %v660_v5 = vadd.f32 %v659_v56, %v658_v36 }
  0xec   : > { %1140 = vadd.xlane.f32.xlu0 %v1139_v46  ;;  %1842 = vlog2.f32 %v1456_v29  ;;  %v1462_v1 = vsel %vm1461_vm1, 1.0, %v3332_v49  ;;  %v1387_v53 = vmax.f32 %v3073_v0, 0.0  ;;  %v1391_v42 = vmul.f32 %v1683_v44, %v3073_v0  ;;  %v3118_v29 = vpop.xlane.xlu1 %1327 }
  0xed   : > { %1844 = vpow2.f32 %v1408_v58  ;;  %v661_v48 = vrot.slane %v660_v5, 1  ;;  %v1393_v41 = vsub.f32 %v1385_v17, %v1389_v40  ;;  %v1394_v61 = vsub.f32 %v1386_v52, %v1390_v21 }
  0xee   : > { %1846 = vpow2.f32 %v1410_v55  ;;  %v1395_v33 = vsub.f32 %v1387_v53, %v1391_v42 }
  0xef   : > { %1848 = vlog2.f32 %v1412_v60  ;;  %v662_v22 = vadd.f32 %v661_v48, %v660_v5  ;;  %v992_v60 = vpop.xlane.xlu2 %991  ;;  %v703_v5 = vpop.xlane.xlu0 %702 }
  0xf0   : > { %v1839_v12 = vpop.eup %1838 }
  0xf1   : > { %v1841_v14 = vpop.eup %1840  ;;  %v1122_v2 = vmul.f32 0.6931472, %v1839_v12  ;;  %1688 = vpush %v662_v22 }
  0xf2   : > { %v1843_v57 = vpop.eup %1842  ;;  %v1413_v6 = vadd.f32 1.0, %v1841_v14 }
  0xf3   : > { %v1845_v43 = vpop.eup %1844  ;;  %v1123_v11 = vadd.f32 %v1122_v2, %v1115_v47  ;;  %v1458_v26 = vmul.f32 0.6931472, %v1843_v57  ;;  %v704_v57 = vrot.slane %v703_v5, 4 }
  0xf4   : > { %v1847_v63 = vpop.eup %1846  ;;  %v1414_v13 = vadd.f32 1.0, %v1845_v43  ;;  %1850 = vlog2.f32 %v1413_v6  ;;  %v768_v12 = vpop.xlane.xlu1 %767  ;;  %v993_v6 = vrot.slane %v992_v60, 4 }
  0xf5   : > { %v1127_v31 = vmul.f32 %v1126_v62, %v1123_v11  ;;  %v1459_v39 = vadd.f32 %v1458_v26, %v1451_v8  ;;  %v1415_v19 = vadd.f32 1.0, %v1847_v63  ;;  %v1849_v28 = vpop.eup %1848  ;;  %v1475_v62 = vsel %vm653_vm0, %v1462_v1, 0.0 }
  0xf6   : > { %1852 = vlog2.f32 %v1414_v13  ;;  %v1417_v59 = vmul.f32 0.6931472, %v1849_v28  ;;  %v769_v8 = vrot.slane %v768_v12, 4  ;;  %v705_v48 = vadd.f32 %v704_v57, %v703_v5 }
  0xf7   : > { %v1128_v27 = vsel %vm653_vm0, %v1127_v31, 0.0  ;;  %v1463_v20 = vmul.f32 %v1462_v1, %v1459_v39  ;;  %1854 = vlog2.f32 %v1415_v19  ;;  %v994_v26 = vadd.f32 %v993_v6, %v992_v60 }
  0xf8   : > { %1129 = vadd.xlane.f32.xlu2 %v1128_v27  ;;  %v1424_v38 = vadd.f32 %v1417_v59, %v1392_v24  ;;  %v706_v15 = vrot.slane %v705_v48, 2 }
  0xf9   : > { %v1464_v35 = vsel %vm653_vm0, %v1463_v20, 0.0  ;;  %v995_v17 = vrot.slane %v994_v26, 2 }
  0xfa   : > { %v1851_v32 = vpop.eup %1850  ;;  %1465 = vadd.xlane.f32.xlu1 %v1464_v35  ;;  %v1428_v49 = vmul.f32 %v3294_v34, %v1424_v38  ;;  %v707_v13 = vadd.f32 %v706_v15, %v705_v48 }
  0xfb   : > { %v1419_v51 = vmul.f32 0.6931472, %v1851_v32  ;;  %v996_v44 = vadd.f32 %v995_v17, %v994_v26 }
  0xfc   : > { %v1853_v37 = vpop.eup %1852  ;;  %v1432_v46 = vsel %vm653_vm0, %v1428_v49, 0.0  ;;  %v1104_v30 = vpop.xlane.xlu1 %1103  ;;  %v708_v40 = vrot.slane %v707_v13, 1 }
  0xfd   : > { %v1855_v18 = vpop.eup %1854  ;;  %v1421_v9 = vmul.f32 0.6931472, %v1853_v37  ;;  %v1425_v45 = vadd.f32 %v1419_v51, %v1393_v41  ;;  %v997_v24 = vrot.slane %v996_v44, 1  ;;  %v1105_v35 = vrot.slane %v1104_v30, 4 }
  0xfe   : > { %v1423_v58 = vmul.f32 0.6931472, %v1855_v18  ;;  %v709_v27 = vadd.f32 %v708_v40, %v707_v13 }
  0xff   : > { %v1426_v0 = vadd.f32 %v1421_v9, %v1394_v61  ;;  %v1429_v55 = vmul.f32 %v3294_v34, %v1425_v45  ;;  %v998_v42 = vadd.f32 %v997_v24, %v996_v44  ;;  %v1106_v32 = vadd.f32 %v1105_v35, %v1104_v30 }
 0x100   : > { %v1427_v25 = vadd.f32 %v1423_v58, %v1395_v33  ;;  %1476 = vadd.xlane.f32.xlu2 %v1475_v62  ;;  %1690 = vpush %v709_v27 }
 0x101   : > { %v1430_v50 = vmul.f32 %v3294_v34, %v1426_v0  ;;  %v1433_v3 = vsel %vm653_vm0, %v1429_v55, 0.0  ;;  %v1107_v51 = vrot.slane %v1106_v32, 2  ;;  %v1329_v55 = vrot.slane %v3118_v29, 4 }
 0x102   : > { %v1431_v36 = vmul.f32 %v3294_v34, %v1427_v25  ;;  %v1434_v7 = vadd.f32 %v1433_v3, %v1432_v46  ;;  %v770_v34 = vadd.f32 %v769_v8, %v768_v12 }
 0x103   : > { %v1435_v4 = vsel %vm653_vm0, %v1430_v50, 0.0  ;;  %v1108_v37 = vadd.f32 %v1107_v51, %v1106_v32  ;;  %v1330_v50 = vadd.f32 %v1329_v55, %v3118_v29 }
 0x104   : > { %v1436_v56 = vadd.f32 %v1435_v4, %v1434_v7  ;;  %v1437_v54 = vsel %vm653_vm0, %v1431_v36, 0.0  ;;  %v771_v23 = vrot.slane %v770_v34, 2 }
 0x105   : > { %v1109_v18 = vrot.slane %v1108_v37, 1  ;;  %v1331_v4 = vrot.slane %v1330_v50, 2 }
 0x106   : > { %v1438_v47 = vadd.f32 %v1437_v54, %v1436_v56  ;;  %v772_v22 = vadd.f32 %v771_v23, %v770_v34 }
 0x107   : > { %v805_v14 = vpop.xlane.xlu2 %804  ;;  %v1110_v49 = vadd.f32 %v1109_v18, %v1108_v37  ;;  %v1332_v5 = vadd.f32 %v1331_v4, %v1330_v50 }
 0x108   : > { %1439 = vadd.xlane.f32.xlu0 %v1438_v47  ;;  %v806_v1 = vrot.slane %v805_v14, 4  ;;  %v773_v19 = vrot.slane %v772_v22, 1 }
 0x109   : > { %v1333_v34 = vrot.slane %v1332_v5, 1 }
 0x10a   : > { %v807_v43 = vadd.f32 %v806_v1, %v805_v14  ;;  %v774_v28 = vadd.f32 %v773_v19, %v772_v22 }
 0x10b   : > { %v1334_v23 = vadd.f32 %v1333_v34, %v1332_v5 }
 0x10c   : > { %v808_v16 = vrot.slane %v807_v43, 2  ;;  %1692 = vpush %v774_v28  ;;  %v1486_v28 = vlaneseq }
 0x10e   : > { %v809_v39 = vadd.f32 %v808_v16, %v807_v43 }
 0x10f   : > { %v794_v2 = vpop.xlane.xlu1 %793 }
 0x110   : > { %v795_v10 = vrot.slane %v794_v2, 4  ;;  %v810_v21 = vrot.slane %v809_v39, 1 }
 0x112   : > { %v796_v11 = vadd.f32 %v795_v10, %v794_v2  ;;  %v811_v53 = vadd.f32 %v810_v21, %v809_v39 }
 0x114   : > { %v797_v63 = vrot.slane %v796_v11, 2 }
 0x116   : > { %v798_v31 = vadd.f32 %v797_v63, %v796_v11 }
 0x118   : > { %v799_v52 = vrot.slane %v798_v31, 1 }
 0x11a   : > { %v800_v20 = vadd.f32 %v799_v52, %v798_v31 }
 0x11c   : > { %1694 = vpush %v800_v20 }
 0x11d   : > { %1696 = vpush %v811_v53  ;;  %v1487_v53 = vshrl.u32 %v1486_v28, 7 }
 0x11e   : > { %1698 = vpush %v998_v42 }
 0x11f   : > { %vm1491_vm0 = vcmp.eq.s32.totalorder %v1487_v53, 1  ;;  %vm1488_vm10 = vcmp.eq.s32.totalorder %v1487_v53, 0  ;;  %vm1495_vm15 = vcmp.eq.s32.totalorder %v1487_v53, 2  ;;  %vm1499_vm2 = vcmp.eq.s32.totalorder %v1487_v53, 3 }
 0x120   : > { %vm1503_vm3 = vcmp.eq.s32.totalorder %v1487_v53, 4 }
 0x122   : > { %s1689_s18 = spop %1688 }
 0x126   : > { %v1039_v41 = vpop.xlane.xlu0 %1038 }
 0x127   : > { %v1040_v59 = vrot.slane %v1039_v41, 4 }
 0x129   : > { %v1041_v61 = vadd.f32 %v1040_v59, %v1039_v41 }
 0x12b   : > { %v1042_v38 = vrot.slane %v1041_v61, 2 }
 0x12d   : > { %v1043_v33 = vadd.f32 %v1042_v38, %v1041_v61 }
 0x12f   : > { %v1044_v9 = vrot.slane %v1043_v33, 1 }
 0x131   : > { %v1045_v45 = vadd.f32 %v1044_v9, %v1043_v33  ;;  %s1691_s16 = spop %1690 }
 0x133   : > { %1700 = vpush %v1045_v45 }
 0x134   : > { %1702 = vpush %v1110_v49 }
 0x13d   : > { %s1693_s4 = spop %1692 }
 0x147   : > { %v1375_v58 = vpop.xlane.xlu2 %1374 }
 0x148   : > { %v1376_v46 = vrot.slane %v1375_v58, 4 }
 0x14a   : > { %v1377_v3 = vadd.f32 %v1376_v46, %v1375_v58 }
 0x14c   : > { %v1378_v54 = vrot.slane %v1377_v3, 2 }
 0x14d   : > { %s3127_s29 = spop %1694 }
 0x14e   : > { %v1379_v2 = vadd.f32 %v1378_v54, %v1377_v3  ;;  %s3129_s10 = spop %1696 }
 0x14f   : > { %s1699_s30 = spop %1698 }
 0x150   : > { %v1380_v48 = vrot.slane %v1379_v2, 1  ;;  %s1000_s25 = sadd.f32 %s1699_s30, %s1689_s18 }
 0x152   : > { %v1381_v15 = vadd.f32 %v1380_v48, %v1379_v2 }
 0x15f   : > { %v1141_v62 = vpop.xlane.xlu0 %1140 }
 0x160   : > { %v1142_v0 = vrot.slane %v1141_v62, 4 }
 0x162   : > { %v1143_v25 = vadd.f32 %v1142_v0, %v1141_v62 }
 0x164   : > { %v1144_v36 = vrot.slane %v1143_v25, 2  ;;  %s1701_s6 = spop %1700 }
 0x165   : > { %s1703_s2 = spop %1702  ;;  %s1047_s22 = sadd.f32 %s1701_s6, %s1691_s16 }
 0x166   : > { %v1145_v47 = vadd.f32 %v1144_v36, %v1143_v25  ;;  %s1112_s3 = sadd.f32 %s1703_s2, %s1693_s4 }
 0x168   : > { %v1146_v14 = vrot.slane %v1145_v47, 1 }
 0x16a   : > { %v1147_v29 = vadd.f32 %v1146_v14, %v1145_v47 }
 0x16b   : > { %v1130_v7 = vpop.xlane.xlu2 %1129 }
 0x16c   : > { %v1131_v56 = vrot.slane %v1130_v7, 4 }
 0x16d   : > { %v1466_v60 = vpop.xlane.xlu1 %1465 }
 0x16e   : > { %v1132_v12 = vadd.f32 %v1131_v56, %v1130_v7  ;;  %v1467_v57 = vrot.slane %v1466_v60, 4 }
 0x170   : > { %v1133_v30 = vrot.slane %v1132_v12, 2  ;;  %v1468_v26 = vadd.f32 %v1467_v57, %v1466_v60 }
 0x172   : > { %v1134_v8 = vadd.f32 %v1133_v30, %v1132_v12  ;;  %v1469_v63 = vrot.slane %v1468_v26, 2 }
 0x173   : > { %v1477_v1 = vpop.xlane.xlu2 %1476 }
 0x174   : > { %v1478_v10 = vrot.slane %v1477_v1, 4  ;;  %v1135_v6 = vrot.slane %v1134_v8, 1  ;;  %v1470_v39 = vadd.f32 %v1469_v63, %v1468_v26 }
 0x176   : > { %v1479_v43 = vadd.f32 %v1478_v10, %v1477_v1  ;;  %v1136_v11 = vadd.f32 %v1135_v6, %v1134_v8  ;;  %v1471_v52 = vrot.slane %v1470_v39, 1 }
 0x178   : > { %1704 = vpush %v1136_v11  ;;  %v1480_v16 = vrot.slane %v1479_v43, 2  ;;  %v1472_v24 = vadd.f32 %v1471_v52, %v1470_v39 }
 0x179   : > { %1706 = vpush %v1147_v29 }
 0x17a   : > { %1708 = vpush %v1334_v23  ;;  %v1481_v31 = vadd.f32 %v1480_v16, %v1479_v43 }
 0x17b   : > { %v1440_v17 = vpop.xlane.xlu0 %1439  ;;  %1710 = vpush %v1381_v15 }
 0x17c   : > { %v1441_v13 = vrot.slane %v1440_v17, 4  ;;  %v1482_v19 = vrot.slane %v1481_v31, 1 }
 0x17e   : > { %v1442_v22 = vadd.f32 %v1441_v13, %v1440_v17  ;;  %v1483_v20 = vadd.f32 %v1482_v19, %v1481_v31 }
 0x180   : > { %v1443_v44 = vrot.slane %v1442_v22, 2 }
 0x182   : > { %v1444_v40 = vadd.f32 %v1443_v44, %v1442_v22 }
 0x184   : > { %v1445_v21 = vrot.slane %v1444_v40, 1 }
 0x186   : > { %v1446_v27 = vadd.f32 %v1445_v21, %v1444_v40 }
 0x188   : > { %1712 = vpush %v1446_v27 }
 0x189   : > { %1714 = vpush %v1472_v24 }
 0x18a   : > { %1716 = vpush %v1483_v20 }
 0x1a9   : > { %s1705_s15 = spop %1704 }
 0x1aa   : > { %s1707_s27 = spop %1706  ;;  %s1138_s0 = sadd.f32 %s1705_s15, %s3127_s29 }
 0x1ab   : > { %s1709_s26 = spop %1708  ;;  %s1149_s8 = sadd.f32 %s1707_s27, %s3129_s10 }
 0x1ac   : > { %s1711_s21 = spop %1710  ;;  %s1336_s13 = sadd.f32 %s1709_s26, %s1000_s25 }
 0x1ad   : > { %s1383_s11 = sadd.f32 %s1711_s21, %s1047_s22 }
 0x1ae   : > { %v1492_v42 = vstv %s1336_s13 }
 0x1af   : > { %v1489_v35 = vstv %s1383_s11  ;;  %v1493_v41 = vsel %vm1491_vm0, %v1492_v42, 0.0 }
 0x1b0   : > { %v1490_v59 = vsel %vm1488_vm10, %v1489_v35, 0.0 }
 0x1b1   : > { %v1494_v32 = vadd.f32 %v1493_v41, %v1490_v59 }
 0x1b9   : > { %s1713_s17 = spop %1712 }
 0x1ba   : > { %s1448_s20 = sadd.f32 %s1713_s17, %s1112_s3  ;;  %s1715_s28 = spop %1714 }
 0x1bb   : > { %s1474_s14 = sadd.f32 %s1715_s28, %s1138_s0  ;;  %s1717_s24 = spop %1716 }
 0x1bc   : > { %v1496_v61 = vstv %s1448_s20  ;;  %s1485_s5 = sadd.f32 %s1717_s24, %s1149_s8 }
 0x1bd   : > { %v1497_v51 = vsel %vm1495_vm15, %v1496_v61, 0.0  ;;  %v1500_v38 = vstv %s1474_s14 }
 0x1be   : > { %v1498_v37 = vadd.f32 %v1497_v51, %v1494_v32  ;;  %v1504_v33 = vstv %s1485_s5  ;;  %v1501_v18 = vsel %vm1499_vm2, %v1500_v38, 0.0 }
 0x1bf   : > { %v1505_v45 = vsel %vm1503_vm3, %v1504_v33, 0.0 }
 0x1c0   : > { %v1502_v9 = vadd.f32 %v1501_v18, %v1498_v37 }
 0x1c2   : > { %v1506_v49 = vadd.f32 %v1505_v45, %v1502_v9 }
 0x1c4   : > { %1507 = vst [vmem:[%s316_s1] sm:$0xff] %v1506_v49 }
 0x1c5 PF: > { %s3334_s18 = sld [smem:[#allocation8_spill]] }
 0x1cb   : > { %s18_s21 = sadd.s32 1, %s3334_s18  }
 0x1cc   : > { %p15_p7 = scmp.ge.s32.totalorder %s18_s21, 4  }
 0x1ce   :  { %17 = sbr.rel (!%p15_p7) target bundleno = 10 (0xa), region = 126 }
 0x1d3   :  { %1527 = vsyncpa [#allocation3], 1 }
 0x1d4   :  { %1529 = vsyncpa [#allocation3 + $0x1], 1 }
 0x1d5   :  { %1530 = vsyncpa [#allocation5], 1 }

</bundles_post_ra>
